<compile_context>
chip_gen: v6e
topology: v6e:2x2x1
jax: 0.10.0
libtpu: 0.0.40
codegen_flags: <defaults>
</compile_context>

<pallas_src>
import functools
import math

import jax
import jax.numpy as jnp
from jax import lax
from jax.experimental import pallas as pl
from jax.experimental.pallas import tpu as pltpu


# ----------------------------------------------------------------------------
# Layer-0 input projection (plain XLA; D_in is tiny so the MXU is useless here).
# ----------------------------------------------------------------------------
def layer0_input_projection(x_tm, wih_t, bias_i):
    """x_tm: (T, B, D), wih_t: (D, 3H), bias_i: (1, 3H) -> (T*B, 3H) float32."""
    T, B, D = x_tm.shape
    x_flat = x_tm.reshape(T * B, D).astype(jnp.float32)
    w = wih_t.astype(jnp.float32)
    if D == 1:
        gi0 = x_flat * w[0][None, :] + bias_i      # pure VPU broadcast multiply
    else:
        gi0 = x_flat @ w + bias_i
    return gi0


# ----------------------------------------------------------------------------
# Fully-fused forward kernel (all layers + FC + tanh in one pallas_call).
# ----------------------------------------------------------------------------
def _build_fused_kernel(T, B, layer_dims, O_pad, unroll):
    """layer_dims: tuple of (D_l, H_l) per GRU layer."""
    L = len(layer_dims)

    def kernel(*refs):
        # ---- unpack refs: inputs, outputs, scratch (order fixed by the caller) --
        idx = 0
        gi0_ref = refs[idx]; idx += 1                       # (T*B, 3*H0) f32
        layer_refs = []
        for l in range(L):
            if l == 0:
                whh_ref, bhn_ref, h0_ref = refs[idx:idx + 3]; idx += 3
                layer_refs.append((None, None, whh_ref, bhn_ref, h0_ref))
            else:
                wih_ref, bias_ref, whh_ref, bhn_ref, h0_ref = refs[idx:idx + 5]
                idx += 5
                layer_refs.append((wih_ref, bias_ref, whh_ref, bhn_ref, h0_ref))
        wfc_ref = refs[idx]; idx += 1                       # (H_last, O_pad)
        bfc_ref = refs[idx]; idx += 1                       # (1, O_pad)
        out_ref = refs[idx]; idx += 1                       # (B, O_pad)
        hlast_refs = refs[idx:idx + L]; idx += L            # (B, H_l) each
        gi_scratch = refs[idx:idx + (L - 1)]; idx += (L - 1)  # (T*B, 3H_l), l>=1
        y_scratch = refs[idx:idx + (L - 1)]; idx += (L - 1)   # (T*B, H_l), l<L-1

        # TODO(synk): for sequences too large to hold in VMEM, re-introduce a
        # time-chunked grid (previous version) instead of the fully-resident path.
        # TODO(synk): on v7x, run the stacked layers as a 2-TensorCore wavefront
        # (core_map + VMEM_SHARED/CMEM handoff) instead of back-to-back.

        for l in range(L):
            D_l, H_l = layer_dims[l]
            wih_ref, bias_ref, whh_ref, bhn_ref, h0_ref = layer_refs[l]

            # ---- hoisted input projection for this layer ------------------------
            if l == 0:
                gi_ref = gi0_ref                            # computed outside (D_in tiny)
            else:
                # One lane-dense (T*B, H_prev) x (H_prev, 3H) MXU matmul over the
                # whole sequence, read straight from the previous layer's VMEM scratch.
                y_prev = y_scratch[l - 1][...]              # (T*B, D_l) f32
                gi_all = (jnp.dot(y_prev.astype(wih_ref.dtype), wih_ref[...],
                                  preferred_element_type=jnp.float32)
                          + bias_ref[...].astype(jnp.float32))
                gi_scratch[l - 1][...] = gi_all
                gi_ref = gi_scratch[l - 1]

            # ---- recurrence: h carried in registers across the unrolled loop ----
            bhn_b = jnp.broadcast_to(bhn_ref[...].astype(jnp.float32), (B, H_l))
            h0 = h0_ref[...].astype(jnp.float32)
            y_ref = y_scratch[l] if l + 1 < L else None

            # TODO(synk): check bundle dump whether Mosaic already keeps W_hh
            # resident across steps; if not, switch to pltpu.matmul_push_rhs/
            # matmul_acc_lhs/matmul_pop to stage the RHS once per layer.
            def step(t, h, gi_ref=gi_ref, whh_ref=whh_ref, bhn_b=bhn_b,
                     H=H_l, y_ref=y_ref):
                base = pl.multiple_of(t * B, B)
                gi = gi_ref[pl.ds(base, B), :]              # (B, 3H)
                gh = jnp.dot(h, whh_ref[...],               # W_hh stays f32
                             preferred_element_type=jnp.float32)
                r = jax.nn.sigmoid(gi[:, 0:H] + gh[:, 0:H])
                z = jax.nn.sigmoid(gi[:, H:2 * H] + gh[:, H:2 * H])
                n = jnp.tanh(gi[:, 2 * H:3 * H] + r * (gh[:, 2 * H:3 * H] + bhn_b))
                h_new = n + z * (h - n)                     # == (1-z)*n + z*h
                if y_ref is not None:
                    y_ref[pl.ds(base, B), :] = h_new
                return h_new

            h_last = lax.fori_loop(0, T, step, h0, unroll=unroll)
            hlast_refs[l][...] = h_last

            # ---- fused FC + Tanh head on the final hidden state ------------------
            if l + 1 == L:
                out_ref[...] = jnp.tanh(
                    jnp.dot(h_last.astype(wfc_ref.dtype), wfc_ref[...],
                            preferred_element_type=jnp.float32)
                    + bfc_ref[...].astype(jnp.float32)).astype(out_ref.dtype)

    return kernel


# ----------------------------------------------------------------------------
# Parameter preparation (transpose, bias fold, FC lane padding, optional bf16).
# ----------------------------------------------------------------------------
def prepare_params(params, compute_dtype=jnp.float32, lane=128):
    """compute_dtype applies only to streaming weights (W_ih of layers >= 1, W_fc).
    W_hh and the carried hidden state stay float32 (recurrent-path accuracy)."""
    layers = []
    for idx, (w_ih, w_hh, b_ih, b_hh) in enumerate(params["gru"]):
        H = w_hh.shape[1]
        wih_dtype = jnp.float32 if idx == 0 else compute_dtype
        wih_t = jnp.transpose(w_ih).astype(wih_dtype)        # (D, 3H)
        whh_t = jnp.transpose(w_hh).astype(jnp.float32)      # (H, 3H)
        # Fold b_ih + [b_hr, b_hz, 0] into the precomputed input projection;
        # b_hn stays separate because it is multiplied by r in the cell.
        bias_i = (b_ih + jnp.concatenate(
            [b_hh[:2 * H], jnp.zeros((H,), b_hh.dtype)])).reshape(1, 3 * H)
        bhn = b_hh[2 * H:3 * H].reshape(1, H)
        layers.append(dict(wih_t=wih_t, whh_t=whh_t,
                           bias_i=bias_i.astype(jnp.float32),
                           bhn=bhn.astype(jnp.float32)))
    fc_w = params["fc_w"]                      # (O, H)  PyTorch layout
    fc_b = params["fc_b"]                      # (O,)
    O, H_last = fc_w.shape
    O_pad = ((O + lane - 1) // lane) * lane    # 120 -> 128: unmasked stores
    wfc_pad_t = jnp.zeros((H_last, O_pad), jnp.float32).at[:, :O].set(
        jnp.transpose(fc_w)).astype(compute_dtype)
    bfc_pad = jnp.zeros((1, O_pad), jnp.float32).at[:, :O].set(fc_b)
    return dict(layers=layers, fc_w_t_pad=wfc_pad_t, fc_b_pad=bfc_pad,
                output_size=O)


# ----------------------------------------------------------------------------
# Full model forward: one transpose + one tiny XLA projection + ONE pallas_call.
# ----------------------------------------------------------------------------
def gru_model_forward(x, h_list, kparams):
    """x: (B, T, D_in) batch-first, h_list: list of (1, B, H_l).
    Returns (out (B, output_size), h_out list of (1, B, H_l)) like PyTorch."""
    B, T, D = x.shape
    layers = kparams["layers"]
    L = len(layers)
    hidden = [lp["whh_t"].shape[0] for lp in layers]
    layer_dims = []
    d_prev = D
    for H in hidden:
        layer_dims.append((d_prev, H))
        d_prev = H
    O_pad = kparams["fc_w_t_pad"].shape[-1]

    x_tm = jnp.transpose(x, (1, 0, 2))                       # (T, B, D_in)
    gi0 = layer0_input_projection(x_tm, layers[0]["wih_t"], layers[0]["bias_i"])

    unroll = True if T <= 16 else 8
    kernel = _build_fused_kernel(T, B, tuple(layer_dims), O_pad, unroll)

    in_arrays = [gi0]
    for l, lp in enumerate(layers):
        if l == 0:
            in_arrays += [lp["whh_t"], lp["bhn"], h_list[l][0]]
        else:
            in_arrays += [lp["wih_t"], lp["bias_i"], lp["whh_t"], lp["bhn"],
                          h_list[l][0]]
    in_arrays += [kparams["fc_w_t_pad"], kparams["fc_b_pad"]]

    out_shapes = tuple(
        [jax.ShapeDtypeStruct((B, O_pad), jnp.float32)]
        + [jax.ShapeDtypeStruct((B, H), jnp.float32) for H in hidden])
    scratch_shapes = (
        [pltpu.VMEM((T * B, 3 * H), jnp.float32) for H in hidden[1:]]   # gi, l>=1
        + [pltpu.VMEM((T * B, H), jnp.float32) for H in hidden[:-1]])   # yseq, l<L-1

    results = pl.pallas_call(
        kernel,
        out_shape=out_shapes,
        scratch_shapes=scratch_shapes,
    )(*in_arrays)

    out = results[0][:, :kparams["output_size"]]
    h_out = [results[1 + l][None] for l in range(L)]         # (1, B, H_l) each
    return out, h_out


# ----------------------------------------------------------------------------
# Deterministic parameter init (PyTorch default: U(-1/sqrt(H), 1/sqrt(H))).
# ----------------------------------------------------------------------------
def init_params(key, input_size, hidden_sizes, output_size):
    params = {"gru": []}
    d_in = input_size
    for H in hidden_sizes:
        k = 1.0 / math.sqrt(H)
        key, k1, k2, k3, k4 = jax.random.split(key, 5)
        w_ih = jax.random.uniform(k1, (3 * H, d_in), jnp.float32, -k, k)
        w_hh = jax.random.uniform(k2, (3 * H, H), jnp.float32, -k, k)
        b_ih = jax.random.uniform(k3, (3 * H,), jnp.float32, -k, k)
        b_hh = jax.random.uniform(k4, (3 * H,), jnp.float32, -k, k)
        params["gru"].append((w_ih, w_hh, b_ih, b_hh))
        d_in = H
    kf = 1.0 / math.sqrt(hidden_sizes[-1])
    key, k1, k2 = jax.random.split(key, 3)
    params["fc_w"] = jax.random.uniform(k1, (output_size, hidden_sizes[-1]),
                                        jnp.float32, -kf, kf)
    params["fc_b"] = jax.random.uniform(k2, (output_size,), jnp.float32, -kf, kf)
    return params


# ----------------------------------------------------------------------------
# Pure-JAX reference (lax.scan) for validation.
# ----------------------------------------------------------------------------
def gru_layer_ref(x_tm, h0, w_ih, w_hh, b_ih, b_hh):
    H = h0.shape[-1]

    def step(h, x_t):
        gi = x_t @ w_ih.T + b_ih
        gh = h @ w_hh.T + b_hh
        r = jax.nn.sigmoid(gi[:, :H] + gh[:, :H])
        z = jax.nn.sigmoid(gi[:, H:2 * H] + gh[:, H:2 * H])
        n = jnp.tanh(gi[:, 2 * H:] + r * gh[:, 2 * H:])
        h_new = (1.0 - z) * n + z * h
        return h_new, h_new

    h_last, ys = lax.scan(step, h0, x_tm)
    return ys, h_last


def gru_model_ref(x, h_list, params):
    out = jnp.transpose(x, (1, 0, 2))
    h_out = []
    for i, (w_ih, w_hh, b_ih, b_hh) in enumerate(params["gru"]):
        out, h_last = gru_layer_ref(out, h_list[i][0], w_ih, w_hh, b_ih, b_hh)
        h_out.append(h_last[None])
    y = jnp.tanh(out[-1] @ params["fc_w"].T + params["fc_b"])
    return y, h_out


# ----------------------------------------------------------------------------
if __name__ == "__main__":
    # Small shapes consistent with the module: input_size=1, 2 stacked GRU layers.
    # B=8 fills the vreg sublane height (review: B=2 wastes 75% of each vreg row).
    B, T = 8, 8
    input_size = 1
    hidden_sizes = [128, 128]
    output_size = 120

    key = jax.random.PRNGKey(0)
    key, kx = jax.random.split(key)
    params = init_params(key, input_size, hidden_sizes, output_size)

    x = jax.random.normal(kx, (B, T, input_size), jnp.float32)
    h = [jnp.zeros((1, B, Hs), jnp.float32) for Hs in hidden_sizes]  # init_hidden

    # f32 path (exact check against the pure-JAX reference).
    kparams = prepare_params(params, compute_dtype=jnp.float32)
    fwd = jax.jit(functools.partial(gru_model_forward, kparams=kparams))
    out, h_out = fwd(x, h)
    out = jax.block_until_ready(out)
    h_out = [jax.block_until_ready(hi) for hi in h_out]

    out_ref, h_out_ref = gru_model_ref(x, h, params)
    assert out.shape == (B, output_size)
    assert all(hi.shape == (1, B, Hs) for hi, Hs in zip(h_out, hidden_sizes))
    assert jnp.allclose(out, out_ref, rtol=1e-3, atol=1e-3)
    for hi, hr in zip(h_out, h_out_ref):
        assert jnp.allclose(hi, hr, rtol=1e-3, atol=1e-3)

    # bf16 streaming-weight variant (W_ih of layers >= 1 and W_fc only;
    # W_hh / hidden state stay f32, so no recurrent rounding drift).
    kparams_bf16 = prepare_params(params, compute_dtype=jnp.bfloat16)
    fwd_bf16 = jax.jit(functools.partial(gru_model_forward, kparams=kparams_bf16))
    out_b, h_out_b = fwd_bf16(x, h)
    out_b = jax.block_until_ready(out_b)
    assert out_b.shape == (B, output_size)
    assert bool(jnp.all(jnp.isfinite(out_b)))
    assert jnp.allclose(out_b, out_ref, rtol=0.0, atol=5e-2)

    print("KERNEL_OK")
</pallas_src>

<mosaic_0001>
module attributes {stable_mosaic.version = 11 : i64} {
  func.func @kernel(%arg0: memref<64x384xf32, #tpu.memory_space<vmem>>, %arg1: memref<128x384xf32, #tpu.memory_space<vmem>>, %arg2: memref<1x128xf32, #tpu.memory_space<vmem>>, %arg3: memref<8x128xf32, #tpu.memory_space<vmem>>, %arg4: memref<128x384xf32, #tpu.memory_space<vmem>>, %arg5: memref<1x384xf32, #tpu.memory_space<vmem>>, %arg6: memref<128x384xf32, #tpu.memory_space<vmem>>, %arg7: memref<1x128xf32, #tpu.memory_space<vmem>>, %arg8: memref<8x128xf32, #tpu.memory_space<vmem>>, %arg9: memref<128x128xf32, #tpu.memory_space<vmem>>, %arg10: memref<1x128xf32, #tpu.memory_space<vmem>>, %arg11: memref<8x128xf32, #tpu.memory_space<vmem>>, %arg12: memref<8x128xf32, #tpu.memory_space<vmem>>, %arg13: memref<8x128xf32, #tpu.memory_space<vmem>>, %arg14: memref<64x384xf32, #tpu.memory_space<vmem>>, %arg15: memref<64x128xf32, #tpu.memory_space<vmem>>) attributes {dimension_semantics = [], scalar_prefetch = 0 : i64, scratch_operands = 2 : i64, tpu.core_type = #tpu.core_type<tc>} {
    %c0 = arith.constant 0 : index
    %c0_0 = arith.constant 0 : index
    %0 = vector.load %arg2[%c0, %c0_0] : memref<1x128xf32, #tpu.memory_space<vmem>>, vector<1x128xf32>
    %1 = vector.shape_cast %0 : vector<1x128xf32> to vector<1x128xf32>
    %2 = vector.broadcast %1 : vector<1x128xf32> to vector<8x128xf32>
    %c0_1 = arith.constant 0 : index
    %c0_2 = arith.constant 0 : index
    %3 = vector.load %arg3[%c0_1, %c0_2] : memref<8x128xf32, #tpu.memory_space<vmem>>, vector<8x128xf32>
    %c0_i32 = arith.constant 0 : i32
    %c8_i32 = arith.constant 8 : i32
    %4 = arith.muli %c0_i32, %c8_i32 : i32
    %5 = tpu.assume_multiple %4, 8 : i32
    %6 = arith.index_cast %5 : i32 to index
    %c0_3 = arith.constant 0 : index
    %7 = vector.load %arg0[%6, %c0_3] : memref<64x384xf32, #tpu.memory_space<vmem>>, vector<8x384xf32>
    %c0_4 = arith.constant 0 : index
    %c0_5 = arith.constant 0 : index
    %8 = vector.load %arg1[%c0_4, %c0_5] : memref<128x384xf32, #tpu.memory_space<vmem>>, vector<128x384xf32>
    %cst = arith.constant dense<0.000000e+00> : vector<8x384xf32>
    %9 = tpu.matmul %3, %8, %cst {dimension_numbers = #tpu.dot_dimension_numbers<[1], [0], [0], [1], [0, 0, 1, 1], [], []>} : vector<8x128xf32>, vector<128x384xf32>, vector<8x384xf32> -> vector<8x384xf32>
    %10 = vector.extract_strided_slice %7 {offsets = [0, 0], sizes = [8, 128], strides = [1, 1]} : vector<8x384xf32> to vector<8x128xf32>
    %11 = vector.extract_strided_slice %9 {offsets = [0, 0], sizes = [8, 128], strides = [1, 1]} : vector<8x384xf32> to vector<8x128xf32>
    %12 = arith.addf %10, %11 : vector<8x128xf32>
    %13 = arith.negf %12 : vector<8x128xf32>
    %14 = math.exp %13 : vector<8x128xf32>
    %cst_6 = arith.constant 1.000000e+00 : f32
    %15 = vector.broadcast %cst_6 : f32 to vector<8x128xf32>
    %16 = arith.addf %15, %14 : vector<8x128xf32>
    %17 = arith.divf %15, %16 : vector<8x128xf32>
    %18 = vector.extract_strided_slice %7 {offsets = [0, 128], sizes = [8, 128], strides = [1, 1]} : vector<8x384xf32> to vector<8x128xf32>
    %19 = vector.extract_strided_slice %9 {offsets = [0, 128], sizes = [8, 128], strides = [1, 1]} : vector<8x384xf32> to vector<8x128xf32>
    %20 = arith.addf %18, %19 : vector<8x128xf32>
    %21 = arith.negf %20 : vector<8x128xf32>
    %22 = math.exp %21 : vector<8x128xf32>
    %cst_7 = arith.constant 1.000000e+00 : f32
    %23 = vector.broadcast %cst_7 : f32 to vector<8x128xf32>
    %24 = arith.addf %23, %22 : vector<8x128xf32>
    %25 = arith.divf %23, %24 : vector<8x128xf32>
    %26 = vector.extract_strided_slice %7 {offsets = [0, 256], sizes = [8, 128], strides = [1, 1]} : vector<8x384xf32> to vector<8x128xf32>
    %27 = vector.extract_strided_slice %9 {offsets = [0, 256], sizes = [8, 128], strides = [1, 1]} : vector<8x384xf32> to vector<8x128xf32>
    %28 = arith.addf %27, %2 : vector<8x128xf32>
    %29 = arith.mulf %17, %28 : vector<8x128xf32>
    %30 = arith.addf %26, %29 : vector<8x128xf32>
    %31 = math.tanh %30 : vector<8x128xf32>
    %32 = arith.subf %3, %31 : vector<8x128xf32>
    %33 = arith.mulf %25, %32 : vector<8x128xf32>
    %34 = arith.addf %31, %33 : vector<8x128xf32>
    %35 = arith.index_cast %5 : i32 to index
    %c0_8 = arith.constant 0 : index
    %36 = vector.load %arg15[%35, %c0_8] : memref<64x128xf32, #tpu.memory_space<vmem>>, vector<8x128xf32>
    tpu.vector_store %arg15[%35, %c0_8], %34 {strides = array<i32>} : memref<64x128xf32, #tpu.memory_space<vmem>>, vector<8x128xf32>,
    %c1_i32 = arith.constant 1 : i32
    %c8_i32_9 = arith.constant 8 : i32
    %37 = arith.muli %c1_i32, %c8_i32_9 : i32
    %38 = tpu.assume_multiple %37, 8 : i32
    %39 = arith.index_cast %38 : i32 to index
    %c0_10 = arith.constant 0 : index
    %40 = vector.load %arg0[%39, %c0_10] : memref<64x384xf32, #tpu.memory_space<vmem>>, vector<8x384xf32>
    %c0_11 = arith.constant 0 : index
    %c0_12 = arith.constant 0 : index
    %41 = vector.load %arg1[%c0_11, %c0_12] : memref<128x384xf32, #tpu.memory_space<vmem>>, vector<128x384xf32>
    %cst_13 = arith.constant dense<0.000000e+00> : vector<8x384xf32>
    %42 = tpu.matmul %34, %41, %cst_13 {dimension_numbers = #tpu.dot_dimension_numbers<[1], [0], [0], [1], [0, 0, 1, 1], [], []>} : vector<8x128xf32>, vector<128x384xf32>, vector<8x384xf32> -> vector<8x384xf32>
    %43 = vector.extract_strided_slice %40 {offsets = [0, 0], sizes = [8, 128], strides = [1, 1]} : vector<8x384xf32> to vector<8x128xf32>
    %44 = vector.extract_strided_slice %42 {offsets = [0, 0], sizes = [8, 128], strides = [1, 1]} : vector<8x384xf32> to vector<8x128xf32>
    %45 = arith.addf %43, %44 : vector<8x128xf32>
    %46 = arith.negf %45 : vector<8x128xf32>
    %47 = math.exp %46 : vector<8x128xf32>
    %cst_14 = arith.constant 1.000000e+00 : f32
    %48 = vector.broadcast %cst_14 : f32 to vector<8x128xf32>
    %49 = arith.addf %48, %47 : vector<8x128xf32>
    %50 = arith.divf %48, %49 : vector<8x128xf32>
    %51 = vector.extract_strided_slice %40 {offsets = [0, 128], sizes = [8, 128], strides = [1, 1]} : vector<8x384xf32> to vector<8x128xf32>
    %52 = vector.extract_strided_slice %42 {offsets = [0, 128], sizes = [8, 128], strides = [1, 1]} : vector<8x384xf32> to vector<8x128xf32>
    %53 = arith.addf %51, %52 : vector<8x128xf32>
    %54 = arith.negf %53 : vector<8x128xf32>
    %55 = math.exp %54 : vector<8x128xf32>
    %cst_15 = arith.constant 1.000000e+00 : f32
    %56 = vector.broadcast %cst_15 : f32 to vector<8x128xf32>
    %57 = arith.addf %56, %55 : vector<8x128xf32>
    %58 = arith.divf %56, %57 : vector<8x128xf32>
    %59 = vector.extract_strided_slice %40 {offsets = [0, 256], sizes = [8, 128], strides = [1, 1]} : vector<8x384xf32> to vector<8x128xf32>
    %60 = vector.extract_strided_slice %42 {offsets = [0, 256], sizes = [8, 128], strides = [1, 1]} : vector<8x384xf32> to vector<8x128xf32>
    %61 = arith.addf %60, %2 : vector<8x128xf32>
    %62 = arith.mulf %50, %61 : vector<8x128xf32>
    %63 = arith.addf %59, %62 : vector<8x128xf32>
    %64 = math.tanh %63 : vector<8x128xf32>
    %65 = arith.subf %34, %64 : vector<8x128xf32>
    %66 = arith.mulf %58, %65 : vector<8x128xf32>
    %67 = arith.addf %64, %66 : vector<8x128xf32>
    %68 = arith.index_cast %38 : i32 to index
    %c0_16 = arith.constant 0 : index
    %69 = vector.load %arg15[%68, %c0_16] : memref<64x128xf32, #tpu.memory_space<vmem>>, vector<8x128xf32>
    tpu.vector_store %arg15[%68, %c0_16], %67 {strides = array<i32>} : memref<64x128xf32, #tpu.memory_space<vmem>>, vector<8x128xf32>,
    %c2_i32 = arith.constant 2 : i32
    %c8_i32_17 = arith.constant 8 : i32
    %70 = arith.muli %c2_i32, %c8_i32_17 : i32
    %71 = tpu.assume_multiple %70, 8 : i32
    %72 = arith.index_cast %71 : i32 to index
    %c0_18 = arith.constant 0 : index
    %73 = vector.load %arg0[%72, %c0_18] : memref<64x384xf32, #tpu.memory_space<vmem>>, vector<8x384xf32>
    %c0_19 = arith.constant 0 : index
    %c0_20 = arith.constant 0 : index
    %74 = vector.load %arg1[%c0_19, %c0_20] : memref<128x384xf32, #tpu.memory_space<vmem>>, vector<128x384xf32>
    %cst_21 = arith.constant dense<0.000000e+00> : vector<8x384xf32>
    %75 = tpu.matmul %67, %74, %cst_21 {dimension_numbers = #tpu.dot_dimension_numbers<[1], [0], [0], [1], [0, 0, 1, 1], [], []>} : vector<8x128xf32>, vector<128x384xf32>, vector<8x384xf32> -> vector<8x384xf32>
    %76 = vector.extract_strided_slice %73 {offsets = [0, 0], sizes = [8, 128], strides = [1, 1]} : vector<8x384xf32> to vector<8x128xf32>
    %77 = vector.extract_strided_slice %75 {offsets = [0, 0], sizes = [8, 128], strides = [1, 1]} : vector<8x384xf32> to vector<8x128xf32>
    %78 = arith.addf %76, %77 : vector<8x128xf32>
    %79 = arith.negf %78 : vector<8x128xf32>
    %80 = math.exp %79 : vector<8x128xf32>
    %cst_22 = arith.constant 1.000000e+00 : f32
    %81 = vector.broadcast %cst_22 : f32 to vector<8x128xf32>
    %82 = arith.addf %81, %80 : vector<8x128xf32>
    %83 = arith.divf %81, %82 : vector<8x128xf32>
    %84 = vector.extract_strided_slice %73 {offsets = [0, 128], sizes = [8, 128], strides = [1, 1]} : vector<8x384xf32> to vector<8x128xf32>
    %85 = vector.extract_strided_slice %75 {offsets = [0, 128], sizes = [8, 128], strides = [1, 1]} : vector<8x384xf32> to vector<8x128xf32>
    %86 = arith.addf %84, %85 : vector<8x128xf32>
    %87 = arith.negf %86 : vector<8x128xf32>
    %88 = math.exp %87 : vector<8x128xf32>
    %cst_23 = arith.constant 1.000000e+00 : f32
    %89 = vector.broadcast %cst_23 : f32 to vector<8x128xf32>
    %90 = arith.addf %89, %88 : vector<8x128xf32>
    %91 = arith.divf %89, %90 : vector<8x128xf32>
    %92 = vector.extract_strided_slice %73 {offsets = [0, 256], sizes = [8, 128], strides = [1, 1]} : vector<8x384xf32> to vector<8x128xf32>
    %93 = vector.extract_strided_slice %75 {offsets = [0, 256], sizes = [8, 128], strides = [1, 1]} : vector<8x384xf32> to vector<8x128xf32>
    %94 = arith.addf %93, %2 : vector<8x128xf32>
    %95 = arith.mulf %83, %94 : vector<8x128xf32>
    %96 = arith.addf %92, %95 : vector<8x128xf32>
    %97 = math.tanh %96 : vector<8x128xf32>
    %98 = arith.subf %67, %97 : vector<8x128xf32>
    %99 = arith.mulf %91, %98 : vector<8x128xf32>
    %100 = arith.addf %97, %99 : vector<8x128xf32>
    %101 = arith.index_cast %71 : i32 to index
    %c0_24 = arith.constant 0 : index
    %102 = vector.load %arg15[%101, %c0_24] : memref<64x128xf32, #tpu.memory_space<vmem>>, vector<8x128xf32>
    tpu.vector_store %arg15[%101, %c0_24], %100 {strides = array<i32>} : memref<64x128xf32, #tpu.memory_space<vmem>>, vector<8x128xf32>,
    %c3_i32 = arith.constant 3 : i32
    %c8_i32_25 = arith.constant 8 : i32
    %103 = arith.muli %c3_i32, %c8_i32_25 : i32
    %104 = tpu.assume_multiple %103, 8 : i32
    %105 = arith.index_cast %104 : i32 to index
    %c0_26 = arith.constant 0 : index
    %106 = vector.load %arg0[%105, %c0_26] : memref<64x384xf32, #tpu.memory_space<vmem>>, vector<8x384xf32>
    %c0_27 = arith.constant 0 : index
    %c0_28 = arith.constant 0 : index
    %107 = vector.load %arg1[%c0_27, %c0_28] : memref<128x384xf32, #tpu.memory_space<vmem>>, vector<128x384xf32>
    %cst_29 = arith.constant dense<0.000000e+00> : vector<8x384xf32>
    %108 = tpu.matmul %100, %107, %cst_29 {dimension_numbers = #tpu.dot_dimension_numbers<[1], [0], [0], [1], [0, 0, 1, 1], [], []>} : vector<8x128xf32>, vector<128x384xf32>, vector<8x384xf32> -> vector<8x384xf32>
    %109 = vector.extract_strided_slice %106 {offsets = [0, 0], sizes = [8, 128], strides = [1, 1]} : vector<8x384xf32> to vector<8x128xf32>
    %110 = vector.extract_strided_slice %108 {offsets = [0, 0], sizes = [8, 128], strides = [1, 1]} : vector<8x384xf32> to vector<8x128xf32>
    %111 = arith.addf %109, %110 : vector<8x128xf32>
    %112 = arith.negf %111 : vector<8x128xf32>
    %113 = math.exp %112 : vector<8x128xf32>
    %cst_30 = arith.constant 1.000000e+00 : f32
    %114 = vector.broadcast %cst_30 : f32 to vector<8x128xf32>
    %115 = arith.addf %114, %113 : vector<8x128xf32>
    %116 = arith.divf %114, %115 : vector<8x128xf32>
    %117 = vector.extract_strided_slice %106 {offsets = [0, 128], sizes = [8, 128], strides = [1, 1]} : vector<8x384xf32> to vector<8x128xf32>
    %118 = vector.extract_strided_slice %108 {offsets = [0, 128], sizes = [8, 128], strides = [1, 1]} : vector<8x384xf32> to vector<8x128xf32>
    %119 = arith.addf %117, %118 : vector<8x128xf32>
    %120 = arith.negf %119 : vector<8x128xf32>
    %121 = math.exp %120 : vector<8x128xf32>
    %cst_31 = arith.constant 1.000000e+00 : f32
    %122 = vector.broadcast %cst_31 : f32 to vector<8x128xf32>
    %123 = arith.addf %122, %121 : vector<8x128xf32>
    %124 = arith.divf %122, %123 : vector<8x128xf32>
    %125 = vector.extract_strided_slice %106 {offsets = [0, 256], sizes = [8, 128], strides = [1, 1]} : vector<8x384xf32> to vector<8x128xf32>
    %126 = vector.extract_strided_slice %108 {offsets = [0, 256], sizes = [8, 128], strides = [1, 1]} : vector<8x384xf32> to vector<8x128xf32>
    %127 = arith.addf %126, %2 : vector<8x128xf32>
    %128 = arith.mulf %116, %127 : vector<8x128xf32>
    %129 = arith.addf %125, %128 : vector<8x128xf32>
    %130 = math.tanh %129 : vector<8x128xf32>
    %131 = arith.subf %100, %130 : vector<8x128xf32>
    %132 = arith.mulf %124, %131 : vector<8x128xf32>
    %133 = arith.addf %130, %132 : vector<8x128xf32>
    %134 = arith.index_cast %104 : i32 to index
    %c0_32 = arith.constant 0 : index
    %135 = vector.load %arg15[%134, %c0_32] : memref<64x128xf32, #tpu.memory_space<vmem>>, vector<8x128xf32>
    tpu.vector_store %arg15[%134, %c0_32], %133 {strides = array<i32>} : memref<64x128xf32, #tpu.memory_space<vmem>>, vector<8x128xf32>,
    %c4_i32 = arith.constant 4 : i32
    %c8_i32_33 = arith.constant 8 : i32
    %136 = arith.muli %c4_i32, %c8_i32_33 : i32
    %137 = tpu.assume_multiple %136, 8 : i32
    %138 = arith.index_cast %137 : i32 to index
    %c0_34 = arith.constant 0 : index
    %139 = vector.load %arg0[%138, %c0_34] : memref<64x384xf32, #tpu.memory_space<vmem>>, vector<8x384xf32>
    %c0_35 = arith.constant 0 : index
    %c0_36 = arith.constant 0 : index
    %140 = vector.load %arg1[%c0_35, %c0_36] : memref<128x384xf32, #tpu.memory_space<vmem>>, vector<128x384xf32>
    %cst_37 = arith.constant dense<0.000000e+00> : vector<8x384xf32>
    %141 = tpu.matmul %133, %140, %cst_37 {dimension_numbers = #tpu.dot_dimension_numbers<[1], [0], [0], [1], [0, 0, 1, 1], [], []>} : vector<8x128xf32>, vector<128x384xf32>, vector<8x384xf32> -> vector<8x384xf32>
    %142 = vector.extract_strided_slice %139 {offsets = [0, 0], sizes = [8, 128], strides = [1, 1]} : vector<8x384xf32> to vector<8x128xf32>
    %143 = vector.extract_strided_slice %141 {offsets = [0, 0], sizes = [8, 128], strides = [1, 1]} : vector<8x384xf32> to vector<8x128xf32>
    %144 = arith.addf %142, %143 : vector<8x128xf32>
    %145 = arith.negf %144 : vector<8x128xf32>
    %146 = math.exp %145 : vector<8x128xf32>
    %cst_38 = arith.constant 1.000000e+00 : f32
    %147 = vector.broadcast %cst_38 : f32 to vector<8x128xf32>
    %148 = arith.addf %147, %146 : vector<8x128xf32>
    %149 = arith.divf %147, %148 : vector<8x128xf32>
    %150 = vector.extract_strided_slice %139 {offsets = [0, 128], sizes = [8, 128], strides = [1, 1]} : vector<8x384xf32> to vector<8x128xf32>
    %151 = vector.extract_strided_slice %141 {offsets = [0, 128], sizes = [8, 128], strides = [1, 1]} : vector<8x384xf32> to vector<8x128xf32>
    %152 = arith.addf %150, %151 : vector<8x128xf32>
    %153 = arith.negf %152 : vector<8x128xf32>
    %154 = math.exp %153 : vector<8x128xf32>
    %cst_39 = arith.constant 1.000000e+00 : f32
    %155 = vector.broadcast %cst_39 : f32 to vector<8x128xf32>
    %156 = arith.addf %155, %154 : vector<8x128xf32>
    %157 = arith.divf %155, %156 : vector<8x128xf32>
    %158 = vector.extract_strided_slice %139 {offsets = [0, 256], sizes = [8, 128], strides = [1, 1]} : vector<8x384xf32> to vector<8x128xf32>
    %159 = vector.extract_strided_slice %141 {offsets = [0, 256], sizes = [8, 128], strides = [1, 1]} : vector<8x384xf32> to vector<8x128xf32>
    %160 = arith.addf %159, %2 : vector<8x128xf32>
    %161 = arith.mulf %149, %160 : vector<8x128xf32>
    %162 = arith.addf %158, %161 : vector<8x128xf32>
    %163 = math.tanh %162 : vector<8x128xf32>
    %164 = arith.subf %133, %163 : vector<8x128xf32>
    %165 = arith.mulf %157, %164 : vector<8x128xf32>
    %166 = arith.addf %163, %165 : vector<8x128xf32>
    %167 = arith.index_cast %137 : i32 to index
    %c0_40 = arith.constant 0 : index
    %168 = vector.load %arg15[%167, %c0_40] : memref<64x128xf32, #tpu.memory_space<vmem>>, vector<8x128xf32>
    tpu.vector_store %arg15[%167, %c0_40], %166 {strides = array<i32>} : memref<64x128xf32, #tpu.memory_space<vmem>>, vector<8x128xf32>,
    %c5_i32 = arith.constant 5 : i32
    %c8_i32_41 = arith.constant 8 : i32
    %169 = arith.muli %c5_i32, %c8_i32_41 : i32
    %170 = tpu.assume_multiple %169, 8 : i32
    %171 = arith.index_cast %170 : i32 to index
    %c0_42 = arith.constant 0 : index
    %172 = vector.load %arg0[%171, %c0_42] : memref<64x384xf32, #tpu.memory_space<vmem>>, vector<8x384xf32>
    %c0_43 = arith.constant 0 : index
    %c0_44 = arith.constant 0 : index
    %173 = vector.load %arg1[%c0_43, %c0_44] : memref<128x384xf32, #tpu.memory_space<vmem>>, vector<128x384xf32>
    %cst_45 = arith.constant dense<0.000000e+00> : vector<8x384xf32>
    %174 = tpu.matmul %166, %173, %cst_45 {dimension_numbers = #tpu.dot_dimension_numbers<[1], [0], [0], [1], [0, 0, 1, 1], [], []>} : vector<8x128xf32>, vector<128x384xf32>, vector<8x384xf32> -> vector<8x384xf32>
    %175 = vector.extract_strided_slice %172 {offsets = [0, 0], sizes = [8, 128], strides = [1, 1]} : vector<8x384xf32> to vector<8x128xf32>
    %176 = vector.extract_strided_slice %174 {offsets = [0, 0], sizes = [8, 128], strides = [1, 1]} : vector<8x384xf32> to vector<8x128xf32>
    %177 = arith.addf %175, %176 : vector<8x128xf32>
    %178 = arith.negf %177 : vector<8x128xf32>
    %179 = math.exp %178 : vector<8x128xf32>
    %cst_46 = arith.constant 1.000000e+00 : f32
    %180 = vector.broadcast %cst_46 : f32 to vector<8x128xf32>
    %181 = arith.addf %180, %179 : vector<8x128xf32>
    %182 = arith.divf %180, %181 : vector<8x128xf32>
    %183 = vector.extract_strided_slice %172 {offsets = [0, 128], sizes = [8, 128], strides = [1, 1]} : vector<8x384xf32> to vector<8x128xf32>
    %184 = vector.extract_strided_slice %174 {offsets = [0, 128], sizes = [8, 128], strides = [1, 1]} : vector<8x384xf32> to vector<8x128xf32>
    %185 = arith.addf %183, %184 : vector<8x128xf32>
    %186 = arith.negf %185 : vector<8x128xf32>
    %187 = math.exp %186 : vector<8x128xf32>
    %cst_47 = arith.constant 1.000000e+00 : f32
    %188 = vector.broadcast %cst_47 : f32 to vector<8x128xf32>
    %189 = arith.addf %188, %187 : vector<8x128xf32>
    %190 = arith.divf %188, %189 : vector<8x128xf32>
    %191 = vector.extract_strided_slice %172 {offsets = [0, 256], sizes = [8, 128], strides = [1, 1]} : vector<8x384xf32> to vector<8x128xf32>
    %192 = vector.extract_strided_slice %174 {offsets = [0, 256], sizes = [8, 128], strides = [1, 1]} : vector<8x384xf32> to vector<8x128xf32>
    %193 = arith.addf %192, %2 : vector<8x128xf32>
    %194 = arith.mulf %182, %193 : vector<8x128xf32>
    %195 = arith.addf %191, %194 : vector<8x128xf32>
    %196 = math.tanh %195 : vector<8x128xf32>
    %197 = arith.subf %166, %196 : vector<8x128xf32>
    %198 = arith.mulf %190, %197 : vector<8x128xf32>
    %199 = arith.addf %196, %198 : vector<8x128xf32>
    %200 = arith.index_cast %170 : i32 to index
    %c0_48 = arith.constant 0 : index
    %201 = vector.load %arg15[%200, %c0_48] : memref<64x128xf32, #tpu.memory_space<vmem>>, vector<8x128xf32>
    tpu.vector_store %arg15[%200, %c0_48], %199 {strides = array<i32>} : memref<64x128xf32, #tpu.memory_space<vmem>>, vector<8x128xf32>,
    %c6_i32 = arith.constant 6 : i32
    %c8_i32_49 = arith.constant 8 : i32
    %202 = arith.muli %c6_i32, %c8_i32_49 : i32
    %203 = tpu.assume_multiple %202, 8 : i32
    %204 = arith.index_cast %203 : i32 to index
    %c0_50 = arith.constant 0 : index
    %205 = vector.load %arg0[%204, %c0_50] : memref<64x384xf32, #tpu.memory_space<vmem>>, vector<8x384xf32>
    %c0_51 = arith.constant 0 : index
    %c0_52 = arith.constant 0 : index
    %206 = vector.load %arg1[%c0_51, %c0_52] : memref<128x384xf32, #tpu.memory_space<vmem>>, vector<128x384xf32>
    %cst_53 = arith.constant dense<0.000000e+00> : vector<8x384xf32>
    %207 = tpu.matmul %199, %206, %cst_53 {dimension_numbers = #tpu.dot_dimension_numbers<[1], [0], [0], [1], [0, 0, 1, 1], [], []>} : vector<8x128xf32>, vector<128x384xf32>, vector<8x384xf32> -> vector<8x384xf32>
    %208 = vector.extract_strided_slice %205 {offsets = [0, 0], sizes = [8, 128], strides = [1, 1]} : vector<8x384xf32> to vector<8x128xf32>
    %209 = vector.extract_strided_slice %207 {offsets = [0, 0], sizes = [8, 128], strides = [1, 1]} : vector<8x384xf32> to vector<8x128xf32>
    %210 = arith.addf %208, %209 : vector<8x128xf32>
    %211 = arith.negf %210 : vector<8x128xf32>
    %212 = math.exp %211 : vector<8x128xf32>
    %cst_54 = arith.constant 1.000000e+00 : f32
    %213 = vector.broadcast %cst_54 : f32 to vector<8x128xf32>
    %214 = arith.addf %213, %212 : vector<8x128xf32>
    %215 = arith.divf %213, %214 : vector<8x128xf32>
    %216 = vector.extract_strided_slice %205 {offsets = [0, 128], sizes = [8, 128], strides = [1, 1]} : vector<8x384xf32> to vector<8x128xf32>
    %217 = vector.extract_strided_slice %207 {offsets = [0, 128], sizes = [8, 128], strides = [1, 1]} : vector<8x384xf32> to vector<8x128xf32>
    %218 = arith.addf %216, %217 : vector<8x128xf32>
    %219 = arith.negf %218 : vector<8x128xf32>
    %220 = math.exp %219 : vector<8x128xf32>
    %cst_55 = arith.constant 1.000000e+00 : f32
    %221 = vector.broadcast %cst_55 : f32 to vector<8x128xf32>
    %222 = arith.addf %221, %220 : vector<8x128xf32>
    %223 = arith.divf %221, %222 : vector<8x128xf32>
    %224 = vector.extract_strided_slice %205 {offsets = [0, 256], sizes = [8, 128], strides = [1, 1]} : vector<8x384xf32> to vector<8x128xf32>
    %225 = vector.extract_strided_slice %207 {offsets = [0, 256], sizes = [8, 128], strides = [1, 1]} : vector<8x384xf32> to vector<8x128xf32>
    %226 = arith.addf %225, %2 : vector<8x128xf32>
    %227 = arith.mulf %215, %226 : vector<8x128xf32>
    %228 = arith.addf %224, %227 : vector<8x128xf32>
    %229 = math.tanh %228 : vector<8x128xf32>
    %230 = arith.subf %199, %229 : vector<8x128xf32>
    %231 = arith.mulf %223, %230 : vector<8x128xf32>
    %232 = arith.addf %229, %231 : vector<8x128xf32>
    %233 = arith.index_cast %203 : i32 to index
    %c0_56 = arith.constant 0 : index
    %234 = vector.load %arg15[%233, %c0_56] : memref<64x128xf32, #tpu.memory_space<vmem>>, vector<8x128xf32>
    tpu.vector_store %arg15[%233, %c0_56], %232 {strides = array<i32>} : memref<64x128xf32, #tpu.memory_space<vmem>>, vector<8x128xf32>,
    %c7_i32 = arith.constant 7 : i32
    %c8_i32_57 = arith.constant 8 : i32
    %235 = arith.muli %c7_i32, %c8_i32_57 : i32
    %236 = tpu.assume_multiple %235, 8 : i32
    %237 = arith.index_cast %236 : i32 to index
    %c0_58 = arith.constant 0 : index
    %238 = vector.load %arg0[%237, %c0_58] : memref<64x384xf32, #tpu.memory_space<vmem>>, vector<8x384xf32>
    %c0_59 = arith.constant 0 : index
    %c0_60 = arith.constant 0 : index
    %239 = vector.load %arg1[%c0_59, %c0_60] : memref<128x384xf32, #tpu.memory_space<vmem>>, vector<128x384xf32>
    %cst_61 = arith.constant dense<0.000000e+00> : vector<8x384xf32>
    %240 = tpu.matmul %232, %239, %cst_61 {dimension_numbers = #tpu.dot_dimension_numbers<[1], [0], [0], [1], [0, 0, 1, 1], [], []>} : vector<8x128xf32>, vector<128x384xf32>, vector<8x384xf32> -> vector<8x384xf32>
    %241 = vector.extract_strided_slice %238 {offsets = [0, 0], sizes = [8, 128], strides = [1, 1]} : vector<8x384xf32> to vector<8x128xf32>
    %242 = vector.extract_strided_slice %240 {offsets = [0, 0], sizes = [8, 128], strides = [1, 1]} : vector<8x384xf32> to vector<8x128xf32>
    %243 = arith.addf %241, %242 : vector<8x128xf32>
    %244 = arith.negf %243 : vector<8x128xf32>
    %245 = math.exp %244 : vector<8x128xf32>
    %cst_62 = arith.constant 1.000000e+00 : f32
    %246 = vector.broadcast %cst_62 : f32 to vector<8x128xf32>
    %247 = arith.addf %246, %245 : vector<8x128xf32>
    %248 = arith.divf %246, %247 : vector<8x128xf32>
    %249 = vector.extract_strided_slice %238 {offsets = [0, 128], sizes = [8, 128], strides = [1, 1]} : vector<8x384xf32> to vector<8x128xf32>
    %250 = vector.extract_strided_slice %240 {offsets = [0, 128], sizes = [8, 128], strides = [1, 1]} : vector<8x384xf32> to vector<8x128xf32>
    %251 = arith.addf %249, %250 : vector<8x128xf32>
    %252 = arith.negf %251 : vector<8x128xf32>
    %253 = math.exp %252 : vector<8x128xf32>
    %cst_63 = arith.constant 1.000000e+00 : f32
    %254 = vector.broadcast %cst_63 : f32 to vector<8x128xf32>
    %255 = arith.addf %254, %253 : vector<8x128xf32>
    %256 = arith.divf %254, %255 : vector<8x128xf32>
    %257 = vector.extract_strided_slice %238 {offsets = [0, 256], sizes = [8, 128], strides = [1, 1]} : vector<8x384xf32> to vector<8x128xf32>
    %258 = vector.extract_strided_slice %240 {offsets = [0, 256], sizes = [8, 128], strides = [1, 1]} : vector<8x384xf32> to vector<8x128xf32>
    %259 = arith.addf %258, %2 : vector<8x128xf32>
    %260 = arith.mulf %248, %259 : vector<8x128xf32>
    %261 = arith.addf %257, %260 : vector<8x128xf32>
    %262 = math.tanh %261 : vector<8x128xf32>
    %263 = arith.subf %232, %262 : vector<8x128xf32>
    %264 = arith.mulf %256, %263 : vector<8x128xf32>
    %265 = arith.addf %262, %264 : vector<8x128xf32>
    %266 = arith.index_cast %236 : i32 to index
    %c0_64 = arith.constant 0 : index
    %267 = vector.load %arg15[%266, %c0_64] : memref<64x128xf32, #tpu.memory_space<vmem>>, vector<8x128xf32>
    tpu.vector_store %arg15[%266, %c0_64], %265 {strides = array<i32>} : memref<64x128xf32, #tpu.memory_space<vmem>>, vector<8x128xf32>,
    %c8_i32_65 = arith.constant 8 : i32
    %c0_66 = arith.constant 0 : index
    %c0_67 = arith.constant 0 : index
    %268 = vector.load %arg12[%c0_66, %c0_67] : memref<8x128xf32, #tpu.memory_space<vmem>>, vector<8x128xf32>
    tpu.vector_store %arg12[%c0_66, %c0_67], %265 {strides = array<i32>} : memref<8x128xf32, #tpu.memory_space<vmem>>, vector<8x128xf32>,
    %c0_68 = arith.constant 0 : index
    %c0_69 = arith.constant 0 : index
    %269 = vector.load %arg15[%c0_68, %c0_69] : memref<64x128xf32, #tpu.memory_space<vmem>>, vector<64x128xf32>
    %c0_70 = arith.constant 0 : index
    %c0_71 = arith.constant 0 : index
    %270 = vector.load %arg4[%c0_70, %c0_71] : memref<128x384xf32, #tpu.memory_space<vmem>>, vector<128x384xf32>
    %cst_72 = arith.constant dense<0.000000e+00> : vector<64x384xf32>
    %271 = tpu.matmul %269, %270, %cst_72 {dimension_numbers = #tpu.dot_dimension_numbers<[1], [0], [0], [1], [0, 0, 1, 1], [], []>} : vector<64x128xf32>, vector<128x384xf32>, vector<64x384xf32> -> vector<64x384xf32>
    %c0_73 = arith.constant 0 : index
    %c0_74 = arith.constant 0 : index
    %272 = vector.load %arg5[%c0_73, %c0_74] : memref<1x384xf32, #tpu.memory_space<vmem>>, vector<1x384xf32>
    %273 = vector.broadcast %272 : vector<1x384xf32> to vector<64x384xf32>
    %274 = arith.addf %271, %273 : vector<64x384xf32>
    %c0_75 = arith.constant 0 : index
    %c0_76 = arith.constant 0 : index
    %275 = vector.load %arg14[%c0_75, %c0_76] : memref<64x384xf32, #tpu.memory_space<vmem>>, vector<64x384xf32>
    tpu.vector_store %arg14[%c0_75, %c0_76], %274 {strides = array<i32>} : memref<64x384xf32, #tpu.memory_space<vmem>>, vector<64x384xf32>,
    %c0_77 = arith.constant 0 : index
    %c0_78 = arith.constant 0 : index
    %276 = vector.load %arg7[%c0_77, %c0_78] : memref<1x128xf32, #tpu.memory_space<vmem>>, vector<1x128xf32>
    %277 = vector.shape_cast %276 : vector<1x128xf32> to vector<1x128xf32>
    %278 = vector.broadcast %277 : vector<1x128xf32> to vector<8x128xf32>
    %c0_79 = arith.constant 0 : index
    %c0_80 = arith.constant 0 : index
    %279 = vector.load %arg8[%c0_79, %c0_80] : memref<8x128xf32, #tpu.memory_space<vmem>>, vector<8x128xf32>
    %c0_i32_81 = arith.constant 0 : i32
    %c8_i32_82 = arith.constant 8 : i32
    %280 = arith.muli %c0_i32_81, %c8_i32_82 : i32
    %281 = tpu.assume_multiple %280, 8 : i32
    %282 = arith.index_cast %281 : i32 to index
    %c0_83 = arith.constant 0 : index
    %283 = vector.load %arg14[%282, %c0_83] : memref<64x384xf32, #tpu.memory_space<vmem>>, vector<8x384xf32>
    %c0_84 = arith.constant 0 : index
    %c0_85 = arith.constant 0 : index
    %284 = vector.load %arg6[%c0_84, %c0_85] : memref<128x384xf32, #tpu.memory_space<vmem>>, vector<128x384xf32>
    %cst_86 = arith.constant dense<0.000000e+00> : vector<8x384xf32>
    %285 = tpu.matmul %279, %284, %cst_86 {dimension_numbers = #tpu.dot_dimension_numbers<[1], [0], [0], [1], [0, 0, 1, 1], [], []>} : vector<8x128xf32>, vector<128x384xf32>, vector<8x384xf32> -> vector<8x384xf32>
    %286 = vector.extract_strided_slice %283 {offsets = [0, 0], sizes = [8, 128], strides = [1, 1]} : vector<8x384xf32> to vector<8x128xf32>
    %287 = vector.extract_strided_slice %285 {offsets = [0, 0], sizes = [8, 128], strides = [1, 1]} : vector<8x384xf32> to vector<8x128xf32>
    %288 = arith.addf %286, %287 : vector<8x128xf32>
    %289 = arith.negf %288 : vector<8x128xf32>
    %290 = math.exp %289 : vector<8x128xf32>
    %cst_87 = arith.constant 1.000000e+00 : f32
    %291 = vector.broadcast %cst_87 : f32 to vector<8x128xf32>
    %292 = arith.addf %291, %290 : vector<8x128xf32>
    %293 = arith.divf %291, %292 : vector<8x128xf32>
    %294 = vector.extract_strided_slice %283 {offsets = [0, 128], sizes = [8, 128], strides = [1, 1]} : vector<8x384xf32> to vector<8x128xf32>
    %295 = vector.extract_strided_slice %285 {offsets = [0, 128], sizes = [8, 128], strides = [1, 1]} : vector<8x384xf32> to vector<8x128xf32>
    %296 = arith.addf %294, %295 : vector<8x128xf32>
    %297 = arith.negf %296 : vector<8x128xf32>
    %298 = math.exp %297 : vector<8x128xf32>
    %cst_88 = arith.constant 1.000000e+00 : f32
    %299 = vector.broadcast %cst_88 : f32 to vector<8x128xf32>
    %300 = arith.addf %299, %298 : vector<8x128xf32>
    %301 = arith.divf %299, %300 : vector<8x128xf32>
    %302 = vector.extract_strided_slice %283 {offsets = [0, 256], sizes = [8, 128], strides = [1, 1]} : vector<8x384xf32> to vector<8x128xf32>
    %303 = vector.extract_strided_slice %285 {offsets = [0, 256], sizes = [8, 128], strides = [1, 1]} : vector<8x384xf32> to vector<8x128xf32>
    %304 = arith.addf %303, %278 : vector<8x128xf32>
    %305 = arith.mulf %293, %304 : vector<8x128xf32>
    %306 = arith.addf %302, %305 : vector<8x128xf32>
    %307 = math.tanh %306 : vector<8x128xf32>
    %308 = arith.subf %279, %307 : vector<8x128xf32>
    %309 = arith.mulf %301, %308 : vector<8x128xf32>
    %310 = arith.addf %307, %309 : vector<8x128xf32>
    %c1_i32_89 = arith.constant 1 : i32
    %c8_i32_90 = arith.constant 8 : i32
    %311 = arith.muli %c1_i32_89, %c8_i32_90 : i32
    %312 = tpu.assume_multiple %311, 8 : i32
    %313 = arith.index_cast %312 : i32 to index
    %c0_91 = arith.constant 0 : index
    %314 = vector.load %arg14[%313, %c0_91] : memref<64x384xf32, #tpu.memory_space<vmem>>, vector<8x384xf32>
    %c0_92 = arith.constant 0 : index
    %c0_93 = arith.constant 0 : index
    %315 = vector.load %arg6[%c0_92, %c0_93] : memref<128x384xf32, #tpu.memory_space<vmem>>, vector<128x384xf32>
    %cst_94 = arith.constant dense<0.000000e+00> : vector<8x384xf32>
    %316 = tpu.matmul %310, %315, %cst_94 {dimension_numbers = #tpu.dot_dimension_numbers<[1], [0], [0], [1], [0, 0, 1, 1], [], []>} : vector<8x128xf32>, vector<128x384xf32>, vector<8x384xf32> -> vector<8x384xf32>
    %317 = vector.extract_strided_slice %314 {offsets = [0, 0], sizes = [8, 128], strides = [1, 1]} : vector<8x384xf32> to vector<8x128xf32>
    %318 = vector.extract_strided_slice %316 {offsets = [0, 0], sizes = [8, 128], strides = [1, 1]} : vector<8x384xf32> to vector<8x128xf32>
    %319 = arith.addf %317, %318 : vector<8x128xf32>
    %320 = arith.negf %319 : vector<8x128xf32>
    %321 = math.exp %320 : vector<8x128xf32>
    %cst_95 = arith.constant 1.000000e+00 : f32
    %322 = vector.broadcast %cst_95 : f32 to vector<8x128xf32>
    %323 = arith.addf %322, %321 : vector<8x128xf32>
    %324 = arith.divf %322, %323 : vector<8x128xf32>
    %325 = vector.extract_strided_slice %314 {offsets = [0, 128], sizes = [8, 128], strides = [1, 1]} : vector<8x384xf32> to vector<8x128xf32>
    %326 = vector.extract_strided_slice %316 {offsets = [0, 128], sizes = [8, 128], strides = [1, 1]} : vector<8x384xf32> to vector<8x128xf32>
    %327 = arith.addf %325, %326 : vector<8x128xf32>
    %328 = arith.negf %327 : vector<8x128xf32>
    %329 = math.exp %328 : vector<8x128xf32>
    %cst_96 = arith.constant 1.000000e+00 : f32
    %330 = vector.broadcast %cst_96 : f32 to vector<8x128xf32>
    %331 = arith.addf %330, %329 : vector<8x128xf32>
    %332 = arith.divf %330, %331 : vector<8x128xf32>
    %333 = vector.extract_strided_slice %314 {offsets = [0, 256], sizes = [8, 128], strides = [1, 1]} : vector<8x384xf32> to vector<8x128xf32>
    %334 = vector.extract_strided_slice %316 {offsets = [0, 256], sizes = [8, 128], strides = [1, 1]} : vector<8x384xf32> to vector<8x128xf32>
    %335 = arith.addf %334, %278 : vector<8x128xf32>
    %336 = arith.mulf %324, %335 : vector<8x128xf32>
    %337 = arith.addf %333, %336 : vector<8x128xf32>
    %338 = math.tanh %337 : vector<8x128xf32>
    %339 = arith.subf %310, %338 : vector<8x128xf32>
    %340 = arith.mulf %332, %339 : vector<8x128xf32>
    %341 = arith.addf %338, %340 : vector<8x128xf32>
    %c2_i32_97 = arith.constant 2 : i32
    %c8_i32_98 = arith.constant 8 : i32
    %342 = arith.muli %c2_i32_97, %c8_i32_98 : i32
    %343 = tpu.assume_multiple %342, 8 : i32
    %344 = arith.index_cast %343 : i32 to index
    %c0_99 = arith.constant 0 : index
    %345 = vector.load %arg14[%344, %c0_99] : memref<64x384xf32, #tpu.memory_space<vmem>>, vector<8x384xf32>
    %c0_100 = arith.constant 0 : index
    %c0_101 = arith.constant 0 : index
    %346 = vector.load %arg6[%c0_100, %c0_101] : memref<128x384xf32, #tpu.memory_space<vmem>>, vector<128x384xf32>
    %cst_102 = arith.constant dense<0.000000e+00> : vector<8x384xf32>
    %347 = tpu.matmul %341, %346, %cst_102 {dimension_numbers = #tpu.dot_dimension_numbers<[1], [0], [0], [1], [0, 0, 1, 1], [], []>} : vector<8x128xf32>, vector<128x384xf32>, vector<8x384xf32> -> vector<8x384xf32>
    %348 = vector.extract_strided_slice %345 {offsets = [0, 0], sizes = [8, 128], strides = [1, 1]} : vector<8x384xf32> to vector<8x128xf32>
    %349 = vector.extract_strided_slice %347 {offsets = [0, 0], sizes = [8, 128], strides = [1, 1]} : vector<8x384xf32> to vector<8x128xf32>
    %350 = arith.addf %348, %349 : vector<8x128xf32>
    %351 = arith.negf %350 : vector<8x128xf32>
    %352 = math.exp %351 : vector<8x128xf32>
    %cst_103 = arith.constant 1.000000e+00 : f32
    %353 = vector.broadcast %cst_103 : f32 to vector<8x128xf32>
    %354 = arith.addf %353, %352 : vector<8x128xf32>
    %355 = arith.divf %353, %354 : vector<8x128xf32>
    %356 = vector.extract_strided_slice %345 {offsets = [0, 128], sizes = [8, 128], strides = [1, 1]} : vector<8x384xf32> to vector<8x128xf32>
    %357 = vector.extract_strided_slice %347 {offsets = [0, 128], sizes = [8, 128], strides = [1, 1]} : vector<8x384xf32> to vector<8x128xf32>
    %358 = arith.addf %356, %357 : vector<8x128xf32>
    %359 = arith.negf %358 : vector<8x128xf32>
    %360 = math.exp %359 : vector<8x128xf32>
    %cst_104 = arith.constant 1.000000e+00 : f32
    %361 = vector.broadcast %cst_104 : f32 to vector<8x128xf32>
    %362 = arith.addf %361, %360 : vector<8x128xf32>
    %363 = arith.divf %361, %362 : vector<8x128xf32>
    %364 = vector.extract_strided_slice %345 {offsets = [0, 256], sizes = [8, 128], strides = [1, 1]} : vector<8x384xf32> to vector<8x128xf32>
    %365 = vector.extract_strided_slice %347 {offsets = [0, 256], sizes = [8, 128], strides = [1, 1]} : vector<8x384xf32> to vector<8x128xf32>
    %366 = arith.addf %365, %278 : vector<8x128xf32>
    %367 = arith.mulf %355, %366 : vector<8x128xf32>
    %368 = arith.addf %364, %367 : vector<8x128xf32>
    %369 = math.tanh %368 : vector<8x128xf32>
    %370 = arith.subf %341, %369 : vector<8x128xf32>
    %371 = arith.mulf %363, %370 : vector<8x128xf32>
    %372 = arith.addf %369, %371 : vector<8x128xf32>
    %c3_i32_105 = arith.constant 3 : i32
    %c8_i32_106 = arith.constant 8 : i32
    %373 = arith.muli %c3_i32_105, %c8_i32_106 : i32
    %374 = tpu.assume_multiple %373, 8 : i32
    %375 = arith.index_cast %374 : i32 to index
    %c0_107 = arith.constant 0 : index
    %376 = vector.load %arg14[%375, %c0_107] : memref<64x384xf32, #tpu.memory_space<vmem>>, vector<8x384xf32>
    %c0_108 = arith.constant 0 : index
    %c0_109 = arith.constant 0 : index
    %377 = vector.load %arg6[%c0_108, %c0_109] : memref<128x384xf32, #tpu.memory_space<vmem>>, vector<128x384xf32>
    %cst_110 = arith.constant dense<0.000000e+00> : vector<8x384xf32>
    %378 = tpu.matmul %372, %377, %cst_110 {dimension_numbers = #tpu.dot_dimension_numbers<[1], [0], [0], [1], [0, 0, 1, 1], [], []>} : vector<8x128xf32>, vector<128x384xf32>, vector<8x384xf32> -> vector<8x384xf32>
    %379 = vector.extract_strided_slice %376 {offsets = [0, 0], sizes = [8, 128], strides = [1, 1]} : vector<8x384xf32> to vector<8x128xf32>
    %380 = vector.extract_strided_slice %378 {offsets = [0, 0], sizes = [8, 128], strides = [1, 1]} : vector<8x384xf32> to vector<8x128xf32>
    %381 = arith.addf %379, %380 : vector<8x128xf32>
    %382 = arith.negf %381 : vector<8x128xf32>
    %383 = math.exp %382 : vector<8x128xf32>
    %cst_111 = arith.constant 1.000000e+00 : f32
    %384 = vector.broadcast %cst_111 : f32 to vector<8x128xf32>
    %385 = arith.addf %384, %383 : vector<8x128xf32>
    %386 = arith.divf %384, %385 : vector<8x128xf32>
    %387 = vector.extract_strided_slice %376 {offsets = [0, 128], sizes = [8, 128], strides = [1, 1]} : vector<8x384xf32> to vector<8x128xf32>
    %388 = vector.extract_strided_slice %378 {offsets = [0, 128], sizes = [8, 128], strides = [1, 1]} : vector<8x384xf32> to vector<8x128xf32>
    %389 = arith.addf %387, %388 : vector<8x128xf32>
    %390 = arith.negf %389 : vector<8x128xf32>
    %391 = math.exp %390 : vector<8x128xf32>
    %cst_112 = arith.constant 1.000000e+00 : f32
    %392 = vector.broadcast %cst_112 : f32 to vector<8x128xf32>
    %393 = arith.addf %392, %391 : vector<8x128xf32>
    %394 = arith.divf %392, %393 : vector<8x128xf32>
    %395 = vector.extract_strided_slice %376 {offsets = [0, 256], sizes = [8, 128], strides = [1, 1]} : vector<8x384xf32> to vector<8x128xf32>
    %396 = vector.extract_strided_slice %378 {offsets = [0, 256], sizes = [8, 128], strides = [1, 1]} : vector<8x384xf32> to vector<8x128xf32>
    %397 = arith.addf %396, %278 : vector<8x128xf32>
    %398 = arith.mulf %386, %397 : vector<8x128xf32>
    %399 = arith.addf %395, %398 : vector<8x128xf32>
    %400 = math.tanh %399 : vector<8x128xf32>
    %401 = arith.subf %372, %400 : vector<8x128xf32>
    %402 = arith.mulf %394, %401 : vector<8x128xf32>
    %403 = arith.addf %400, %402 : vector<8x128xf32>
    %c4_i32_113 = arith.constant 4 : i32
    %c8_i32_114 = arith.constant 8 : i32
    %404 = arith.muli %c4_i32_113, %c8_i32_114 : i32
    %405 = tpu.assume_multiple %404, 8 : i32
    %406 = arith.index_cast %405 : i32 to index
    %c0_115 = arith.constant 0 : index
    %407 = vector.load %arg14[%406, %c0_115] : memref<64x384xf32, #tpu.memory_space<vmem>>, vector<8x384xf32>
    %c0_116 = arith.constant 0 : index
    %c0_117 = arith.constant 0 : index
    %408 = vector.load %arg6[%c0_116, %c0_117] : memref<128x384xf32, #tpu.memory_space<vmem>>, vector<128x384xf32>
    %cst_118 = arith.constant dense<0.000000e+00> : vector<8x384xf32>
    %409 = tpu.matmul %403, %408, %cst_118 {dimension_numbers = #tpu.dot_dimension_numbers<[1], [0], [0], [1], [0, 0, 1, 1], [], []>} : vector<8x128xf32>, vector<128x384xf32>, vector<8x384xf32> -> vector<8x384xf32>
    %410 = vector.extract_strided_slice %407 {offsets = [0, 0], sizes = [8, 128], strides = [1, 1]} : vector<8x384xf32> to vector<8x128xf32>
    %411 = vector.extract_strided_slice %409 {offsets = [0, 0], sizes = [8, 128], strides = [1, 1]} : vector<8x384xf32> to vector<8x128xf32>
    %412 = arith.addf %410, %411 : vector<8x128xf32>
    %413 = arith.negf %412 : vector<8x128xf32>
    %414 = math.exp %413 : vector<8x128xf32>
    %cst_119 = arith.constant 1.000000e+00 : f32
    %415 = vector.broadcast %cst_119 : f32 to vector<8x128xf32>
    %416 = arith.addf %415, %414 : vector<8x128xf32>
    %417 = arith.divf %415, %416 : vector<8x128xf32>
    %418 = vector.extract_strided_slice %407 {offsets = [0, 128], sizes = [8, 128], strides = [1, 1]} : vector<8x384xf32> to vector<8x128xf32>
    %419 = vector.extract_strided_slice %409 {offsets = [0, 128], sizes = [8, 128], strides = [1, 1]} : vector<8x384xf32> to vector<8x128xf32>
    %420 = arith.addf %418, %419 : vector<8x128xf32>
    %421 = arith.negf %420 : vector<8x128xf32>
    %422 = math.exp %421 : vector<8x128xf32>
    %cst_120 = arith.constant 1.000000e+00 : f32
    %423 = vector.broadcast %cst_120 : f32 to vector<8x128xf32>
    %424 = arith.addf %423, %422 : vector<8x128xf32>
    %425 = arith.divf %423, %424 : vector<8x128xf32>
    %426 = vector.extract_strided_slice %407 {offsets = [0, 256], sizes = [8, 128], strides = [1, 1]} : vector<8x384xf32> to vector<8x128xf32>
    %427 = vector.extract_strided_slice %409 {offsets = [0, 256], sizes = [8, 128], strides = [1, 1]} : vector<8x384xf32> to vector<8x128xf32>
    %428 = arith.addf %427, %278 : vector<8x128xf32>
    %429 = arith.mulf %417, %428 : vector<8x128xf32>
    %430 = arith.addf %426, %429 : vector<8x128xf32>
    %431 = math.tanh %430 : vector<8x128xf32>
    %432 = arith.subf %403, %431 : vector<8x128xf32>
    %433 = arith.mulf %425, %432 : vector<8x128xf32>
    %434 = arith.addf %431, %433 : vector<8x128xf32>
    %c5_i32_121 = arith.constant 5 : i32
    %c8_i32_122 = arith.constant 8 : i32
    %435 = arith.muli %c5_i32_121, %c8_i32_122 : i32
    %436 = tpu.assume_multiple %435, 8 : i32
    %437 = arith.index_cast %436 : i32 to index
    %c0_123 = arith.constant 0 : index
    %438 = vector.load %arg14[%437, %c0_123] : memref<64x384xf32, #tpu.memory_space<vmem>>, vector<8x384xf32>
    %c0_124 = arith.constant 0 : index
    %c0_125 = arith.constant 0 : index
    %439 = vector.load %arg6[%c0_124, %c0_125] : memref<128x384xf32, #tpu.memory_space<vmem>>, vector<128x384xf32>
    %cst_126 = arith.constant dense<0.000000e+00> : vector<8x384xf32>
    %440 = tpu.matmul %434, %439, %cst_126 {dimension_numbers = #tpu.dot_dimension_numbers<[1], [0], [0], [1], [0, 0, 1, 1], [], []>} : vector<8x128xf32>, vector<128x384xf32>, vector<8x384xf32> -> vector<8x384xf32>
    %441 = vector.extract_strided_slice %438 {offsets = [0, 0], sizes = [8, 128], strides = [1, 1]} : vector<8x384xf32> to vector<8x128xf32>
    %442 = vector.extract_strided_slice %440 {offsets = [0, 0], sizes = [8, 128], strides = [1, 1]} : vector<8x384xf32> to vector<8x128xf32>
    %443 = arith.addf %441, %442 : vector<8x128xf32>
    %444 = arith.negf %443 : vector<8x128xf32>
    %445 = math.exp %444 : vector<8x128xf32>
    %cst_127 = arith.constant 1.000000e+00 : f32
    %446 = vector.broadcast %cst_127 : f32 to vector<8x128xf32>
    %447 = arith.addf %446, %445 : vector<8x128xf32>
    %448 = arith.divf %446, %447 : vector<8x128xf32>
    %449 = vector.extract_strided_slice %438 {offsets = [0, 128], sizes = [8, 128], strides = [1, 1]} : vector<8x384xf32> to vector<8x128xf32>
    %450 = vector.extract_strided_slice %440 {offsets = [0, 128], sizes = [8, 128], strides = [1, 1]} : vector<8x384xf32> to vector<8x128xf32>
    %451 = arith.addf %449, %450 : vector<8x128xf32>
    %452 = arith.negf %451 : vector<8x128xf32>
    %453 = math.exp %452 : vector<8x128xf32>
    %cst_128 = arith.constant 1.000000e+00 : f32
    %454 = vector.broadcast %cst_128 : f32 to vector<8x128xf32>
    %455 = arith.addf %454, %453 : vector<8x128xf32>
    %456 = arith.divf %454, %455 : vector<8x128xf32>
    %457 = vector.extract_strided_slice %438 {offsets = [0, 256], sizes = [8, 128], strides = [1, 1]} : vector<8x384xf32> to vector<8x128xf32>
    %458 = vector.extract_strided_slice %440 {offsets = [0, 256], sizes = [8, 128], strides = [1, 1]} : vector<8x384xf32> to vector<8x128xf32>
    %459 = arith.addf %458, %278 : vector<8x128xf32>
    %460 = arith.mulf %448, %459 : vector<8x128xf32>
    %461 = arith.addf %457, %460 : vector<8x128xf32>
    %462 = math.tanh %461 : vector<8x128xf32>
    %463 = arith.subf %434, %462 : vector<8x128xf32>
    %464 = arith.mulf %456, %463 : vector<8x128xf32>
    %465 = arith.addf %462, %464 : vector<8x128xf32>
    %c6_i32_129 = arith.constant 6 : i32
    %c8_i32_130 = arith.constant 8 : i32
    %466 = arith.muli %c6_i32_129, %c8_i32_130 : i32
    %467 = tpu.assume_multiple %466, 8 : i32
    %468 = arith.index_cast %467 : i32 to index
    %c0_131 = arith.constant 0 : index
    %469 = vector.load %arg14[%468, %c0_131] : memref<64x384xf32, #tpu.memory_space<vmem>>, vector<8x384xf32>
    %c0_132 = arith.constant 0 : index
    %c0_133 = arith.constant 0 : index
    %470 = vector.load %arg6[%c0_132, %c0_133] : memref<128x384xf32, #tpu.memory_space<vmem>>, vector<128x384xf32>
    %cst_134 = arith.constant dense<0.000000e+00> : vector<8x384xf32>
    %471 = tpu.matmul %465, %470, %cst_134 {dimension_numbers = #tpu.dot_dimension_numbers<[1], [0], [0], [1], [0, 0, 1, 1], [], []>} : vector<8x128xf32>, vector<128x384xf32>, vector<8x384xf32> -> vector<8x384xf32>
    %472 = vector.extract_strided_slice %469 {offsets = [0, 0], sizes = [8, 128], strides = [1, 1]} : vector<8x384xf32> to vector<8x128xf32>
    %473 = vector.extract_strided_slice %471 {offsets = [0, 0], sizes = [8, 128], strides = [1, 1]} : vector<8x384xf32> to vector<8x128xf32>
    %474 = arith.addf %472, %473 : vector<8x128xf32>
    %475 = arith.negf %474 : vector<8x128xf32>
    %476 = math.exp %475 : vector<8x128xf32>
    %cst_135 = arith.constant 1.000000e+00 : f32
    %477 = vector.broadcast %cst_135 : f32 to vector<8x128xf32>
    %478 = arith.addf %477, %476 : vector<8x128xf32>
    %479 = arith.divf %477, %478 : vector<8x128xf32>
    %480 = vector.extract_strided_slice %469 {offsets = [0, 128], sizes = [8, 128], strides = [1, 1]} : vector<8x384xf32> to vector<8x128xf32>
    %481 = vector.extract_strided_slice %471 {offsets = [0, 128], sizes = [8, 128], strides = [1, 1]} : vector<8x384xf32> to vector<8x128xf32>
    %482 = arith.addf %480, %481 : vector<8x128xf32>
    %483 = arith.negf %482 : vector<8x128xf32>
    %484 = math.exp %483 : vector<8x128xf32>
    %cst_136 = arith.constant 1.000000e+00 : f32
    %485 = vector.broadcast %cst_136 : f32 to vector<8x128xf32>
    %486 = arith.addf %485, %484 : vector<8x128xf32>
    %487 = arith.divf %485, %486 : vector<8x128xf32>
    %488 = vector.extract_strided_slice %469 {offsets = [0, 256], sizes = [8, 128], strides = [1, 1]} : vector<8x384xf32> to vector<8x128xf32>
    %489 = vector.extract_strided_slice %471 {offsets = [0, 256], sizes = [8, 128], strides = [1, 1]} : vector<8x384xf32> to vector<8x128xf32>
    %490 = arith.addf %489, %278 : vector<8x128xf32>
    %491 = arith.mulf %479, %490 : vector<8x128xf32>
    %492 = arith.addf %488, %491 : vector<8x128xf32>
    %493 = math.tanh %492 : vector<8x128xf32>
    %494 = arith.subf %465, %493 : vector<8x128xf32>
    %495 = arith.mulf %487, %494 : vector<8x128xf32>
    %496 = arith.addf %493, %495 : vector<8x128xf32>
    %c7_i32_137 = arith.constant 7 : i32
    %c8_i32_138 = arith.constant 8 : i32
    %497 = arith.muli %c7_i32_137, %c8_i32_138 : i32
    %498 = tpu.assume_multiple %497, 8 : i32
    %499 = arith.index_cast %498 : i32 to index
    %c0_139 = arith.constant 0 : index
    %500 = vector.load %arg14[%499, %c0_139] : memref<64x384xf32, #tpu.memory_space<vmem>>, vector<8x384xf32>
    %c0_140 = arith.constant 0 : index
    %c0_141 = arith.constant 0 : index
    %501 = vector.load %arg6[%c0_140, %c0_141] : memref<128x384xf32, #tpu.memory_space<vmem>>, vector<128x384xf32>
    %cst_142 = arith.constant dense<0.000000e+00> : vector<8x384xf32>
    %502 = tpu.matmul %496, %501, %cst_142 {dimension_numbers = #tpu.dot_dimension_numbers<[1], [0], [0], [1], [0, 0, 1, 1], [], []>} : vector<8x128xf32>, vector<128x384xf32>, vector<8x384xf32> -> vector<8x384xf32>
    %503 = vector.extract_strided_slice %500 {offsets = [0, 0], sizes = [8, 128], strides = [1, 1]} : vector<8x384xf32> to vector<8x128xf32>
    %504 = vector.extract_strided_slice %502 {offsets = [0, 0], sizes = [8, 128], strides = [1, 1]} : vector<8x384xf32> to vector<8x128xf32>
    %505 = arith.addf %503, %504 : vector<8x128xf32>
    %506 = arith.negf %505 : vector<8x128xf32>
    %507 = math.exp %506 : vector<8x128xf32>
    %cst_143 = arith.constant 1.000000e+00 : f32
    %508 = vector.broadcast %cst_143 : f32 to vector<8x128xf32>
    %509 = arith.addf %508, %507 : vector<8x128xf32>
    %510 = arith.divf %508, %509 : vector<8x128xf32>
    %511 = vector.extract_strided_slice %500 {offsets = [0, 128], sizes = [8, 128], strides = [1, 1]} : vector<8x384xf32> to vector<8x128xf32>
    %512 = vector.extract_strided_slice %502 {offsets = [0, 128], sizes = [8, 128], strides = [1, 1]} : vector<8x384xf32> to vector<8x128xf32>
    %513 = arith.addf %511, %512 : vector<8x128xf32>
    %514 = arith.negf %513 : vector<8x128xf32>
    %515 = math.exp %514 : vector<8x128xf32>
    %cst_144 = arith.constant 1.000000e+00 : f32
    %516 = vector.broadcast %cst_144 : f32 to vector<8x128xf32>
    %517 = arith.addf %516, %515 : vector<8x128xf32>
    %518 = arith.divf %516, %517 : vector<8x128xf32>
    %519 = vector.extract_strided_slice %500 {offsets = [0, 256], sizes = [8, 128], strides = [1, 1]} : vector<8x384xf32> to vector<8x128xf32>
    %520 = vector.extract_strided_slice %502 {offsets = [0, 256], sizes = [8, 128], strides = [1, 1]} : vector<8x384xf32> to vector<8x128xf32>
    %521 = arith.addf %520, %278 : vector<8x128xf32>
    %522 = arith.mulf %510, %521 : vector<8x128xf32>
    %523 = arith.addf %519, %522 : vector<8x128xf32>
    %524 = math.tanh %523 : vector<8x128xf32>
    %525 = arith.subf %496, %524 : vector<8x128xf32>
    %526 = arith.mulf %518, %525 : vector<8x128xf32>
    %527 = arith.addf %524, %526 : vector<8x128xf32>
    %c8_i32_145 = arith.constant 8 : i32
    %c0_146 = arith.constant 0 : index
    %c0_147 = arith.constant 0 : index
    %528 = vector.load %arg13[%c0_146, %c0_147] : memref<8x128xf32, #tpu.memory_space<vmem>>, vector<8x128xf32>
    tpu.vector_store %arg13[%c0_146, %c0_147], %527 {strides = array<i32>} : memref<8x128xf32, #tpu.memory_space<vmem>>, vector<8x128xf32>,
    %c0_148 = arith.constant 0 : index
    %c0_149 = arith.constant 0 : index
    %529 = vector.load %arg9[%c0_148, %c0_149] : memref<128x128xf32, #tpu.memory_space<vmem>>, vector<128x128xf32>
    %cst_150 = arith.constant dense<0.000000e+00> : vector<8x128xf32>
    %530 = tpu.matmul %527, %529, %cst_150 {dimension_numbers = #tpu.dot_dimension_numbers<[1], [0], [0], [1], [0, 0, 1, 1], [], []>} : vector<8x128xf32>, vector<128x128xf32>, vector<8x128xf32> -> vector<8x128xf32>
    %c0_151 = arith.constant 0 : index
    %c0_152 = arith.constant 0 : index
    %531 = vector.load %arg10[%c0_151, %c0_152] : memref<1x128xf32, #tpu.memory_space<vmem>>, vector<1x128xf32>
    %532 = vector.broadcast %531 : vector<1x128xf32> to vector<8x128xf32>
    %533 = arith.addf %530, %532 : vector<8x128xf32>
    %534 = math.tanh %533 : vector<8x128xf32>
    %c0_153 = arith.constant 0 : index
    %c0_154 = arith.constant 0 : index
    %535 = vector.load %arg11[%c0_153, %c0_154] : memref<8x128xf32, #tpu.memory_space<vmem>>, vector<8x128xf32>
    tpu.vector_store %arg11[%c0_153, %c0_154], %534 {strides = array<i32>} : memref<8x128xf32, #tpu.memory_space<vmem>>, vector<8x128xf32>,
    return
  }
}

</mosaic_0001>

<bundles_post_ra>
// kernel: mul.8
= control target key start
LH: loop header
LB: loop body
LE: loop exit
PB: predicated region body
PF: predicated region fallthrough
CT: control target
= control target key end

     0   :  { %s69_s10 = smov 56   ;;  %s70_s11 = smov 40   ;;  %vm3_vm0 = vcmask 64512   ;;  %vm9_vm1 = vcmask 523712   ;;  %vm15_vm2 = vcmask 458112   ;;  %vm21_vm3 = vcmask 392512   ;;  %s113_s0 = inlined_call_operand.vmem [shape: f32[8,8,1], index: 0, kind: input, shape index: {}]   ;;  %s114_s1 = inlined_call_operand.vmem [shape: f32[64], index: 1, kind: output, shape index: {}]  }
   0x1   :  { %v55_v0 = vld [vmem:[%s113_s0 + $0x7] sm:$0x1]   ;;  %v57_v1 = vld [vmem:[%s113_s0 + $0x5] sm:$0x1]   ;;  %v56_v2 = vld [vmem:[%s113_s0 + $0x6] sm:$0x1]  }
   0x2   :  { %7 = vrot.lane.b32.xlu0 %v55_v0, %s69_s10  ;;  %19 = vrot.lane.b32.xlu1 %v57_v1, %s70_s11  ;;  %v58_v3 = vld [vmem:[%s113_s0 + $0x4] sm:$0x1]   ;;  %v2_v4 = vld [vmem:[%s113_s0] sm:$0x1]   ;;  %s71_s18 = smov 48   ;;  %s72_s19 = smov 32  }
   0x3   :  { %4 = vst.msk [vmem:[#allocation0] sm:$0x1] %vm3_vm0, %v2_v4   ;;  %v59_v5 = vld [vmem:[%s113_s0 + $0x3] sm:$0x1]   ;;  %v60_v6 = vld [vmem:[%s113_s0 + $0x2] sm:$0x1]  }
   0x4   :  { %s73_s24 = smov 24   ;;  %s74_s25 = smov 16   ;;  %v61_v7 = vld [vmem:[%s113_s0 + $0x1] sm:$0x1]   ;;  %vm27_vm4 = vcmask 326912   ;;  %vm33_vm5 = vcmask 261312  }
   0x5   :  { %s75_s0 = smov 8   ;;  %vm39_vm6 = vcmask 195712   ;;  %vm45_vm7 = vcmask 130112  }
   0x6   :  { %13 = vrot.lane.b32.xlu0 %v56_v2, %s71_s18  ;;  %25 = vrot.lane.b32.xlu1 %v58_v3, %s72_s19 }
   0xa   :  { %31 = vrot.lane.b32.xlu0 %v59_v5, %s73_s24  ;;  %37 = vrot.lane.b32.xlu1 %v60_v6, %s74_s25 }
   0xe   :  { %43 = vrot.lane.b32.xlu0 %v61_v7, %s75_s0 }
  0x74   :  { %v8_v8 = vpop.permute.xlu0 %7   ;;  %v20_v9 = vpop.permute.xlu1 %19  }
  0x75   :  { %10 = vst.msk [vmem:[#allocation0] sm:$0x1] %vm9_vm1, %v8_v8  }
  0x78   :  { %v14_v10 = vpop.permute.xlu0 %13   ;;  %v26_v11 = vpop.permute.xlu1 %25  }
  0x79   :  { %16 = vst.msk [vmem:[#allocation0] sm:$0x1] %vm15_vm2, %v14_v10  }
  0x7a   :  { %22 = vst.msk [vmem:[#allocation0] sm:$0x1] %vm21_vm3, %v20_v9  }
  0x7b   :  { %28 = vst.msk [vmem:[#allocation0] sm:$0x1] %vm27_vm4, %v26_v11  }
  0x7c   :  { %v32_v12 = vpop.permute.xlu0 %31   ;;  %v38_v13 = vpop.permute.xlu1 %37  }
  0x7d   :  { %34 = vst.msk [vmem:[#allocation0] sm:$0x1] %vm33_vm5, %v32_v12  }
  0x7e   :  { %40 = vst.msk [vmem:[#allocation0] sm:$0x1] %vm39_vm6, %v38_v13  }
  0x80   :  { %v44_v14 = vpop.permute.xlu0 %43  }
  0x81   :  { %46 = vst.msk [vmem:[#allocation0] sm:$0x1] %vm45_vm7, %v44_v14  }
  0x88   :  { %v51_v15 = vld [vmem:[#allocation0] sm:$0x1] }
  0x89   :  { %54 = vst [vmem:[%s114_s1] sm:$0x1] %v51_v15 }

// kernel: gru_model_forward.1
= control target key start
LH: loop header
LB: loop body
LE: loop exit
PB: predicated region body
PF: predicated region fallthrough
CT: control target
= control target key end

     0   :  { %19 = vsyncpa [#allocation5], 0  ;;  %s6989_s0 = inlined_call_operand.vmem [shape: f32[64,384], index: 0, kind: input, shape index: {}]   ;;  %s6990_s1 = inlined_call_operand.hbm [shape: f32[128,384], index: 1, kind: input, shape index: {}]   ;;  %s6991_s2 = inlined_call_operand.vmem [shape: f32[1,128], index: 2, kind: input, shape index: {}]   ;;  %s6992_s3 = inlined_call_operand.vmem [shape: f32[8,128], index: 3, kind: input, shape index: {}]   ;;  %s6993_s4 = inlined_call_operand.hbm [shape: f32[128,384], index: 4, kind: input, shape index: {}]   ;;  %s6994_s5 = inlined_call_operand.vmem [shape: f32[1,384], index: 5, kind: input, shape index: {}]   ;;  %s6995_s6 = inlined_call_operand.hbm [shape: f32[128,384], index: 6, kind: input, shape index: {}]   ;;  %s6996_s7 = inlined_call_operand.vmem [shape: f32[1,128], index: 7, kind: input, shape index: {}]   ;;  %s6997_s8 = inlined_call_operand.vmem [shape: f32[8,128], index: 8, kind: input, shape index: {}]   ;;  %s6998_s9 = inlined_call_operand.vmem [shape: f32[128,128], index: 9, kind: input, shape index: {}]   ;;  %s6999_s10 = inlined_call_operand.vmem [shape: f32[1,128], index: 10, kind: input, shape index: {}]   ;;  %s7000_s11 = inlined_call_operand.hbm [shape: f32[8,128], index: 11, kind: output, shape index: {0}]   ;;  %s7001_s12 = inlined_call_operand.hbm [shape: f32[8,128], index: 12, kind: output, shape index: {1}]   ;;  %s7002_s13 = inlined_call_operand.hbm [shape: f32[8,128], index: 13, kind: output, shape index: {2}]  }
   0x1   :  { %20 = vsyncpa [#allocation8], 0 }
   0x2   :  { %21 = vsyncpa [#allocation6], 0 }
   0x3   :  { %22 = vsyncpa [#allocation12], 0  ;;  %s5054_s25 = smov [#allocation7]   ;;  %s5055_s27 = smov [#allocation4]  }
   0x4   :  { %s46_s26 = sshll.u32 %s5054_s25, 4  ;;  %s30_s28 = sshll.u32 %s5055_s27, 4  ;;  %s47_s26 = int_to_ptr.vmem [resolvable:$true] %s46_s26  ;;  %s31_s28 = int_to_ptr.vmem [resolvable:$true] %s30_s28 }
   0x5   :  { %s4934_s29 = scalar_lea.vmem %s47_s26, 6144  ;;  %p4939_p1 = scmp.lt.s32.totalorder %s47_s26, %s47_s26 }
   0x6   :  { %p4935_p0 = scmp.ne.s32.totalorder %s47_s26, %s4934_s29  ;;  %p4940_p2 = scmp.lt.s32.totalorder %s4934_s29, %s4934_s29 }
   0x8   :  { %p4941_p3 = por %p4940_p2, %p4939_p1 }
   0xa   :  { %p4942_p4 = pnand %p4941_p3, %p4935_p0 }
   0xc   :  { %4945 = shalt.err (!%p4942_p4)
}
   0xd   :  { %s5056_s30 = smov 384   ;;  %s5057_s14 = smov 24  }
   0xe   :  { %52 = dma.hbm_to_vmem [thread:$0]  %s6993_s4, 6144, %s47_s26, [#allocation8], %s5056_s30, %s5056_s30, %s5057_s14  }
   0xf   :  { %s4954_s17 = scalar_lea.vmem %s31_s28, 6144  ;;  %p4959_p6 = scmp.lt.s32.totalorder %s31_s28, %s31_s28 }
  0x10   :  { %p4955_p5 = scmp.ne.s32.totalorder %s31_s28, %s4954_s17  ;;  %p4960_p7 = scmp.lt.s32.totalorder %s4954_s17, %s4954_s17 }
  0x12   :  { %p4961_p8 = por %p4960_p7, %p4959_p6 }
  0x14   :  { %p4962_p9 = pnand %p4961_p8, %p4955_p5 }
  0x16   :  { %4965 = shalt.err (!%p4962_p9)
}
  0x17   :  { %36 = dma.hbm_to_vmem [thread:$0]  %s6990_s1, 6144, %s31_s28, [#allocation5], %s5056_s30, %s5056_s30, %s5057_s14  }
  0x18   :  { %s5058_s20 = smov [#allocation9]  }
  0x19   :  { %s60_s21 = sshll.u32 %s5058_s20, 4  ;;  %s61_s21 = int_to_ptr.vmem [resolvable:$true] %s60_s21 }
  0x1a   :  { %s4974_s22 = scalar_lea.vmem %s61_s21, 6144  ;;  %p4979_p11 = scmp.lt.s32.totalorder %s61_s21, %s61_s21 }
  0x1b   :  { %p4975_p10 = scmp.ne.s32.totalorder %s61_s21, %s4974_s22  ;;  %p4980_p12 = scmp.lt.s32.totalorder %s4974_s22, %s4974_s22 }
  0x1d   :  { %p4981_p13 = por %p4980_p12, %p4979_p11 }
  0x1f   :  { %p4982_p0 = pnand %p4981_p13, %p4975_p10 }
  0x21   :  { %4985 = shalt.err (!%p4982_p0)
}
  0x22   :  { %66 = dma.hbm_to_vmem [thread:$0]  %s6995_s6, 6144, %s61_s21, [#allocation8], %s5056_s30, %s5056_s30, %s5057_s14  }
  0x23   :  { %5046 = dma.done.wait [#allocation5], 6144  }
  0x24   :  { %5047 = vsyncadd [#allocation5], 4294961152 }
  0x25   :  { %5048 = dma.done.wait [#allocation8], 12288  }
  0x26   :  { %5049 = vsyncadd [#allocation8], 4294955008  ;;  %v7003_v0 = vmov 0.0   ;;  %vm5060_vm0 = vmmov 0   ;;  %v5147_v1 = vld [vmem:[#allocation4 + $0x170] sm:$0xff]  ;;  %v5149_v2 = vld [vmem:[#allocation4 + $0x168] sm:$0xff] }
  0x27   :  { %4065 = vmatprep.subr.mxu1 %v7003_v0  ;;  %210 = vmatprep.mubr.f32.mxu0 %v7003_v0  ;;  %v5151_v3 = vld [vmem:[#allocation4 + $0x158] sm:$0xff]  ;;  %v5154_v4 = vld [vmem:[#allocation4 + $0x150] sm:$0xff]  ;;  %v5157_v5 = vld [vmem:[#allocation4 + $0x140] sm:$0xff] }
  0x28   :  { %4097 = vmatprep.mubr.msk.f32.mxu1 %vm5060_vm0, %v7003_v0  ;;  %146 = vmatprep.subr.mxu0 %v5147_v1  ;;  %v5160_v6 = vld [vmem:[#allocation4 + $0x138] sm:$0xff]  ;;  %v5163_v7 = vld [vmem:[#allocation4 + $0x128] sm:$0xff]  ;;  %v5166_v8 = vld [vmem:[#allocation4 + $0x120] sm:$0xff] }
  0x29   :  { %147 = vmatpush1.msra.mxu0 %v5149_v2  ;;  %v5169_v9 = vld [vmem:[#allocation4 + $0x110] sm:$0xff]  ;;  %v5172_v10 = vld [vmem:[#allocation4 + $0x108] sm:$0xff]  ;;  %v5175_v11 = vld [vmem:[#allocation4 + $0xf8] sm:$0xff] }
  0x2a   :  { %148 = vmatprep.subr.mxu0 %v5151_v3  ;;  %v5178_v12 = vld [vmem:[#allocation4 + $0xf0] sm:$0xff]  ;;  %v5181_v13 = vld [vmem:[#allocation4 + $0xe0] sm:$0xff]  ;;  %v5183_v14 = vld [vmem:[#allocation4 + $0x178] sm:$0xff] }
  0x2b   :  { %149 = vmatpush1.msra.mxu0 %v5154_v4  ;;  %v5186_v15 = vld [vmem:[#allocation4 + $0xd8] sm:$0xff]  ;;  %4066 = vmatpush3.msra.mxu1 %v5183_v14  ;;  %v5189_v16 = vld [vmem:[#allocation4 + $0x160] sm:$0xff]  ;;  %v5192_v17 = vld [vmem:[#allocation4 + $0xc8] sm:$0xff] }
  0x2c   :  { %150 = vmatprep.subr.mxu0 %v5157_v5  ;;  %4067 = vmatprep.subr.mxu1 %v7003_v0  ;;  %v5195_v18 = vld [vmem:[#allocation4 + $0x148] sm:$0xff]  ;;  %v5198_v19 = vld [vmem:[#allocation4 + $0xc0] sm:$0xff]  ;;  %v5202_v20 = vld [vmem:[#allocation4 + $0xb0] sm:$0xff] }
  0x2d   :  { %151 = vmatpush1.msra.mxu0 %v5160_v6  ;;  %4068 = vmatpush3.msra.mxu1 %v5189_v16  ;;  %v5205_v21 = vld [vmem:[#allocation4 + $0x130] sm:$0xff]  ;;  %v5208_v22 = vld [vmem:[#allocation4 + $0xa8] sm:$0xff]  ;;  %v5212_v23 = vld [vmem:[#allocation4 + $0x98] sm:$0xff] }
  0x2e   :  { %152 = vmatprep.subr.mxu0 %v5163_v7  ;;  %4069 = vmatprep.subr.mxu1 %v7003_v0  ;;  %v5215_v24 = vld [vmem:[#allocation4 + $0x118] sm:$0xff]  ;;  %v5218_v25 = vld [vmem:[#allocation4 + $0x90] sm:$0xff]  ;;  %v5222_v26 = vld [vmem:[#allocation4 + $0x80] sm:$0xff] }
  0x2f   :  { %153 = vmatpush1.msra.mxu0 %v5166_v8  ;;  %4070 = vmatpush3.msra.mxu1 %v5195_v18  ;;  %v5225_v27 = vld [vmem:[#allocation4 + $0x100] sm:$0xff]  ;;  %v5228_v28 = vld [vmem:[#allocation4 + $0x78] sm:$0xff]  ;;  %v5232_v29 = vld [vmem:[#allocation4 + $0x68] sm:$0xff] }
  0x30   :  { %154 = vmatprep.subr.mxu0 %v5169_v9  ;;  %4071 = vmatprep.subr.mxu1 %v7003_v0  ;;  %v5235_v30 = vld [vmem:[#allocation4 + $0xe8] sm:$0xff]  ;;  %v5238_v31 = vld [vmem:[#allocation4 + $0x60] sm:$0xff]  ;;  %v5242_v32 = vld [vmem:[#allocation4 + $0x50] sm:$0xff] }
  0x31   :  { %155 = vmatpush1.msra.mxu0 %v5172_v10  ;;  %4072 = vmatpush3.msra.mxu1 %v5205_v21  ;;  %v5245_v33 = vld [vmem:[#allocation4 + $0xd0] sm:$0xff]  ;;  %v5248_v34 = vld [vmem:[#allocation4 + $0x48] sm:$0xff]  ;;  %v5252_v35 = vld [vmem:[#allocation4 + $0x38] sm:$0xff] }
  0x32   :  { %156 = vmatprep.subr.mxu0 %v5175_v11  ;;  %4073 = vmatprep.subr.mxu1 %v7003_v0  ;;  %v5255_v36 = vld [vmem:[#allocation4 + $0xb8] sm:$0xff]  ;;  %v5258_v37 = vld [vmem:[#allocation4 + $0x30] sm:$0xff]  ;;  %v5262_v38 = vld [vmem:[#allocation4 + $0x20] sm:$0xff] }
  0x33   :  { %157 = vmatpush1.msra.mxu0 %v5178_v12  ;;  %4074 = vmatpush3.msra.mxu1 %v5215_v24  ;;  %v5265_v39 = vld [vmem:[#allocation4 + $0xa0] sm:$0xff]  ;;  %v5268_v40 = vld [vmem:[#allocation4 + $0x18] sm:$0xff]  ;;  %v5272_v41 = vld [vmem:[#allocation4 + $0x8] sm:$0xff] }
  0x34   :  { %158 = vmatprep.subr.mxu0 %v5181_v13  ;;  %4075 = vmatprep.subr.mxu1 %v7003_v0  ;;  %v5275_v42 = vld [vmem:[#allocation4 + $0x88] sm:$0xff]  ;;  %v5278_v43 = vld [vmem:[#allocation4] sm:$0xff]  ;;  %v5288_v45 = vld [vmem:[#allocation4 + $0x70] sm:$0xff] }
  0x35   :  { %159 = vmatpush1.msra.mxu0 %v5186_v15  ;;  %4076 = vmatpush3.msra.mxu1 %v5225_v27  ;;  %v5285_v44 = vld [vmem:[%s6992_s3] sm:$0xff]  ;;  %v5294_v46 = vld [vmem:[#allocation4 + $0x58] sm:$0xff]  ;;  %v5305_v48 = vld [vmem:[#allocation4 + $0x28] sm:$0xff] }
  0x36   :  { %160 = vmatprep.subr.mxu0 %v5192_v17  ;;  %4077 = vmatprep.subr.mxu1 %v7003_v0  ;;  %v5299_v47 = vld [vmem:[#allocation4 + $0x40] sm:$0xff]  ;;  %v5311_v49 = vld [vmem:[#allocation4 + $0x10] sm:$0xff]  ;;  %v96_v54 = vld [vmem:[%s6989_s0 + $0x8] sm:$0xff] }
  0x37   :  { %161 = vmatpush1.msra.mxu0 %v5198_v19  ;;  %4078 = vmatpush3.msra.mxu1 %v5235_v30  ;;  %v95_v50 = vld [vmem:[%s6989_s0] sm:$0xff] }
  0x38   :  { %162 = vmatprep.subr.mxu0 %v5202_v20  ;;  %4079 = vmatprep.subr.mxu1 %v7003_v0  ;;  %v5391_v62 = vld [vmem:[%s6991_s2] ss:$0 sm:$0xff] }
  0x39   :  { %163 = vmatpush1.msra.mxu0 %v5208_v22  ;;  %4080 = vmatpush3.msra.mxu1 %v5245_v33 }
  0x3a   :  { %164 = vmatprep.subr.mxu0 %v5212_v23  ;;  %4081 = vmatprep.subr.mxu1 %v7003_v0 }
  0x3b   :  { %165 = vmatpush1.msra.mxu0 %v5218_v25  ;;  %4082 = vmatpush3.msra.mxu1 %v5255_v36 }
  0x3c   :  { %166 = vmatprep.subr.mxu0 %v5222_v26  ;;  %4083 = vmatprep.subr.mxu1 %v7003_v0 }
  0x3d   :  { %167 = vmatpush1.msra.mxu0 %v5228_v28  ;;  %4084 = vmatpush3.msra.mxu1 %v5265_v39 }
  0x3e   :  { %168 = vmatprep.subr.mxu0 %v5232_v29  ;;  %4085 = vmatprep.subr.mxu1 %v7003_v0 }
  0x3f   :  { %169 = vmatpush1.msra.mxu0 %v5238_v31  ;;  %4086 = vmatpush3.msra.mxu1 %v5275_v42 }
  0x40   :  { %170 = vmatprep.subr.mxu0 %v5242_v32  ;;  %4087 = vmatprep.subr.mxu1 %v7003_v0 }
  0x41   :  { %171 = vmatpush1.msra.mxu0 %v5248_v34  ;;  %4088 = vmatpush3.msra.mxu1 %v5288_v45 }
  0x42   :  { %172 = vmatprep.subr.mxu0 %v5252_v35  ;;  %4089 = vmatprep.subr.mxu1 %v7003_v0 }
  0x43   :  { %173 = vmatpush1.msra.mxu0 %v5258_v37  ;;  %4090 = vmatpush3.msra.mxu1 %v5294_v46 }
  0x44   :  { %174 = vmatprep.subr.mxu0 %v5262_v38  ;;  %4091 = vmatprep.subr.mxu1 %v7003_v0 }
  0x45   :  { %175 = vmatpush1.msra.mxu0 %v5268_v40  ;;  %4092 = vmatpush3.msra.mxu1 %v5299_v47 }
  0x46   :  { %176 = vmatprep.subr.mxu0 %v5272_v41  ;;  %4093 = vmatprep.subr.mxu1 %v7003_v0 }
  0x47   :  { %177 = vmatpush1.msra.mxu0 %v5278_v43  ;;  %4094 = vmatpush3.msra.mxu1 %v5305_v48 }
  0x48   :  { %211 = vmatmul.mubr.f32.vlgmr.msra.gmra.mxu0 %v5285_v44  ;;  %363 = vmatprep.subr.mxu0 %v5147_v1 }
  0x49   :  { %364 = vmatpush1.msra.mxu0 %v5149_v2  ;;  %4095 = vmatprep.subr.mxu1 %v7003_v0 }
  0x4a   :  { %365 = vmatprep.subr.mxu0 %v5151_v3  ;;  %4096 = vmatpush3.msra.mxu1 %v5311_v49 }
  0x4b   :  { %366 = vmatpush1.msra.mxu0 %v5154_v4  ;;  %4098 = vmatmul.mubr.f32.vlgmr.msra.gmra.mxu1 %v5285_v44 }
  0x4c   :  { %367 = vmatprep.subr.mxu0 %v5157_v5  ;;  %4100 = vmatprep.subr.mxu1 %v7003_v0 }
  0x4d   :  { %368 = vmatpush1.msra.mxu0 %v5160_v6  ;;  %4101 = vmatpush3.msra.mxu1 %v5183_v14 }
  0x4e   :  { %369 = vmatprep.subr.mxu0 %v5163_v7  ;;  %4102 = vmatprep.subr.mxu1 %v7003_v0 }
  0x4f   :  { %370 = vmatpush1.msra.mxu0 %v5166_v8  ;;  %4103 = vmatpush3.msra.mxu1 %v5189_v16 }
  0x50   :  { %371 = vmatprep.subr.mxu0 %v5169_v9  ;;  %4104 = vmatprep.subr.mxu1 %v7003_v0 }
  0x51   :  { %372 = vmatpush1.msra.mxu0 %v5172_v10  ;;  %4105 = vmatpush3.msra.mxu1 %v5195_v18 }
  0x52   :  { %373 = vmatprep.subr.mxu0 %v5175_v11  ;;  %4106 = vmatprep.subr.mxu1 %v7003_v0 }
  0x53   :  { %374 = vmatpush1.msra.mxu0 %v5178_v12  ;;  %4107 = vmatpush3.msra.mxu1 %v5205_v21 }
  0x54   :  { %375 = vmatprep.subr.mxu0 %v5181_v13  ;;  %4108 = vmatprep.subr.mxu1 %v7003_v0 }
  0x55   :  { %376 = vmatpush1.msra.mxu0 %v5186_v15  ;;  %4109 = vmatpush3.msra.mxu1 %v5215_v24 }
  0x56   :  { %377 = vmatprep.subr.mxu0 %v5192_v17  ;;  %4110 = vmatprep.subr.mxu1 %v7003_v0 }
  0x57   :  { %378 = vmatpush1.msra.mxu0 %v5198_v19  ;;  %4111 = vmatpush3.msra.mxu1 %v5225_v27 }
  0x58   :  { %379 = vmatprep.subr.mxu0 %v5202_v20  ;;  %4112 = vmatprep.subr.mxu1 %v7003_v0 }
  0x59   :  { %380 = vmatpush1.msra.mxu0 %v5208_v22  ;;  %4113 = vmatpush3.msra.mxu1 %v5235_v30 }
  0x5a   :  { %381 = vmatprep.subr.mxu0 %v5212_v23  ;;  %4114 = vmatprep.subr.mxu1 %v7003_v0 }
  0x5b   :  { %382 = vmatpush1.msra.mxu0 %v5218_v25  ;;  %4115 = vmatpush3.msra.mxu1 %v5245_v33 }
  0x5c   :  { %383 = vmatprep.subr.mxu0 %v5222_v26  ;;  %4116 = vmatprep.subr.mxu1 %v7003_v0 }
  0x5d   :  { %384 = vmatpush1.msra.mxu0 %v5228_v28  ;;  %4117 = vmatpush3.msra.mxu1 %v5255_v36 }
  0x5e   :  { %385 = vmatprep.subr.mxu0 %v5232_v29  ;;  %4118 = vmatprep.subr.mxu1 %v7003_v0 }
  0x5f   :  { %386 = vmatpush1.msra.mxu0 %v5238_v31  ;;  %4119 = vmatpush3.msra.mxu1 %v5265_v39 }
  0x60   :  { %387 = vmatprep.subr.mxu0 %v5242_v32  ;;  %4120 = vmatprep.subr.mxu1 %v7003_v0 }
  0x61   :  { %388 = vmatpush1.msra.mxu0 %v5248_v34  ;;  %4121 = vmatpush3.msra.mxu1 %v5275_v42 }
  0x62   :  { %389 = vmatprep.subr.mxu0 %v5252_v35  ;;  %4122 = vmatprep.subr.mxu1 %v7003_v0 }
  0x63   :  { %390 = vmatpush1.msra.mxu0 %v5258_v37  ;;  %4123 = vmatpush3.msra.mxu1 %v5288_v45 }
  0x64   :  { %391 = vmatprep.subr.mxu0 %v5262_v38  ;;  %4124 = vmatprep.subr.mxu1 %v7003_v0 }
  0x65   :  { %392 = vmatpush1.msra.mxu0 %v5268_v40  ;;  %4125 = vmatpush3.msra.mxu1 %v5294_v46 }
  0x66   :  { %393 = vmatprep.subr.mxu0 %v5272_v41  ;;  %427 = vmatprep.mubr.f32.mxu0 %v7003_v0 }
  0x67   :  { %394 = vmatpush1.msra.mxu0 %v5278_v43  ;;  %4126 = vmatprep.subr.mxu1 %v7003_v0 }
  0x68   :  { %4132 = vmatprep.mubr.msk.f32.mxu1 %vm5060_vm0, %v7003_v0  ;;  %4127 = vmatpush3.msra.mxu1 %v5299_v47 }
  0x69   :  { %581 = vmatprep.subr.mxu0 %v5147_v1  ;;  %4128 = vmatprep.subr.mxu1 %v7003_v0 }
  0x6a   :  { %4129 = vmatpush3.msra.mxu1 %v5305_v48 }
  0x6b   :  { %4130 = vmatprep.subr.mxu1 %v7003_v0 }
  0x6c   :  { %4131 = vmatpush3.msra.mxu1 %v5311_v49 }
  0x6d   :  { %4135 = vmatprep.subr.mxu1 %v7003_v0 }
 0x108   :  { %v212_v51 = vpop.f32.mrf.mxu0 }
 0x109   :  { %v287_v52 = vadd.f32 %v212_v51, %v95_v50 }
 0x10a   :  { %v214_v55 = vpop.f32.mrf.mxu0 }
 0x10b   :  { %v3697_v53 = vmul.f32 -1.442695, %v287_v52  ;;  %v283_v56 = vpop.f32.mrf.mxu1  ;;  %v294_v58 = vadd.f32 %v214_v55, %v96_v54  ;;  %v97_v52 = vld [vmem:[%s6989_s0 + $0x10] sm:$0xff] }
 0x10c   :  { %v301_v63 = vadd.f32 %v5391_v62, %v283_v56 }
 0x10d   :  { %4714 = vpow2.f32 %v3697_v53  ;;  %v4099_v57 = vpop.f32.mrf.mxu1  ;;  %v3698_v59 = vmul.f32 -1.442695, %v294_v58 }
 0x10f   :  { %4716 = vpow2.f32 %v3698_v59 }
 0x11a   :  { %v4715_v60 = vpop.eup %4714 }
 0x11b   :  { %v291_v61 = vadd.f32 1.0, %v4715_v60 }
 0x11c   :  { %v4717_v50 = vpop.eup %4716 }
 0x11d   :  { %4718 = vrcp.f32 %v291_v61  ;;  %v298_v54 = vadd.f32 1.0, %v4717_v50 }
 0x12a   :  { %v4719_v51 = vpop.eup %4718 }
 0x12b   :  { %v302_v53 = vmul.f32 %v4719_v51, %v301_v63 }
 0x12d   :  { %v303_v55 = vadd.f32 %v302_v53, %v97_v52  ;;  %v3700_v53 = vld [vmem:[%s6989_s0 + $0x20] sm:$0xff] }
 0x12f   :  { %4720 = vtanh.f32 %v303_v55 }
 0x130   :  { %4722 = vrcp.f32 %v298_v54 }
 0x13c   :  { %v4721_v57 = vpop.eup %4720 }
 0x13d   :  { %v305_v58 = vsub.f32 %v5285_v44, %v4721_v57  ;;  %v4723_v59 = vpop.eup %4722  ;;  %v3699_v44 = vld [vmem:[%s6989_s0 + $0x18] sm:$0xff] }
 0x13f   :  { %v306_v60 = vmul.f32 %v4723_v59, %v305_v58 }
 0x141   :  { %v5398_v61 = vadd.f32 %v4721_v57, %v306_v60 }
 0x143   :  { %7041 = vst [vmem:[#allocation18_spill] sm:$0xff] %v5398_v61  ;;  %428 = vmatmul.mubr.f32.vlgmr.msra.gmra.mxu0 %v5398_v61  ;;  %4133 = vmatmul.mubr.f32.vlgmr.msra.gmra.mxu1 %v5398_v61 }
 0x144   :  { %582 = vmatpush1.msra.mxu0 %v5149_v2  ;;  %4136 = vmatpush3.msra.mxu1 %v5183_v14 }
 0x145   :  { %583 = vmatprep.subr.mxu0 %v5151_v3  ;;  %4137 = vmatprep.subr.mxu1 %v7003_v0 }
 0x146   :  { %584 = vmatpush1.msra.mxu0 %v5154_v4  ;;  %4138 = vmatpush3.msra.mxu1 %v5189_v16 }
 0x147   :  { %585 = vmatprep.subr.mxu0 %v5157_v5  ;;  %4139 = vmatprep.subr.mxu1 %v7003_v0 }
 0x148   :  { %586 = vmatpush1.msra.mxu0 %v5160_v6  ;;  %4140 = vmatpush3.msra.mxu1 %v5195_v18 }
 0x149   :  { %587 = vmatprep.subr.mxu0 %v5163_v7  ;;  %4141 = vmatprep.subr.mxu1 %v7003_v0 }
 0x14a   :  { %588 = vmatpush1.msra.mxu0 %v5166_v8  ;;  %4142 = vmatpush3.msra.mxu1 %v5205_v21 }
 0x14b   :  { %589 = vmatprep.subr.mxu0 %v5169_v9  ;;  %4143 = vmatprep.subr.mxu1 %v7003_v0 }
 0x14c   :  { %590 = vmatpush1.msra.mxu0 %v5172_v10  ;;  %4144 = vmatpush3.msra.mxu1 %v5215_v24 }
 0x14d   :  { %591 = vmatprep.subr.mxu0 %v5175_v11  ;;  %4145 = vmatprep.subr.mxu1 %v7003_v0 }
 0x14e   :  { %592 = vmatpush1.msra.mxu0 %v5178_v12  ;;  %4146 = vmatpush3.msra.mxu1 %v5225_v27 }
 0x14f   :  { %593 = vmatprep.subr.mxu0 %v5181_v13  ;;  %4147 = vmatprep.subr.mxu1 %v7003_v0 }
 0x150   :  { %594 = vmatpush1.msra.mxu0 %v5186_v15  ;;  %4148 = vmatpush3.msra.mxu1 %v5235_v30 }
 0x151   :  { %595 = vmatprep.subr.mxu0 %v5192_v17  ;;  %4149 = vmatprep.subr.mxu1 %v7003_v0 }
 0x152   :  { %596 = vmatpush1.msra.mxu0 %v5198_v19  ;;  %4150 = vmatpush3.msra.mxu1 %v5245_v33 }
 0x153   :  { %597 = vmatprep.subr.mxu0 %v5202_v20  ;;  %4151 = vmatprep.subr.mxu1 %v7003_v0 }
 0x154   :  { %598 = vmatpush1.msra.mxu0 %v5208_v22  ;;  %4152 = vmatpush3.msra.mxu1 %v5255_v36 }
 0x155   :  { %599 = vmatprep.subr.mxu0 %v5212_v23  ;;  %4153 = vmatprep.subr.mxu1 %v7003_v0 }
 0x156   :  { %600 = vmatpush1.msra.mxu0 %v5218_v25  ;;  %4154 = vmatpush3.msra.mxu1 %v5265_v39 }
 0x157   :  { %601 = vmatprep.subr.mxu0 %v5222_v26  ;;  %4155 = vmatprep.subr.mxu1 %v7003_v0 }
 0x158   :  { %602 = vmatpush1.msra.mxu0 %v5228_v28  ;;  %4156 = vmatpush3.msra.mxu1 %v5275_v42 }
 0x159   :  { %603 = vmatprep.subr.mxu0 %v5232_v29  ;;  %4157 = vmatprep.subr.mxu1 %v7003_v0 }
 0x15a   :  { %604 = vmatpush1.msra.mxu0 %v5238_v31  ;;  %4158 = vmatpush3.msra.mxu1 %v5288_v45 }
 0x15b   :  { %605 = vmatprep.subr.mxu0 %v5242_v32  ;;  %4159 = vmatprep.subr.mxu1 %v7003_v0 }
 0x15c   :  { %606 = vmatpush1.msra.mxu0 %v5248_v34  ;;  %4160 = vmatpush3.msra.mxu1 %v5294_v46 }
 0x15d   :  { %607 = vmatprep.subr.mxu0 %v5252_v35  ;;  %4161 = vmatprep.subr.mxu1 %v7003_v0 }
 0x15e   :  { %608 = vmatpush1.msra.mxu0 %v5258_v37  ;;  %4162 = vmatpush3.msra.mxu1 %v5299_v47 }
 0x15f   :  { %609 = vmatprep.subr.mxu0 %v5262_v38  ;;  %4163 = vmatprep.subr.mxu1 %v7003_v0 }
 0x160   :  { %610 = vmatpush1.msra.mxu0 %v5268_v40  ;;  %4164 = vmatpush3.msra.mxu1 %v5305_v48 }
 0x161   :  { %611 = vmatprep.subr.mxu0 %v5272_v41  ;;  %4165 = vmatprep.subr.mxu1 %v7003_v0 }
 0x162   :  { %612 = vmatpush1.msra.mxu0 %v5278_v43  ;;  %645 = vmatprep.mubr.f32.mxu0 %v7003_v0 }
 0x163   :  { %4166 = vmatpush3.msra.mxu1 %v5311_v49  ;;  %4167 = vmatprep.mubr.msk.f32.mxu1 %vm5060_vm0, %v7003_v0 }
 0x164   :  { %799 = vmatprep.subr.mxu0 %v5147_v1  ;;  %4170 = vmatprep.subr.mxu1 %v7003_v0 }
 0x203   :  { %v429_v56 = vpop.f32.mrf.mxu0  ;;  %v500_v63 = vpop.f32.mrf.mxu1 }
 0x204   :  { %v504_v50 = vadd.f32 %v3699_v44, %v429_v56  ;;  %v518_v60 = vadd.f32 %v5391_v62, %v500_v63  ;;  %v3701_v44 = vld [vmem:[%s6989_s0 + $0x28] sm:$0xff]  ;;  %v5645_v63 = vld [vmem:[#allocation4 + $0x98] sm:$0xff] }
 0x205   :  { %v4134_v51 = vpop.f32.mrf.mxu1  ;;  %v431_v54 = vpop.f32.mrf.mxu0 }
 0x206   :  { %v3702_v52 = vmul.f32 -1.442695, %v504_v50  ;;  %v511_v55 = vadd.f32 %v3700_v53, %v431_v54 }
 0x208   :  { %4724 = vpow2.f32 %v3702_v52  ;;  %v3703_v57 = vmul.f32 -1.442695, %v511_v55 }
 0x20a   :  { %4726 = vpow2.f32 %v3703_v57 }
 0x215   :  { %v4725_v1 = vpop.eup %4724 }
 0x216   :  { %v508_v58 = vadd.f32 1.0, %v4725_v1  ;;  %v5649_v1 = vld [vmem:[#allocation4 + $0x90] sm:$0xff] }
 0x217   :  { %v4727_v59 = vpop.eup %4726 }
 0x218   :  { %4728 = vrcp.f32 %v508_v58  ;;  %v515_v51 = vadd.f32 1.0, %v4727_v59  ;;  %v5651_v58 = vld [vmem:[#allocation4 + $0xa0] sm:$0xff] }
 0x219   :  { %v5655_v59 = vld [vmem:[#allocation4 + $0x80] sm:$0xff] }
 0x225   :  { %v4729_v0 = vpop.eup %4728 }
 0x226   :  { %v519_v56 = vmul.f32 %v4729_v0, %v518_v60  ;;  %v7043_v0 = vmov 0.0   ;;  %v5659_v60 = vld [vmem:[#allocation4 + $0x78] sm:$0xff] }
 0x228   :  { %v520_v50 = vadd.f32 %v3701_v44, %v519_v56  ;;  %v5661_v44 = vld [vmem:[#allocation4 + $0x88] sm:$0xff] }
 0x229   :  { %v5665_v56 = vld [vmem:[#allocation4 + $0x68] sm:$0xff] }
 0x22a   :  { %4730 = vtanh.f32 %v520_v50  ;;  %v5669_v50 = vld [vmem:[#allocation4 + $0x60] sm:$0xff] }
 0x22b   :  { %4732 = vrcp.f32 %v515_v51  ;;  %v5671_v51 = vld [vmem:[#allocation4 + $0x70] sm:$0xff] }
 0x237   :  { %v4731_v52 = vpop.eup %4730 }
 0x238   :  { %v522_v53 = vsub.f32 %v5398_v61, %v4731_v52  ;;  %v4733_v54 = vpop.eup %4732 }
 0x23a   :  { %v523_v55 = vmul.f32 %v4733_v54, %v522_v53  ;;  %v5679_v53 = vld [vmem:[#allocation4 + $0x48] sm:$0xff]  ;;  %v5681_v54 = vld [vmem:[#allocation4 + $0x58] sm:$0xff] }
 0x23c   :  { %v5480_v57 = vadd.f32 %v4731_v52, %v523_v55  ;;  %v5675_v52 = vld [vmem:[#allocation4 + $0x50] sm:$0xff]  ;;  %v5685_v55 = vld [vmem:[#allocation4 + $0x38] sm:$0xff] }
 0x23e   :  { %7042 = vst [vmem:[#allocation19_spill] sm:$0xff] %v5480_v57  ;;  %646 = vmatmul.mubr.f32.vlgmr.msra.gmra.mxu0 %v5480_v57  ;;  %4168 = vmatmul.mubr.f32.vlgmr.msra.gmra.mxu1 %v5480_v57 }
 0x23f   :  { %800 = vmatpush1.msra.mxu0 %v5149_v2  ;;  %4171 = vmatpush3.msra.mxu1 %v5183_v14  ;;  %v3704_v2 = vld [vmem:[%s6989_s0 + $0x30] sm:$0xff] }
 0x240   :  { %801 = vmatprep.subr.mxu0 %v5151_v3  ;;  %4172 = vmatprep.subr.mxu1 %v7043_v0 }
 0x241   :  { %802 = vmatpush1.msra.mxu0 %v5154_v4  ;;  %4173 = vmatpush3.msra.mxu1 %v5189_v16 }
 0x242   :  { %803 = vmatprep.subr.mxu0 %v5157_v5  ;;  %4174 = vmatprep.subr.mxu1 %v7043_v0 }
 0x243   :  { %804 = vmatpush1.msra.mxu0 %v5160_v6  ;;  %4175 = vmatpush3.msra.mxu1 %v5195_v18 }
 0x244   :  { %805 = vmatprep.subr.mxu0 %v5163_v7  ;;  %4176 = vmatprep.subr.mxu1 %v7043_v0 }
 0x245   :  { %806 = vmatpush1.msra.mxu0 %v5166_v8  ;;  %4177 = vmatpush3.msra.mxu1 %v5205_v21  ;;  %v3705_v8 = vld [vmem:[%s6989_s0 + $0x38] sm:$0xff] }
 0x246   :  { %807 = vmatprep.subr.mxu0 %v5169_v9  ;;  %4178 = vmatprep.subr.mxu1 %v7043_v0 }
 0x247   :  { %808 = vmatpush1.msra.mxu0 %v5172_v10  ;;  %4179 = vmatpush3.msra.mxu1 %v5215_v24 }
 0x248   :  { %809 = vmatprep.subr.mxu0 %v5175_v11  ;;  %4180 = vmatprep.subr.mxu1 %v7043_v0 }
 0x249   :  { %810 = vmatpush1.msra.mxu0 %v5178_v12  ;;  %4181 = vmatpush3.msra.mxu1 %v5225_v27 }
 0x24a   :  { %811 = vmatprep.subr.mxu0 %v5181_v13  ;;  %4182 = vmatprep.subr.mxu1 %v7043_v0 }
 0x24b   :  { %812 = vmatpush1.msra.mxu0 %v5186_v15  ;;  %4183 = vmatpush3.msra.mxu1 %v5235_v30  ;;  %v5579_v30 = vld [vmem:[#allocation4 + $0x168] sm:$0xff] }
 0x24c   :  { %813 = vmatprep.subr.mxu0 %v5192_v17  ;;  %4184 = vmatprep.subr.mxu1 %v7043_v0 }
 0x24d   :  { %814 = vmatpush1.msra.mxu0 %v5198_v19  ;;  %4185 = vmatpush3.msra.mxu1 %v5245_v33  ;;  %v5597_v33 = vld [vmem:[#allocation4 + $0x120] sm:$0xff] }
 0x24e   :  { %815 = vmatprep.subr.mxu0 %v5202_v20  ;;  %4186 = vmatprep.subr.mxu1 %v7043_v0  ;;  %v3706_v20 = vld [vmem:[%s6989_s0 + $0x40] sm:$0xff] }
 0x24f   :  { %816 = vmatpush1.msra.mxu0 %v5208_v22  ;;  %4187 = vmatpush3.msra.mxu1 %v5255_v36  ;;  %v5605_v36 = vld [vmem:[#allocation4 + $0x118] sm:$0xff] }
 0x250   :  { %817 = vmatprep.subr.mxu0 %v5212_v23  ;;  %4188 = vmatprep.subr.mxu1 %v7043_v0 }
 0x251   :  { %818 = vmatpush1.msra.mxu0 %v5218_v25  ;;  %4189 = vmatpush3.msra.mxu1 %v5265_v39  ;;  %v5615_v39 = vld [vmem:[#allocation4 + $0x100] sm:$0xff] }
 0x252   :  { %819 = vmatprep.subr.mxu0 %v5222_v26  ;;  %4190 = vmatprep.subr.mxu1 %v7043_v0 }
 0x253   :  { %820 = vmatpush1.msra.mxu0 %v5228_v28  ;;  %4191 = vmatpush3.msra.mxu1 %v5275_v42  ;;  %v5625_v42 = vld [vmem:[#allocation4 + $0xe8] sm:$0xff] }
 0x254   :  { %821 = vmatprep.subr.mxu0 %v5232_v29  ;;  %4192 = vmatprep.subr.mxu1 %v7043_v0 }
 0x255   :  { %822 = vmatpush1.msra.mxu0 %v5238_v31  ;;  %4193 = vmatpush3.msra.mxu1 %v5288_v45  ;;  %v5582_v31 = vld [vmem:[#allocation4 + $0x158] sm:$0xff]  ;;  %v5631_v45 = vld [vmem:[#allocation4 + $0xc0] sm:$0xff] }
 0x256   :  { %823 = vmatprep.subr.mxu0 %v5242_v32  ;;  %4194 = vmatprep.subr.mxu1 %v7043_v0  ;;  %v5594_v32 = vld [vmem:[#allocation4 + $0x128] sm:$0xff] }
 0x257   :  { %824 = vmatpush1.msra.mxu0 %v5248_v34  ;;  %4195 = vmatpush3.msra.mxu1 %v5294_v46  ;;  %v5600_v34 = vld [vmem:[#allocation4 + $0x110] sm:$0xff] }
 0x258   :  { %825 = vmatprep.subr.mxu0 %v5252_v35  ;;  %4196 = vmatprep.subr.mxu1 %v7043_v0  ;;  %v5603_v35 = vld [vmem:[#allocation4 + $0x108] sm:$0xff]  ;;  %v5633_v46 = vld [vmem:[#allocation4 + $0xd0] sm:$0xff] }
 0x259   :  { %826 = vmatpush1.msra.mxu0 %v5258_v37  ;;  %4197 = vmatpush3.msra.mxu1 %v5299_v47  ;;  %v5609_v37 = vld [vmem:[#allocation4 + $0xf8] sm:$0xff]  ;;  %v5635_v47 = vld [vmem:[#allocation4 + $0xb0] sm:$0xff] }
 0x25a   :  { %827 = vmatprep.subr.mxu0 %v5262_v38  ;;  %4198 = vmatprep.subr.mxu1 %v7043_v0  ;;  %v5613_v38 = vld [vmem:[#allocation4 + $0xf0] sm:$0xff] }
 0x25b   :  { %828 = vmatpush1.msra.mxu0 %v5268_v40  ;;  %4199 = vmatpush3.msra.mxu1 %v5305_v48  ;;  %v5619_v40 = vld [vmem:[#allocation4 + $0xe0] sm:$0xff]  ;;  %v5639_v48 = vld [vmem:[#allocation4 + $0xa8] sm:$0xff] }
 0x25c   :  { %829 = vmatprep.subr.mxu0 %v5272_v41  ;;  %4200 = vmatprep.subr.mxu1 %v7043_v0  ;;  %v5623_v41 = vld [vmem:[#allocation4 + $0xd8] sm:$0xff] }
 0x25d   :  { %830 = vmatpush1.msra.mxu0 %v5278_v43  ;;  %863 = vmatprep.mubr.f32.mxu0 %v7043_v0  ;;  %v5627_v43 = vld [vmem:[#allocation4 + $0xc8] sm:$0xff] }
 0x25e   :  { %4201 = vmatpush3.msra.mxu1 %v5311_v49  ;;  %4202 = vmatprep.mubr.msk.f32.mxu1 %vm5060_vm0, %v7043_v0  ;;  %v5641_v49 = vld [vmem:[#allocation4 + $0xb8] sm:$0xff] }
 0x25f   :  { %4205 = vmatprep.subr.mxu1 %v7043_v0 }
 0x2fe   :  { %v647_v3 = vpop.f32.mrf.mxu0  ;;  %v718_v4 = vpop.f32.mrf.mxu1 }
 0x2ff   :  { %v722_v5 = vadd.f32 %v3704_v2, %v647_v3  ;;  %v736_v17 = vadd.f32 %v5391_v62, %v718_v4  ;;  %v5689_v2 = vld [vmem:[#allocation4 + $0x30] sm:$0xff]  ;;  %v5691_v3 = vld [vmem:[#allocation4 + $0x40] sm:$0xff] }
 0x300   :  { %v4169_v6 = vpop.f32.mrf.mxu1  ;;  %v649_v9 = vpop.f32.mrf.mxu0  ;;  %v5695_v4 = vld [vmem:[#allocation4 + $0x20] sm:$0xff] }
 0x301   :  { %v3707_v7 = vmul.f32 -1.442695, %v722_v5  ;;  %v729_v10 = vadd.f32 %v3705_v8, %v649_v9  ;;  %v5699_v5 = vld [vmem:[#allocation4 + $0x18] sm:$0xff]  ;;  %v5701_v6 = vld [vmem:[#allocation4 + $0x28] sm:$0xff]  ;;  %v5709_v8 = vld [vmem:[#allocation4] sm:$0xff] }
 0x302   :  { %v5711_v9 = vld [vmem:[#allocation4 + $0x10] sm:$0xff] }
 0x303   :  { %4734 = vpow2.f32 %v3707_v7  ;;  %v3708_v11 = vmul.f32 -1.442695, %v729_v10  ;;  %v5705_v7 = vld [vmem:[#allocation4 + $0x8] sm:$0xff]  ;;  %7046 = vst [vmem:[#allocation22_spill] sm:$0xff] %v5711_v9 }
 0x304   :  { %v3709_v10 = vld [vmem:[%s6989_s0 + $0x48] sm:$0xff] }
 0x305   :  { %4736 = vpow2.f32 %v3708_v11 }
 0x310   :  { %v4735_v12 = vpop.eup %4734 }
 0x311   :  { %v726_v13 = vadd.f32 1.0, %v4735_v12 }
 0x312   :  { %v4737_v15 = vpop.eup %4736 }
 0x313   :  { %4738 = vrcp.f32 %v726_v13  ;;  %v733_v24 = vadd.f32 1.0, %v4737_v15 }
 0x320   :  { %v4739_v19 = vpop.eup %4738 }
 0x321   :  { %v737_v22 = vmul.f32 %v4739_v19, %v736_v17  ;;  %v3710_v19 = vld [vmem:[%s6989_s0 + $0x50] sm:$0xff] }
 0x323   :  { %v738_v23 = vadd.f32 %v3706_v20, %v737_v22 }
 0x325   :  { %4740 = vtanh.f32 %v738_v23 }
 0x326   :  { %4742 = vrcp.f32 %v733_v24 }
 0x332   :  { %v4741_v25 = vpop.eup %4740 }
 0x333   :  { %v740_v26 = vsub.f32 %v5480_v57, %v4741_v25  ;;  %v4743_v27 = vpop.eup %4742 }
 0x335   :  { %v741_v28 = vmul.f32 %v4743_v27, %v740_v26 }
 0x337   :  { %v5561_v29 = vadd.f32 %v4741_v25, %v741_v28 }
 0x339   :  { %7044 = vst [vmem:[#allocation20_spill] sm:$0xff] %v5561_v29  ;;  %864 = vmatmul.mubr.f32.vlgmr.msra.gmra.mxu0 %v5561_v29  ;;  %4203 = vmatmul.mubr.f32.vlgmr.msra.gmra.mxu1 %v5561_v29 }
 0x33a   :  { %4206 = vmatpush3.msra.mxu1 %v5183_v14  ;;  %1081 = vmatprep.mubr.f32.mxu0 %v7043_v0  ;;  %v5576_v14 = vld [vmem:[#allocation4 + $0x170] sm:$0xff] }
 0x33b   :  { %4207 = vmatprep.subr.mxu1 %v7043_v0  ;;  %4237 = vmatprep.mubr.msk.f32.mxu1 %vm5060_vm0, %v7043_v0  ;;  %7045 = vst [vmem:[#allocation21_spill] sm:$0xff] %v5576_v14 }
 0x33c   :  { %4208 = vmatpush3.msra.mxu1 %v5189_v16  ;;  %1017 = vmatprep.subr.mxu0 %v5576_v14  ;;  %v5585_v16 = vld [vmem:[#allocation4 + $0x150] sm:$0xff] }
 0x33d   :  { %4209 = vmatprep.subr.mxu1 %v7043_v0  ;;  %1018 = vmatpush1.msra.mxu0 %v5579_v30 }
 0x33e   :  { %4210 = vmatpush3.msra.mxu1 %v5195_v18  ;;  %1019 = vmatprep.subr.mxu0 %v5582_v31  ;;  %v5588_v18 = vld [vmem:[#allocation4 + $0x140] sm:$0xff] }
 0x33f   :  { %4211 = vmatprep.subr.mxu1 %v7043_v0  ;;  %1020 = vmatpush1.msra.mxu0 %v5585_v16 }
 0x340   :  { %4212 = vmatpush3.msra.mxu1 %v5205_v21  ;;  %1021 = vmatprep.subr.mxu0 %v5588_v18  ;;  %v5591_v21 = vld [vmem:[#allocation4 + $0x138] sm:$0xff] }
 0x341   :  { %4213 = vmatprep.subr.mxu1 %v7043_v0  ;;  %1022 = vmatpush1.msra.mxu0 %v5591_v21 }
 0x342   :  { %1023 = vmatprep.subr.mxu0 %v5594_v32  ;;  %4214 = vmatpush3.msra.mxu1 %v5605_v36 }
 0x343   :  { %1024 = vmatpush1.msra.mxu0 %v5597_v33  ;;  %4215 = vmatprep.subr.mxu1 %v7043_v0 }
 0x344   :  { %1025 = vmatprep.subr.mxu0 %v5600_v34  ;;  %4216 = vmatpush3.msra.mxu1 %v5615_v39 }
 0x345   :  { %1026 = vmatpush1.msra.mxu0 %v5603_v35  ;;  %4217 = vmatprep.subr.mxu1 %v7043_v0 }
 0x346   :  { %1027 = vmatprep.subr.mxu0 %v5609_v37  ;;  %4218 = vmatpush3.msra.mxu1 %v5625_v42 }
 0x347   :  { %1028 = vmatpush1.msra.mxu0 %v5613_v38  ;;  %4219 = vmatprep.subr.mxu1 %v7043_v0 }
 0x348   :  { %1029 = vmatprep.subr.mxu0 %v5619_v40  ;;  %4220 = vmatpush3.msra.mxu1 %v5633_v46 }
 0x349   :  { %1030 = vmatpush1.msra.mxu0 %v5623_v41  ;;  %4221 = vmatprep.subr.mxu1 %v7043_v0 }
 0x34a   :  { %1031 = vmatprep.subr.mxu0 %v5627_v43  ;;  %4222 = vmatpush3.msra.mxu1 %v5641_v49 }
 0x34b   :  { %1032 = vmatpush1.msra.mxu0 %v5631_v45  ;;  %4223 = vmatprep.subr.mxu1 %v7043_v0 }
 0x34c   :  { %1033 = vmatprep.subr.mxu0 %v5635_v47  ;;  %4224 = vmatpush3.msra.mxu1 %v5651_v58 }
 0x34d   :  { %1034 = vmatpush1.msra.mxu0 %v5639_v48  ;;  %4225 = vmatprep.subr.mxu1 %v7043_v0 }
 0x34e   :  { %1035 = vmatprep.subr.mxu0 %v5645_v63  ;;  %4226 = vmatpush3.msra.mxu1 %v5661_v44 }
 0x34f   :  { %1036 = vmatpush1.msra.mxu0 %v5649_v1  ;;  %4227 = vmatprep.subr.mxu1 %v7043_v0 }
 0x350   :  { %1037 = vmatprep.subr.mxu0 %v5655_v59  ;;  %4228 = vmatpush3.msra.mxu1 %v5671_v51 }
 0x351   :  { %1038 = vmatpush1.msra.mxu0 %v5659_v60  ;;  %4229 = vmatprep.subr.mxu1 %v7043_v0 }
 0x352   :  { %1039 = vmatprep.subr.mxu0 %v5665_v56  ;;  %4230 = vmatpush3.msra.mxu1 %v5681_v54 }
 0x353   :  { %1040 = vmatpush1.msra.mxu0 %v5669_v50  ;;  %4231 = vmatprep.subr.mxu1 %v7043_v0 }
 0x354   :  { %1041 = vmatprep.subr.mxu0 %v5675_v52  ;;  %4232 = vmatpush3.msra.mxu1 %v5691_v3 }
 0x355   :  { %1042 = vmatpush1.msra.mxu0 %v5679_v53  ;;  %4233 = vmatprep.subr.mxu1 %v7043_v0 }
 0x356   :  { %1043 = vmatprep.subr.mxu0 %v5685_v55  ;;  %4234 = vmatpush3.msra.mxu1 %v5701_v6 }
 0x357   :  { %1044 = vmatpush1.msra.mxu0 %v5689_v2  ;;  %4235 = vmatprep.subr.mxu1 %v7043_v0 }
 0x358   :  { %1045 = vmatprep.subr.mxu0 %v5695_v4  ;;  %4236 = vmatpush3.msra.mxu1 %v5711_v9 }
 0x359   :  { %1046 = vmatpush1.msra.mxu0 %v5699_v5  ;;  %4240 = vmatprep.subr.mxu1 %v7043_v0 }
 0x35a   :  { %1047 = vmatprep.subr.mxu0 %v5705_v7 }
 0x35b   :  { %1048 = vmatpush1.msra.mxu0 %v5709_v8 }
 0x35c   :  { %1235 = vmatprep.subr.mxu0 %v5576_v14 }
 0x3f9   :  { %v865_v11 = vpop.f32.mrf.mxu0  ;;  %v936_v12 = vpop.f32.mrf.mxu1 }
 0x3fa   :  { %v940_v13 = vadd.f32 %v3709_v10, %v865_v11  ;;  %v954_v27 = vadd.f32 %v5391_v62, %v936_v12  ;;  %v3711_v10 = vld [vmem:[%s6989_s0 + $0x58] sm:$0xff] }
 0x3fb   :  { %v4204_v15 = vpop.f32.mrf.mxu1  ;;  %v867_v20 = vpop.f32.mrf.mxu0  ;;  %v5771_v12 = vld [vmem:[#allocation4 + $0x178] sm:$0xff] }
 0x3fc   :  { %v3712_v17 = vmul.f32 -1.442695, %v940_v13  ;;  %v947_v22 = vadd.f32 %v3710_v19, %v867_v20 }
 0x3fe   :  { %4744 = vpow2.f32 %v3712_v17  ;;  %v3713_v23 = vmul.f32 -1.442695, %v947_v22 }
 0x400   :  { %4746 = vpow2.f32 %v3713_v23 }
 0x40b   :  { %v4745_v24 = vpop.eup %4744 }
 0x40c   :  { %v944_v25 = vadd.f32 1.0, %v4745_v24  ;;  %v5775_v24 = vld [vmem:[#allocation4 + $0x160] sm:$0xff] }
 0x40d   :  { %v4747_v26 = vpop.eup %4746 }
 0x40e   :  { %4748 = vrcp.f32 %v944_v25  ;;  %v951_v15 = vadd.f32 1.0, %v4747_v26  ;;  %v5779_v25 = vld [vmem:[#allocation4 + $0x148] sm:$0xff]  ;;  %v5783_v26 = vld [vmem:[#allocation4 + $0x130] sm:$0xff] }
 0x41b   :  { %v4749_v28 = vpop.eup %4748 }
 0x41c   :  { %v955_v11 = vmul.f32 %v4749_v28, %v954_v27  ;;  %v3714_v27 = vld [vmem:[%s6989_s0 + $0x60] sm:$0xff] }
 0x41e   :  { %v956_v13 = vadd.f32 %v3711_v10, %v955_v11 }
 0x420   :  { %4750 = vtanh.f32 %v956_v13 }
 0x421   :  { %4752 = vrcp.f32 %v951_v15 }
 0x42d   :  { %v4751_v17 = vpop.eup %4750 }
 0x42e   :  { %v958_v19 = vsub.f32 %v5561_v29, %v4751_v17  ;;  %v4753_v20 = vpop.eup %4752 }
 0x430   :  { %v959_v22 = vmul.f32 %v4753_v20, %v958_v19 }
 0x432   :  { %v5732_v23 = vadd.f32 %v4751_v17, %v959_v22  ;;  %v3715_v17 = vld [vmem:[%s6989_s0 + $0x68] sm:$0xff] }
 0x434   :  { %1082 = vmatmul.mubr.f32.vlgmr.msra.gmra.mxu0 %v5732_v23  ;;  %4238 = vmatmul.mubr.f32.vlgmr.msra.gmra.mxu1 %v5732_v23 }
 0x435   :  { %1236 = vmatpush1.msra.mxu0 %v5579_v30  ;;  %1299 = vmatprep.mubr.f32.mxu0 %v7043_v0 }
 0x436   :  { %1237 = vmatprep.subr.mxu0 %v5582_v31  ;;  %4272 = vmatprep.mubr.msk.f32.mxu1 %vm5060_vm0, %v7043_v0 }
 0x437   :  { %1238 = vmatpush1.msra.mxu0 %v5585_v16  ;;  %4241 = vmatpush3.msra.mxu1 %v5771_v12 }
 0x438   :  { %1239 = vmatprep.subr.mxu0 %v5588_v18  ;;  %4242 = vmatprep.subr.mxu1 %v7043_v0 }
 0x439   :  { %1240 = vmatpush1.msra.mxu0 %v5591_v21  ;;  %4243 = vmatpush3.msra.mxu1 %v5775_v24 }
 0x43a   :  { %1241 = vmatprep.subr.mxu0 %v5594_v32  ;;  %4244 = vmatprep.subr.mxu1 %v7043_v0 }
 0x43b   :  { %1242 = vmatpush1.msra.mxu0 %v5597_v33  ;;  %4245 = vmatpush3.msra.mxu1 %v5779_v25 }
 0x43c   :  { %1243 = vmatprep.subr.mxu0 %v5600_v34  ;;  %4246 = vmatprep.subr.mxu1 %v7043_v0 }
 0x43d   :  { %1244 = vmatpush1.msra.mxu0 %v5603_v35  ;;  %4247 = vmatpush3.msra.mxu1 %v5783_v26 }
 0x43e   :  { %1245 = vmatprep.subr.mxu0 %v5609_v37  ;;  %4248 = vmatprep.subr.mxu1 %v7043_v0 }
 0x43f   :  { %1246 = vmatpush1.msra.mxu0 %v5613_v38  ;;  %4249 = vmatpush3.msra.mxu1 %v5605_v36 }
 0x440   :  { %1247 = vmatprep.subr.mxu0 %v5619_v40  ;;  %4250 = vmatprep.subr.mxu1 %v7043_v0 }
 0x441   :  { %1248 = vmatpush1.msra.mxu0 %v5623_v41  ;;  %4251 = vmatpush3.msra.mxu1 %v5615_v39 }
 0x442   :  { %1249 = vmatprep.subr.mxu0 %v5627_v43  ;;  %4252 = vmatprep.subr.mxu1 %v7043_v0 }
 0x443   :  { %1250 = vmatpush1.msra.mxu0 %v5631_v45  ;;  %4253 = vmatpush3.msra.mxu1 %v5625_v42 }
 0x444   :  { %1251 = vmatprep.subr.mxu0 %v5635_v47  ;;  %4254 = vmatprep.subr.mxu1 %v7043_v0 }
 0x445   :  { %1252 = vmatpush1.msra.mxu0 %v5639_v48  ;;  %4255 = vmatpush3.msra.mxu1 %v5633_v46 }
 0x446   :  { %1253 = vmatprep.subr.mxu0 %v5645_v63  ;;  %4256 = vmatprep.subr.mxu1 %v7043_v0 }
 0x447   :  { %1254 = vmatpush1.msra.mxu0 %v5649_v1  ;;  %4257 = vmatpush3.msra.mxu1 %v5641_v49 }
 0x448   :  { %1255 = vmatprep.subr.mxu0 %v5655_v59  ;;  %4258 = vmatprep.subr.mxu1 %v7043_v0 }
 0x449   :  { %1256 = vmatpush1.msra.mxu0 %v5659_v60  ;;  %4259 = vmatpush3.msra.mxu1 %v5651_v58 }
 0x44a   :  { %1257 = vmatprep.subr.mxu0 %v5665_v56  ;;  %4260 = vmatprep.subr.mxu1 %v7043_v0 }
 0x44b   :  { %1258 = vmatpush1.msra.mxu0 %v5669_v50  ;;  %4261 = vmatpush3.msra.mxu1 %v5661_v44 }
 0x44c   :  { %1259 = vmatprep.subr.mxu0 %v5675_v52  ;;  %4262 = vmatprep.subr.mxu1 %v7043_v0 }
 0x44d   :  { %1260 = vmatpush1.msra.mxu0 %v5679_v53  ;;  %4263 = vmatpush3.msra.mxu1 %v5671_v51 }
 0x44e   :  { %1261 = vmatprep.subr.mxu0 %v5685_v55  ;;  %4264 = vmatprep.subr.mxu1 %v7043_v0 }
 0x44f   :  { %1262 = vmatpush1.msra.mxu0 %v5689_v2  ;;  %4265 = vmatpush3.msra.mxu1 %v5681_v54 }
 0x450   :  { %1263 = vmatprep.subr.mxu0 %v5695_v4  ;;  %4266 = vmatprep.subr.mxu1 %v7043_v0 }
 0x451   :  { %1264 = vmatpush1.msra.mxu0 %v5699_v5  ;;  %4267 = vmatpush3.msra.mxu1 %v5691_v3 }
 0x452   :  { %1265 = vmatprep.subr.mxu0 %v5705_v7  ;;  %4268 = vmatprep.subr.mxu1 %v7043_v0 }
 0x453   :  { %1266 = vmatpush1.msra.mxu0 %v5709_v8  ;;  %4269 = vmatpush3.msra.mxu1 %v5701_v6 }
 0x454   :  { %1453 = vmatprep.subr.mxu0 %v5576_v14  ;;  %4270 = vmatprep.subr.mxu1 %v7043_v0 }
 0x455   :  { %4271 = vmatpush3.msra.mxu1 %v5711_v9 }
 0x456   :  { %4275 = vmatprep.subr.mxu1 %v7043_v0 }
 0x4f4   :  { %v1083_v28 = vpop.f32.mrf.mxu0  ;;  %v1154_v10 = vpop.f32.mrf.mxu1 }
 0x4f5   :  { %v1158_v11 = vadd.f32 %v3714_v27, %v1083_v28  ;;  %v1172_v14 = vadd.f32 %v5391_v62, %v1154_v10  ;;  %v3716_v27 = vld [vmem:[%s6989_s0 + $0x70] sm:$0xff]  ;;  %v7047_v62 = vld [vmem:[#allocation22_spill] sm:$0xff] }
 0x4f6   :  { %v4239_v13 = vpop.f32.mrf.mxu1  ;;  %v1085_v19 = vpop.f32.mrf.mxu0 }
 0x4f7   :  { %v3717_v15 = vmul.f32 -1.442695, %v1158_v11  ;;  %v1165_v20 = vadd.f32 %v3715_v17, %v1085_v19 }
 0x4f9   :  { %4754 = vpow2.f32 %v3717_v15  ;;  %v3718_v22 = vmul.f32 -1.442695, %v1165_v20 }
 0x4fb   :  { %4756 = vpow2.f32 %v3718_v22 }
 0x506   :  { %v4755_v29 = vpop.eup %4754 }
 0x507   :  { %v1162_v57 = vadd.f32 1.0, %v4755_v29 }
 0x508   :  { %v4757_v61 = vpop.eup %4756 }
 0x509   :  { %4758 = vrcp.f32 %v1162_v57  ;;  %v1169_v13 = vadd.f32 1.0, %v4757_v61  ;;  %v7048_v61 = vld [vmem:[#allocation21_spill] sm:$0xff]  ;;  %v3719_v57 = vld [vmem:[%s6989_s0 + $0x78] sm:$0xff] }
 0x516   :  { %v4759_v9 = vpop.eup %4758 }
 0x517   :  { %v1173_v28 = vmul.f32 %v4759_v9, %v1172_v14 }
 0x519   :  { %v1174_v11 = vadd.f32 %v3716_v27, %v1173_v28  ;;  %v3720_v28 = vld [vmem:[%s6989_s0 + $0x80] sm:$0xff] }
 0x51b   :  { %4760 = vtanh.f32 %v1174_v11 }
 0x51c   :  { %4762 = vrcp.f32 %v1169_v13 }
 0x528   :  { %v4761_v15 = vpop.eup %4760 }
 0x529   :  { %v1176_v17 = vsub.f32 %v5732_v23, %v4761_v15  ;;  %v4763_v19 = vpop.eup %4762 }
 0x52b   :  { %v1177_v29 = vmul.f32 %v4763_v19, %v1176_v17 }
 0x52d   :  { %v5822_v20 = vadd.f32 %v4761_v15, %v1177_v29 }
 0x52f   :  { %1300 = vmatmul.mubr.f32.vlgmr.msra.gmra.mxu0 %v5822_v20  ;;  %4273 = vmatmul.mubr.f32.vlgmr.msra.gmra.mxu1 %v5822_v20 }
 0x530   :  { %1454 = vmatpush1.msra.mxu0 %v5579_v30  ;;  %4276 = vmatpush3.msra.mxu1 %v5771_v12 }
 0x531   :  { %1455 = vmatprep.subr.mxu0 %v5582_v31  ;;  %4277 = vmatprep.subr.mxu1 %v7043_v0 }
 0x532   :  { %1456 = vmatpush1.msra.mxu0 %v5585_v16  ;;  %4278 = vmatpush3.msra.mxu1 %v5775_v24 }
 0x533   :  { %1457 = vmatprep.subr.mxu0 %v5588_v18  ;;  %4279 = vmatprep.subr.mxu1 %v7043_v0 }
 0x534   :  { %1458 = vmatpush1.msra.mxu0 %v5591_v21  ;;  %4280 = vmatpush3.msra.mxu1 %v5779_v25 }
 0x535   :  { %1459 = vmatprep.subr.mxu0 %v5594_v32  ;;  %4281 = vmatprep.subr.mxu1 %v7043_v0 }
 0x536   :  { %1460 = vmatpush1.msra.mxu0 %v5597_v33  ;;  %4282 = vmatpush3.msra.mxu1 %v5783_v26 }
 0x537   :  { %1461 = vmatprep.subr.mxu0 %v5600_v34  ;;  %4283 = vmatprep.subr.mxu1 %v7043_v0 }
 0x538   :  { %1462 = vmatpush1.msra.mxu0 %v5603_v35  ;;  %4284 = vmatpush3.msra.mxu1 %v5605_v36 }
 0x539   :  { %1463 = vmatprep.subr.mxu0 %v5609_v37  ;;  %4285 = vmatprep.subr.mxu1 %v7043_v0 }
 0x53a   :  { %1464 = vmatpush1.msra.mxu0 %v5613_v38  ;;  %4286 = vmatpush3.msra.mxu1 %v5615_v39 }
 0x53b   :  { %1465 = vmatprep.subr.mxu0 %v5619_v40  ;;  %4287 = vmatprep.subr.mxu1 %v7043_v0 }
 0x53c   :  { %1466 = vmatpush1.msra.mxu0 %v5623_v41  ;;  %4288 = vmatpush3.msra.mxu1 %v5625_v42 }
 0x53d   :  { %1467 = vmatprep.subr.mxu0 %v5627_v43  ;;  %4289 = vmatprep.subr.mxu1 %v7043_v0 }
 0x53e   :  { %1468 = vmatpush1.msra.mxu0 %v5631_v45  ;;  %4290 = vmatpush3.msra.mxu1 %v5633_v46 }
 0x53f   :  { %1469 = vmatprep.subr.mxu0 %v5635_v47  ;;  %4291 = vmatprep.subr.mxu1 %v7043_v0 }
 0x540   :  { %1470 = vmatpush1.msra.mxu0 %v5639_v48  ;;  %4292 = vmatpush3.msra.mxu1 %v5641_v49 }
 0x541   :  { %1471 = vmatprep.subr.mxu0 %v5645_v63  ;;  %4293 = vmatprep.subr.mxu1 %v7043_v0 }
 0x542   :  { %1472 = vmatpush1.msra.mxu0 %v5649_v1  ;;  %4294 = vmatpush3.msra.mxu1 %v5651_v58 }
 0x543   :  { %1473 = vmatprep.subr.mxu0 %v5655_v59  ;;  %4295 = vmatprep.subr.mxu1 %v7043_v0 }
 0x544   :  { %1474 = vmatpush1.msra.mxu0 %v5659_v60  ;;  %4296 = vmatpush3.msra.mxu1 %v5661_v44 }
 0x545   :  { %1475 = vmatprep.subr.mxu0 %v5665_v56  ;;  %4297 = vmatprep.subr.mxu1 %v7043_v0 }
 0x546   :  { %1476 = vmatpush1.msra.mxu0 %v5669_v50  ;;  %4298 = vmatpush3.msra.mxu1 %v5671_v51 }
 0x547   :  { %1477 = vmatprep.subr.mxu0 %v5675_v52  ;;  %4299 = vmatprep.subr.mxu1 %v7043_v0 }
 0x548   :  { %1478 = vmatpush1.msra.mxu0 %v5679_v53  ;;  %4300 = vmatpush3.msra.mxu1 %v5681_v54 }
 0x549   :  { %1479 = vmatprep.subr.mxu0 %v5685_v55  ;;  %4301 = vmatprep.subr.mxu1 %v7043_v0 }
 0x54a   :  { %1480 = vmatpush1.msra.mxu0 %v5689_v2  ;;  %4302 = vmatpush3.msra.mxu1 %v5691_v3 }
 0x54b   :  { %1481 = vmatprep.subr.mxu0 %v5695_v4  ;;  %4303 = vmatprep.subr.mxu1 %v7043_v0 }
 0x54c   :  { %1482 = vmatpush1.msra.mxu0 %v5699_v5  ;;  %4304 = vmatpush3.msra.mxu1 %v5701_v6 }
 0x54d   :  { %1483 = vmatprep.subr.mxu0 %v5705_v7  ;;  %4305 = vmatprep.subr.mxu1 %v7043_v0 }
 0x54e   :  { %1484 = vmatpush1.msra.mxu0 %v5709_v8  ;;  %1517 = vmatprep.mubr.f32.mxu0 %v7043_v0 }
 0x54f   :  { %4306 = vmatpush3.msra.mxu1 %v7047_v62  ;;  %4307 = vmatprep.mubr.msk.f32.mxu1 %vm5060_vm0, %v7043_v0 }
 0x550   :  { %1671 = vmatprep.subr.mxu0 %v7048_v61  ;;  %4310 = vmatprep.subr.mxu1 %v7043_v0  ;;  %v5902_v61 = vld [vmem:[%s6991_s2] ss:$0 sm:$0xff] }
 0x5ef   :  { %v1301_v14 = vpop.f32.mrf.mxu0  ;;  %v1372_v9 = vpop.f32.mrf.mxu1 }
 0x5f0   :  { %v1376_v10 = vadd.f32 %v3719_v57, %v1301_v14  ;;  %v1390_v57 = vadd.f32 %v5902_v61, %v1372_v9  ;;  %v1870_v9 = vld [vmem:[#allocation7 + $0xd0] sm:$0xff] }
 0x5f1   :  { %v4274_v22 = vpop.f32.mrf.mxu1  ;;  %v1303_v11 = vpop.f32.mrf.mxu0 }
 0x5f2   :  { %v3722_v27 = vmul.f32 -1.442695, %v1376_v10  ;;  %v1383_v13 = vadd.f32 %v3720_v28, %v1303_v11  ;;  %v3721_v10 = vld [vmem:[%s6989_s0 + $0x88] sm:$0xff] }
 0x5f4   :  { %4764 = vpow2.f32 %v3722_v27  ;;  %v3723_v15 = vmul.f32 -1.442695, %v1383_v13 }
 0x5f6   :  { %4766 = vpow2.f32 %v3723_v15 }
 0x601   :  { %v4765_v17 = vpop.eup %4764 }
 0x602   :  { %v1380_v19 = vadd.f32 1.0, %v4765_v17 }
 0x603   :  { %v4767_v29 = vpop.eup %4766 }
 0x604   :  { %4768 = vrcp.f32 %v1380_v19  ;;  %v1387_v28 = vadd.f32 1.0, %v4767_v29  ;;  %v1868_v29 = vld [vmem:[#allocation7 + $0xc0] sm:$0xff] }
 0x611   :  { %v4769_v14 = vpop.eup %4768 }
 0x612   :  { %v1391_v22 = vmul.f32 %v4769_v14, %v1390_v57  ;;  %v1866_v57 = vld [vmem:[#allocation7 + $0xb0] sm:$0xff]  ;;  %v1867_v14 = vld [vmem:[#allocation7 + $0xb8] sm:$0xff] }
 0x614   :  { %v1392_v27 = vadd.f32 %v3721_v10, %v1391_v22  ;;  %v1865_v10 = vld [vmem:[#allocation7 + $0xa8] sm:$0xff]  ;;  %v1863_v22 = vld [vmem:[#allocation7 + $0x98] sm:$0xff] }
 0x616   :  { %4770 = vtanh.f32 %v1392_v27  ;;  %v1864_v27 = vld [vmem:[#allocation7 + $0xa0] sm:$0xff] }
 0x617   :  { %4772 = vrcp.f32 %v1387_v28  ;;  %v1862_v28 = vld [vmem:[#allocation7 + $0x90] sm:$0xff] }
 0x623   :  { %v4771_v11 = vpop.eup %4770 }
 0x624   :  { %v1394_v13 = vsub.f32 %v5822_v20, %v4771_v11  ;;  %v4773_v15 = vpop.eup %4772 }
 0x626   :  { %v1395_v17 = vmul.f32 %v4773_v15, %v1394_v13  ;;  %v1861_v13 = vld [vmem:[#allocation7 + $0x88] sm:$0xff]  ;;  %v1859_v15 = vld [vmem:[#allocation7 + $0x78] sm:$0xff] }
 0x628   :  { %v5909_v19 = vadd.f32 %v4771_v11, %v1395_v17  ;;  %v1860_v11 = vld [vmem:[#allocation7 + $0x80] sm:$0xff]  ;;  %v1857_v17 = vld [vmem:[#allocation7 + $0x68] sm:$0xff] }
 0x62a   :  { %1518 = vmatmul.mubr.f32.vlgmr.msra.gmra.mxu0 %v5909_v19  ;;  %4308 = vmatmul.mubr.f32.vlgmr.msra.gmra.mxu1 %v5909_v19 }
 0x62b   :  { %1672 = vmatpush1.msra.mxu0 %v5579_v30  ;;  %4311 = vmatpush3.msra.mxu1 %v5771_v12  ;;  %v1890_v30 = vld [vmem:[#allocation7 + $0x170] sm:$0xff] }
 0x62c   :  { %1673 = vmatprep.subr.mxu0 %v5582_v31  ;;  %4312 = vmatprep.subr.mxu1 %v7043_v0  ;;  %v1891_v31 = vld [vmem:[#allocation7 + $0x178] sm:$0xff]  ;;  %v1874_v12 = vld [vmem:[#allocation7 + $0xf0] sm:$0xff] }
 0x62d   :  { %1674 = vmatpush1.msra.mxu0 %v5585_v16  ;;  %4313 = vmatpush3.msra.mxu1 %v5775_v24  ;;  %v3724_v16 = vld [vmem:[%s6989_s0 + $0x90] sm:$0xff]  ;;  %v1872_v24 = vld [vmem:[#allocation7 + $0xe0] sm:$0xff] }
 0x62e   :  { %1675 = vmatprep.subr.mxu0 %v5588_v18  ;;  %4314 = vmatprep.subr.mxu1 %v7043_v0 }
 0x62f   :  { %1676 = vmatpush1.msra.mxu0 %v5591_v21  ;;  %4315 = vmatpush3.msra.mxu1 %v5779_v25  ;;  %v1873_v25 = vld [vmem:[#allocation7 + $0xe8] sm:$0xff] }
 0x630   :  { %1677 = vmatprep.subr.mxu0 %v5594_v32  ;;  %4316 = vmatprep.subr.mxu1 %v7043_v0 }
 0x631   :  { %1678 = vmatpush1.msra.mxu0 %v5597_v33  ;;  %4317 = vmatpush3.msra.mxu1 %v5783_v26  ;;  %v1871_v26 = vld [vmem:[#allocation7 + $0xd8] sm:$0xff] }
 0x632   :  { %1679 = vmatprep.subr.mxu0 %v5600_v34  ;;  %4318 = vmatprep.subr.mxu1 %v7043_v0 }
 0x633   :  { %1680 = vmatpush1.msra.mxu0 %v5603_v35  ;;  %4319 = vmatpush3.msra.mxu1 %v5605_v36  ;;  %v3725_v35 = vld [vmem:[%s6989_s0 + $0x98] sm:$0xff] }
 0x634   :  { %1681 = vmatprep.subr.mxu0 %v5609_v37  ;;  %4320 = vmatprep.subr.mxu1 %v7043_v0 }
 0x635   :  { %1682 = vmatpush1.msra.mxu0 %v5613_v38  ;;  %4321 = vmatpush3.msra.mxu1 %v5615_v39 }
 0x636   :  { %1683 = vmatprep.subr.mxu0 %v5619_v40  ;;  %4322 = vmatprep.subr.mxu1 %v7043_v0 }
 0x637   :  { %1684 = vmatpush1.msra.mxu0 %v5623_v41  ;;  %4323 = vmatpush3.msra.mxu1 %v5625_v42 }
 0x638   :  { %1685 = vmatprep.subr.mxu0 %v5627_v43  ;;  %4324 = vmatprep.subr.mxu1 %v7043_v0 }
 0x639   :  { %1686 = vmatpush1.msra.mxu0 %v5631_v45  ;;  %4325 = vmatpush3.msra.mxu1 %v5633_v46  ;;  %v3726_v45 = vld [vmem:[%s6989_s0 + $0xa0] sm:$0xff] }
 0x63a   :  { %1687 = vmatprep.subr.mxu0 %v5635_v47  ;;  %4326 = vmatprep.subr.mxu1 %v7043_v0 }
 0x63b   :  { %1688 = vmatpush1.msra.mxu0 %v5639_v48  ;;  %4327 = vmatpush3.msra.mxu1 %v5641_v49 }
 0x63c   :  { %1689 = vmatprep.subr.mxu0 %v5645_v63  ;;  %4328 = vmatprep.subr.mxu1 %v7043_v0 }
 0x63d   :  { %1690 = vmatpush1.msra.mxu0 %v5649_v1  ;;  %4329 = vmatpush3.msra.mxu1 %v5651_v58 }
 0x63e   :  { %1691 = vmatprep.subr.mxu0 %v5655_v59  ;;  %4330 = vmatprep.subr.mxu1 %v7043_v0 }
 0x63f   :  { %1692 = vmatpush1.msra.mxu0 %v5659_v60  ;;  %4331 = vmatpush3.msra.mxu1 %v5661_v44  ;;  %v1889_v60 = vld [vmem:[#allocation7 + $0x168] sm:$0xff]  ;;  %v1887_v44 = vld [vmem:[#allocation7 + $0x158] sm:$0xff] }
 0x640   :  { %1693 = vmatprep.subr.mxu0 %v5665_v56  ;;  %4332 = vmatprep.subr.mxu1 %v7043_v0  ;;  %v1888_v56 = vld [vmem:[#allocation7 + $0x160] sm:$0xff] }
 0x641   :  { %1694 = vmatpush1.msra.mxu0 %v5669_v50  ;;  %4333 = vmatpush3.msra.mxu1 %v5671_v51  ;;  %v1886_v50 = vld [vmem:[#allocation7 + $0x150] sm:$0xff]  ;;  %v1884_v51 = vld [vmem:[#allocation7 + $0x140] sm:$0xff] }
 0x642   :  { %1695 = vmatprep.subr.mxu0 %v5675_v52  ;;  %4334 = vmatprep.subr.mxu1 %v7043_v0  ;;  %v1885_v52 = vld [vmem:[#allocation7 + $0x148] sm:$0xff] }
 0x643   :  { %1696 = vmatpush1.msra.mxu0 %v5679_v53  ;;  %4335 = vmatpush3.msra.mxu1 %v5681_v54  ;;  %v1883_v53 = vld [vmem:[#allocation7 + $0x138] sm:$0xff] }
 0x644   :  { %1697 = vmatprep.subr.mxu0 %v5685_v55  ;;  %4336 = vmatprep.subr.mxu1 %v7043_v0  ;;  %v7049_v54 = vld [vmem:[#allocation18_spill] sm:$0xff]  ;;  %v1881_v55 = vld [vmem:[#allocation7 + $0x128] sm:$0xff] }
 0x645   :  { %1698 = vmatpush1.msra.mxu0 %v5689_v2  ;;  %4337 = vmatpush3.msra.mxu1 %v5691_v3  ;;  %v1882_v2 = vld [vmem:[#allocation7 + $0x130] sm:$0xff]  ;;  %v1880_v3 = vld [vmem:[#allocation7 + $0x120] sm:$0xff] }
 0x646   :  { %1699 = vmatprep.subr.mxu0 %v5695_v4  ;;  %4338 = vmatprep.subr.mxu1 %v7043_v0  ;;  %v1878_v4 = vld [vmem:[#allocation7 + $0x110] sm:$0xff] }
 0x647   :  { %1700 = vmatpush1.msra.mxu0 %v5699_v5  ;;  %4339 = vmatpush3.msra.mxu1 %v5701_v6  ;;  %v1879_v5 = vld [vmem:[#allocation7 + $0x118] sm:$0xff]  ;;  %v1877_v6 = vld [vmem:[#allocation7 + $0x108] sm:$0xff] }
 0x648   :  { %1701 = vmatprep.subr.mxu0 %v5705_v7  ;;  %4340 = vmatprep.subr.mxu1 %v7043_v0  ;;  %v1875_v7 = vld [vmem:[#allocation7 + $0xf8] sm:$0xff] }
 0x649   :  { %1702 = vmatpush1.msra.mxu0 %v5709_v8  ;;  %4341 = vmatpush3.msra.mxu1 %v7047_v62  ;;  %v1876_v8 = vld [vmem:[#allocation7 + $0x100] sm:$0xff]  ;;  %v1869_v62 = vld [vmem:[#allocation7 + $0xc8] sm:$0xff] }
 0x64a   :  { %1735 = vmatprep.mubr.f32.mxu0 %v7043_v0  ;;  %4342 = vmatprep.mubr.msk.f32.mxu1 %vm5060_vm0, %v7043_v0 }
 0x64b   :  { %1909 = vmatprep.subr.mxu0 %v1890_v30  ;;  %4345 = vmatprep.subr.mxu1 %v1891_v31  ;;  %v1858_v30 = vld [vmem:[#allocation7 + $0x70] sm:$0xff] }
 0x6ea   :  { %v1519_v18 = vpop.f32.mrf.mxu0  ;;  %v1590_v21 = vpop.f32.mrf.mxu1 }
 0x6eb   :  { %v1594_v32 = vadd.f32 %v3724_v16, %v1519_v18  ;;  %v1608_v42 = vadd.f32 %v5902_v61, %v1590_v21  ;;  %v1854_v16 = vld [vmem:[#allocation7 + $0x50] sm:$0xff]  ;;  %v1855_v18 = vld [vmem:[#allocation7 + $0x58] sm:$0xff]  ;;  %v1853_v21 = vld [vmem:[#allocation7 + $0x48] sm:$0xff] }
 0x6ec   :  { %v4309_v33 = vpop.f32.mrf.mxu1  ;;  %v1521_v36 = vpop.f32.mrf.mxu0 }
 0x6ed   :  { %v3727_v34 = vmul.f32 -1.442695, %v1594_v32  ;;  %v1601_v37 = vadd.f32 %v3725_v35, %v1521_v36  ;;  %v1851_v32 = vld [vmem:[#allocation7 + $0x38] sm:$0xff]  ;;  %v1852_v33 = vld [vmem:[#allocation7 + $0x40] sm:$0xff]  ;;  %v1849_v36 = vld [vmem:[#allocation7 + $0x28] sm:$0xff] }
 0x6ee   :  { %v1848_v35 = vld [vmem:[#allocation7 + $0x20] sm:$0xff] }
 0x6ef   :  { %4774 = vpow2.f32 %v3727_v34  ;;  %v3728_v38 = vmul.f32 -1.442695, %v1601_v37  ;;  %v1850_v34 = vld [vmem:[#allocation7 + $0x30] sm:$0xff]  ;;  %v1847_v37 = vld [vmem:[#allocation7 + $0x18] sm:$0xff] }
 0x6f1   :  { %4776 = vpow2.f32 %v3728_v38  ;;  %v1845_v38 = vld [vmem:[#allocation7 + $0x8] sm:$0xff] }
 0x6fc   :  { %v4775_v39 = vpop.eup %4774 }
 0x6fd   :  { %v1598_v40 = vadd.f32 1.0, %v4775_v39  ;;  %v1846_v39 = vld [vmem:[#allocation7 + $0x10] sm:$0xff] }
 0x6fe   :  { %v4777_v41 = vpop.eup %4776 }
 0x6ff   :  { %4778 = vrcp.f32 %v1598_v40  ;;  %v1605_v48 = vadd.f32 1.0, %v4777_v41  ;;  %v1844_v40 = vld [vmem:[#allocation7] sm:$0xff] }
 0x700   :  { %v7050_v41 = vld [vmem:[#allocation19_spill] sm:$0xff] }
 0x70c   :  { %v4779_v43 = vpop.eup %4778 }
 0x70d   :  { %v1609_v46 = vmul.f32 %v4779_v43, %v1608_v42  ;;  %v7051_v42 = vld [vmem:[#allocation20_spill] sm:$0xff]  ;;  %v6016_v43 = vld [vmem:[#allocation9 + $0x170] sm:$0xff] }
 0x70e   :  { %7052 = vst [vmem:[#allocation22_spill] sm:$0xff] %v6016_v43 }
 0x70f   :  { %v1610_v47 = vadd.f32 %v3726_v45, %v1609_v46  ;;  %v6019_v45 = vld [vmem:[#allocation9 + $0x168] sm:$0xff]  ;;  %v6031_v46 = vld [vmem:[#allocation9 + $0x138] sm:$0xff] }
 0x711   :  { %4780 = vtanh.f32 %v1610_v47  ;;  %v6034_v47 = vld [vmem:[#allocation9 + $0x128] sm:$0xff] }
 0x712   :  { %4782 = vrcp.f32 %v1605_v48  ;;  %v6037_v48 = vld [vmem:[#allocation9 + $0x120] sm:$0xff] }
 0x71e   :  { %v4781_v49 = vpop.eup %4780 }
 0x71f   :  { %v1612_v63 = vsub.f32 %v5909_v19, %v4781_v49  ;;  %v4783_v1 = vpop.eup %4782 }
 0x721   :  { %v1613_v58 = vmul.f32 %v4783_v1, %v1612_v63  ;;  %v6043_v63 = vld [vmem:[#allocation9 + $0x108] sm:$0xff]  ;;  %v6046_v1 = vld [vmem:[#allocation9 + $0xf8] sm:$0xff] }
 0x723   :  { %v5989_v59 = vadd.f32 %v4781_v49, %v1613_v58  ;;  %v6040_v49 = vld [vmem:[#allocation9 + $0x110] sm:$0xff] }
 0x724   :  { %v6049_v58 = vld [vmem:[#allocation9 + $0xf0] sm:$0xff] }
 0x725   :  { %1736 = vmatmul.mubr.f32.vlgmr.msra.gmra.mxu0 %v5989_v59  ;;  %4343 = vmatmul.mubr.f32.vlgmr.msra.gmra.mxu1 %v5989_v59 }
 0x726   :  { %1910 = vmatpush1.msra.mxu0 %v1889_v60  ;;  %4346 = vmatpush3.msra.mxu1 %v1891_v31  ;;  %v1856_v31 = vld [vmem:[#allocation7 + $0x60] sm:$0xff] }
 0x727   :  { %1911 = vmatprep.subr.mxu0 %v1887_v44  ;;  %4347 = vmatprep.subr.mxu1 %v1888_v56  ;;  %v6052_v60 = vld [vmem:[#allocation9 + $0xe0] sm:$0xff]  ;;  %v6055_v44 = vld [vmem:[#allocation9 + $0xd8] sm:$0xff] }
 0x728   :  { %4377 = vmatprep.mubr.f32.mxu1 %v7049_v54  ;;  %1912 = vmatpush1.msra.mxu0 %v1886_v50  ;;  %v6061_v50 = vld [vmem:[#allocation9 + $0xc0] sm:$0xff] }
 0x729   :  { %4348 = vmatpush3.msra.mxu1 %v1888_v56  ;;  %1913 = vmatprep.subr.mxu0 %v1884_v51  ;;  %v6058_v56 = vld [vmem:[#allocation9 + $0xc8] sm:$0xff]  ;;  %v6064_v51 = vld [vmem:[#allocation9 + $0xb0] sm:$0xff] }
 0x72a   :  { %4349 = vmatprep.subr.mxu1 %v1885_v52  ;;  %1914 = vmatpush1.msra.mxu0 %v1883_v53  ;;  %v6070_v53 = vld [vmem:[#allocation9 + $0x98] sm:$0xff] }
 0x72b   :  { %4350 = vmatpush3.msra.mxu1 %v1885_v52  ;;  %1915 = vmatprep.subr.mxu0 %v1881_v55  ;;  %v6067_v52 = vld [vmem:[#allocation9 + $0xa8] sm:$0xff]  ;;  %v6076_v55 = vld [vmem:[#allocation9 + $0x80] sm:$0xff] }
 0x72c   :  { %4351 = vmatprep.subr.mxu1 %v1882_v2  ;;  %1916 = vmatpush1.msra.mxu0 %v1880_v3  ;;  %v6082_v3 = vld [vmem:[#allocation9 + $0x68] sm:$0xff] }
 0x72d   :  { %4352 = vmatpush3.msra.mxu1 %v1882_v2  ;;  %1917 = vmatprep.subr.mxu0 %v1878_v4  ;;  %v6079_v2 = vld [vmem:[#allocation9 + $0x78] sm:$0xff]  ;;  %v6085_v4 = vld [vmem:[#allocation9 + $0x60] sm:$0xff] }
 0x72e   :  { %4353 = vmatprep.subr.mxu1 %v1879_v5  ;;  %1918 = vmatpush1.msra.mxu0 %v1877_v6  ;;  %v6091_v6 = vld [vmem:[#allocation9 + $0x48] sm:$0xff] }
 0x72f   :  { %4354 = vmatpush3.msra.mxu1 %v1879_v5  ;;  %1919 = vmatprep.subr.mxu0 %v1875_v7  ;;  %v6088_v5 = vld [vmem:[#allocation9 + $0x50] sm:$0xff]  ;;  %v6094_v7 = vld [vmem:[#allocation9 + $0x38] sm:$0xff] }
 0x730   :  { %4355 = vmatprep.subr.mxu1 %v1876_v8  ;;  %1920 = vmatpush1.msra.mxu0 %v1874_v12  ;;  %v6100_v12 = vld [vmem:[#allocation9 + $0x20] sm:$0xff] }
 0x731   :  { %4356 = vmatpush3.msra.mxu1 %v1876_v8  ;;  %1921 = vmatprep.subr.mxu0 %v1872_v24  ;;  %v6097_v8 = vld [vmem:[#allocation9 + $0x30] sm:$0xff]  ;;  %7053 = vst [vmem:[#allocation21_spill] sm:$0xff] %v6100_v12  ;;  %v6102_v24 = vld [vmem:[#allocation9 + $0x18] sm:$0xff] }
 0x732   :  { %4357 = vmatprep.subr.mxu1 %v1873_v25  ;;  %1922 = vmatpush1.msra.mxu0 %v1871_v26  ;;  %7054 = vst [vmem:[#allocation18_spill] sm:$0xff] %v6102_v24  ;;  %v6107_v26 = vld [vmem:[#allocation9] sm:$0xff] }
 0x733   :  { %4358 = vmatpush3.msra.mxu1 %v1873_v25  ;;  %1923 = vmatprep.subr.mxu0 %v1869_v62  ;;  %v6104_v25 = vld [vmem:[#allocation9 + $0x8] sm:$0xff]  ;;  %7056 = vst [vmem:[#allocation20_spill] sm:$0xff] %v6107_v26  ;;  %v6109_v62 = vld [vmem:[#allocation9 + $0x178] sm:$0xff] }
 0x734   :  { %4359 = vmatprep.subr.mxu1 %v1870_v9  ;;  %1924 = vmatpush1.msra.mxu0 %v1868_v29  ;;  %7055 = vst [vmem:[#allocation19_spill] sm:$0xff] %v6104_v25  ;;  %v6117_v29 = vld [vmem:[#allocation9 + $0x148] sm:$0xff] }
 0x735   :  { %4360 = vmatpush3.msra.mxu1 %v1870_v9  ;;  %1925 = vmatprep.subr.mxu0 %v1866_v57  ;;  %v6115_v9 = vld [vmem:[#allocation9 + $0x160] sm:$0xff]  ;;  %v6122_v57 = vld [vmem:[#allocation9 + $0x130] sm:$0xff] }
 0x736   :  { %4361 = vmatprep.subr.mxu1 %v1867_v14  ;;  %1926 = vmatpush1.msra.mxu0 %v1865_v10  ;;  %v6131_v10 = vld [vmem:[#allocation9 + $0x100] sm:$0xff] }
 0x737   :  { %4362 = vmatpush3.msra.mxu1 %v1867_v14  ;;  %1927 = vmatprep.subr.mxu0 %v1863_v22  ;;  %v6127_v14 = vld [vmem:[#allocation9 + $0x118] sm:$0xff]  ;;  %v6135_v22 = vld [vmem:[#allocation9 + $0xe8] sm:$0xff] }
 0x738   :  { %4363 = vmatprep.subr.mxu1 %v1864_v27  ;;  %1928 = vmatpush1.msra.mxu0 %v1862_v28  ;;  %v6143_v28 = vld [vmem:[#allocation9 + $0xb8] sm:$0xff] }
 0x739   :  { %4364 = vmatpush3.msra.mxu1 %v1864_v27  ;;  %1929 = vmatprep.subr.mxu0 %v1860_v11  ;;  %v6139_v27 = vld [vmem:[#allocation9 + $0xd0] sm:$0xff]  ;;  %v6147_v11 = vld [vmem:[#allocation9 + $0xa0] sm:$0xff] }
 0x73a   :  { %4365 = vmatprep.subr.mxu1 %v1861_v13  ;;  %1930 = vmatpush1.msra.mxu0 %v1859_v15  ;;  %v6155_v15 = vld [vmem:[#allocation9 + $0x70] sm:$0xff] }
 0x73b   :  { %4366 = vmatpush3.msra.mxu1 %v1861_v13  ;;  %1931 = vmatprep.subr.mxu0 %v1857_v17  ;;  %v6151_v13 = vld [vmem:[#allocation9 + $0x88] sm:$0xff]  ;;  %v6159_v17 = vld [vmem:[#allocation9 + $0x58] sm:$0xff] }
 0x73c   :  { %4367 = vmatprep.subr.mxu1 %v1858_v30  ;;  %1932 = vmatpush1.msra.mxu0 %v1856_v31  ;;  %v6167_v31 = vld [vmem:[#allocation9 + $0x28] sm:$0xff] }
 0x73d   :  { %4368 = vmatpush3.msra.mxu1 %v1858_v30  ;;  %1933 = vmatprep.subr.mxu0 %v1854_v16  ;;  %v6163_v30 = vld [vmem:[#allocation9 + $0x40] sm:$0xff]  ;;  %7057 = vst [vmem:[#allocation23_spill] sm:$0xff] %v6167_v31  ;;  %v6171_v16 = vld [vmem:[#allocation9 + $0x10] sm:$0xff] }
 0x73e   :  { %4369 = vmatprep.subr.mxu1 %v1855_v18  ;;  %1934 = vmatpush1.msra.mxu0 %v1853_v21  ;;  %7058 = vst [vmem:[#allocation24_spill] sm:$0xff] %v6171_v16 }
 0x73f   :  { %4370 = vmatpush3.msra.mxu1 %v1855_v18  ;;  %1935 = vmatprep.subr.mxu0 %v1851_v32  ;;  %v3729_v18 = vld [vmem:[%s6989_s0 + $0xa8] sm:$0xff] }
 0x740   :  { %4371 = vmatprep.subr.mxu1 %v1852_v33  ;;  %1936 = vmatpush1.msra.mxu0 %v1850_v34 }
 0x741   :  { %4372 = vmatpush3.msra.mxu1 %v1852_v33  ;;  %1937 = vmatprep.subr.mxu0 %v1848_v35 }
 0x742   :  { %4373 = vmatprep.subr.mxu1 %v1849_v36  ;;  %1938 = vmatpush1.msra.mxu0 %v1847_v37 }
 0x743   :  { %4374 = vmatpush3.msra.mxu1 %v1849_v36  ;;  %1939 = vmatprep.subr.mxu0 %v1845_v38  ;;  %v3730_v36 = vld [vmem:[%s6989_s0 + $0xb0] sm:$0xff] }
 0x744   :  { %4375 = vmatprep.subr.mxu1 %v1846_v39  ;;  %1940 = vmatpush1.msra.mxu0 %v1844_v40 }
 0x745   :  { %1973 = vmatprep.mubr.f32.mxu0 %v7043_v0  ;;  %4376 = vmatpush3.msra.mxu1 %v1846_v39 }
 0x746   :  { %1974 = vmatmul.mubr.f32.vlgmr.msra.gmra.mxu0 %v7049_v54  ;;  %4378 = vmatmul.mubr.f32.vlgmr.msra.gmra.mxu1 %v7050_v41  ;;  %v6073_v54 = vld [vmem:[#allocation9 + $0x90] sm:$0xff] }
 0x747   :  { %4380 = vmatprep.mubr.f32.mxu1 %v7051_v42  ;;  %1979 = vmatprep.mubr.f32.mxu0 %v7043_v0 }
 0x748   :  { %4389 = vmatprep.subr.mxu1 %v7043_v0  ;;  %2212 = vmatprep.subr.mxu0 %v6016_v43 }
 0x749   :  { %2213 = vmatpush1.msra.mxu0 %v6019_v45  ;;  %4390 = vmatpush3.msra.mxu1 %v6109_v62 }
 0x74a   :  { %1980 = vmatmul.mubr.f32.gmra.mxu0 %v7050_v41  ;;  %4381 = vmatmul.mubr.f32.gmra.mxu1 %v5732_v23 }
 0x74b   :  { %4383 = vmatprep.mubr.f32.mxu1 %v5822_v20  ;;  %1985 = vmatprep.mubr.f32.mxu0 %v7043_v0 }
 0x74c   :  { %4391 = vmatprep.subr.mxu1 %v7043_v0 }
 0x74d   :  { %4392 = vmatpush3.msra.mxu1 %v6115_v9 }
 0x74e   :  { %1986 = vmatmul.mubr.f32.gmra.mxu0 %v7051_v42  ;;  %4384 = vmatmul.mubr.f32.gmra.mxu1 %v5909_v19 }
 0x74f   :  { %4386 = vmatprep.mubr.f32.mxu1 %v5989_v59  ;;  %1991 = vmatprep.mubr.f32.mxu0 %v7043_v0 }
 0x750   :  { %4393 = vmatprep.subr.mxu1 %v7043_v0 }
 0x751   :  { %4394 = vmatpush3.msra.mxu1 %v6117_v29 }
 0x752   :  { %1992 = vmatmul.mubr.f32.gmra.mxu0 %v5732_v23  ;;  %v6022_v23 = vld [vmem:[#allocation9 + $0x158] sm:$0xff]  ;;  %4395 = vmatprep.subr.mxu1 %v7043_v0 }
 0x753   :  { %1997 = vmatprep.mubr.f32.mxu0 %v7043_v0  ;;  %2214 = vmatprep.subr.mxu0 %v6022_v23 }
 0x754   :  { %4396 = vmatpush3.msra.mxu1 %v6122_v57 }
 0x755   :  { %4397 = vmatprep.subr.mxu1 %v7043_v0 }
 0x756   :  { %1998 = vmatmul.mubr.f32.gmra.mxu0 %v5822_v20  ;;  %v6025_v20 = vld [vmem:[#allocation9 + $0x150] sm:$0xff]  ;;  %4398 = vmatpush3.msra.mxu1 %v6127_v14 }
 0x757   :  { %2003 = vmatprep.mubr.f32.mxu0 %v7043_v0  ;;  %2215 = vmatpush1.msra.mxu0 %v6025_v20 }
 0x758   :  { %4399 = vmatprep.subr.mxu1 %v7043_v0 }
 0x759   :  { %4400 = vmatpush3.msra.mxu1 %v6131_v10 }
 0x75a   :  { %2004 = vmatmul.mubr.f32.gmra.mxu0 %v5909_v19  ;;  %v6028_v19 = vld [vmem:[#allocation9 + $0x140] sm:$0xff]  ;;  %4401 = vmatprep.subr.mxu1 %v7043_v0 }
 0x75b   :  { %2009 = vmatprep.mubr.f32.mxu0 %v7043_v0  ;;  %2216 = vmatprep.subr.mxu0 %v6028_v19 }
 0x75c   :  { %2217 = vmatpush1.msra.mxu0 %v6031_v46  ;;  %4402 = vmatpush3.msra.mxu1 %v6135_v22 }
 0x75d   :  { %2218 = vmatprep.subr.mxu0 %v6034_v47  ;;  %4403 = vmatprep.subr.mxu1 %v7043_v0 }
 0x75e   :  { %2010 = vmatmul.mubr.f32.gmra.mxu0 %v5989_v59  ;;  %4404 = vmatpush3.msra.mxu1 %v6139_v27 }
 0x75f   :  { %2015 = vmatprep.mubr.f32.mxu0 %v7043_v0  ;;  %2219 = vmatpush1.msra.mxu0 %v6037_v48 }
 0x760   :  { %2220 = vmatprep.subr.mxu0 %v6040_v49  ;;  %4405 = vmatprep.subr.mxu1 %v7043_v0 }
 0x761   :  { %2221 = vmatpush1.msra.mxu0 %v6043_v63  ;;  %4406 = vmatpush3.msra.mxu1 %v6143_v28 }
 0x762   :  { %2222 = vmatprep.subr.mxu0 %v6046_v1  ;;  %4407 = vmatprep.subr.mxu1 %v7043_v0 }
 0x763   :  { %2223 = vmatpush1.msra.mxu0 %v6049_v58  ;;  %4408 = vmatpush3.msra.mxu1 %v6147_v11 }
 0x764   :  { %2224 = vmatprep.subr.mxu0 %v6052_v60  ;;  %4409 = vmatprep.subr.mxu1 %v7043_v0 }
 0x765   :  { %2225 = vmatpush1.msra.mxu0 %v6055_v44  ;;  %4410 = vmatpush3.msra.mxu1 %v6151_v13 }
 0x766   :  { %2226 = vmatprep.subr.mxu0 %v6058_v56  ;;  %4411 = vmatprep.subr.mxu1 %v7043_v0 }
 0x767   :  { %2227 = vmatpush1.msra.mxu0 %v6061_v50  ;;  %4412 = vmatpush3.msra.mxu1 %v6155_v15 }
 0x768   :  { %2228 = vmatprep.subr.mxu0 %v6064_v51  ;;  %4413 = vmatprep.subr.mxu1 %v7043_v0 }
 0x769   :  { %2229 = vmatpush1.msra.mxu0 %v6067_v52  ;;  %4414 = vmatpush3.msra.mxu1 %v6159_v17 }
 0x76a   :  { %2230 = vmatprep.subr.mxu0 %v6070_v53  ;;  %4415 = vmatprep.subr.mxu1 %v7043_v0 }
 0x76b   :  { %2231 = vmatpush1.msra.mxu0 %v6073_v54  ;;  %4416 = vmatpush3.msra.mxu1 %v6163_v30 }
 0x76c   :  { %2232 = vmatprep.subr.mxu0 %v6076_v55  ;;  %4417 = vmatprep.subr.mxu1 %v7043_v0 }
 0x76d   :  { %2233 = vmatpush1.msra.mxu0 %v6079_v2  ;;  %4418 = vmatpush3.msra.mxu1 %v6167_v31 }
 0x76e   :  { %2234 = vmatprep.subr.mxu0 %v6082_v3  ;;  %4419 = vmatprep.subr.mxu1 %v7043_v0 }
 0x76f   :  { %2235 = vmatpush1.msra.mxu0 %v6085_v4  ;;  %4420 = vmatpush3.msra.mxu1 %v6171_v16 }
 0x770   :  { %2236 = vmatprep.subr.mxu0 %v6088_v5  ;;  %4424 = vmatprep.subr.mxu1 %v7043_v0 }
 0x771   :  { %2237 = vmatpush1.msra.mxu0 %v6091_v6 }
 0x772   :  { %2238 = vmatprep.subr.mxu0 %v6094_v7 }
 0x773   :  { %2239 = vmatpush1.msra.mxu0 %v6097_v8 }
 0x774   :  { %2240 = vmatprep.subr.mxu0 %v6100_v12 }
 0x775   :  { %2241 = vmatpush1.msra.mxu0 %v6102_v24 }
 0x776   :  { %2242 = vmatprep.subr.mxu0 %v6104_v25 }
 0x777   :  { %2243 = vmatpush1.msra.mxu0 %v6107_v26 }
 0x778   :  { %2379 = vmatprep.subr.mxu0 %v6016_v43 }
 0x7e5   :  { %v1737_v21 = vpop.f32.mrf.mxu0  ;;  %v1808_v32 = vpop.f32.mrf.mxu1 }
 0x7e6   :  { %v1812_v33 = vadd.f32 %v3729_v18, %v1737_v21  ;;  %v1826_v43 = vadd.f32 %v5902_v61, %v1808_v32  ;;  %v3731_v18 = vld [vmem:[%s6989_s0 + $0xb8] sm:$0xff]  ;;  %v6192_v61 = vld [vmem:[%s6997_s8] sm:$0xff] }
 0x7e7   :  { %v4344_v34 = vpop.f32.mrf.mxu1  ;;  %v1739_v37 = vpop.f32.mrf.mxu0 }
 0x7e8   :  { %v3732_v35 = vmul.f32 -1.442695, %v1812_v33  ;;  %v1819_v38 = vadd.f32 %v3730_v36, %v1739_v37 }
 0x7ea   :  { %4784 = vpow2.f32 %v3732_v35  ;;  %v3733_v39 = vmul.f32 -1.442695, %v1819_v38 }
 0x7ec   :  { %4786 = vpow2.f32 %v3733_v39 }
 0x7f7   :  { %v4785_v40 = vpop.eup %4784 }
 0x7f8   :  { %v1816_v41 = vadd.f32 1.0, %v4785_v40 }
 0x7f9   :  { %v4787_v42 = vpop.eup %4786 }
 0x7fa   :  { %4788 = vrcp.f32 %v1816_v41  ;;  %v1823_v34 = vadd.f32 1.0, %v4787_v42 }
 0x807   :  { %v4789_v16 = vpop.eup %4788 }
 0x808   :  { %v1827_v21 = vmul.f32 %v4789_v16, %v1826_v43  ;;  %v7060_v43 = vld [vmem:[#allocation22_spill] sm:$0xff]  ;;  %v1975_v16 = vpop.f32.mrf.mxu0 }
 0x80a   :  { %v1828_v33 = vadd.f32 %v3731_v18, %v1827_v21  ;;  %v1977_v32 = vpop.f32.mrf.mxu0 }
 0x80c   :  { %4790 = vtanh.f32 %v1828_v33  ;;  %v6265_v40 = vpop.f32.mrf.mxu0 }
 0x80d   :  { %4792 = vrcp.f32 %v1823_v34  ;;  %7061 = vst [vmem:[#allocation25_spill] sm:$0xff] %v6265_v40  ;;  %v6277_v34 = vpop.f32.mrf.mxu1 }
 0x80e   :  { %v6267_v41 = vpop.f32.mrf.mxu0  ;;  %7067 = vst [vmem:[#allocation31_spill] sm:$0xff] %v6277_v34 }
 0x80f   :  { %7062 = vst [vmem:[#allocation26_spill] sm:$0xff] %v6267_v41  ;;  %v1894_v41 = vlaneseq }
 0x810   :  { %v6269_v42 = vpop.f32.mrf.mxu0 }
 0x811   :  { %7063 = vst [vmem:[#allocation27_spill] sm:$0xff] %v6269_v42 }
 0x812   :  { %v6271_v18 = vpop.f32.mrf.mxu0 }
 0x813   :  { %7064 = vst [vmem:[#allocation28_spill] sm:$0xff] %v6271_v18  ;;  %v1895_v18 = vshrl.u32 %v1894_v41, 7 }
 0x814   :  { %v6273_v21 = vpop.f32.mrf.mxu0 }
 0x815   :  { %7065 = vst [vmem:[#allocation29_spill] sm:$0xff] %v6273_v21  ;;  %v1896_v34 = vsub.s32 0, %v1895_v18 }
 0x816   :  { %v6275_v33 = vpop.f32.mrf.mxu0 }
 0x817   :  { %7066 = vst [vmem:[#allocation30_spill] sm:$0xff] %v6275_v33 }
 0x819   :  { %v4791_v35 = vpop.eup %4790 }
 0x81a   :  { %v1830_v36 = vsub.f32 %v5989_v59, %v4791_v35  ;;  %v4793_v37 = vpop.eup %4792  ;;  %v7059_v59 = vld [vmem:[#allocation24_spill] sm:$0xff] }
 0x81c   :  { %v1831_v38 = vmul.f32 %v4793_v37, %v1830_v36  ;;  %v2088_v36 = vpop.f32.mrf.mxu1 }
 0x81e   :  { %v1832_v39 = vadd.f32 %v4791_v35, %v1831_v38  ;;  %v6279_v35 = vpop.f32.mrf.mxu0  ;;  %v6283_v38 = vpop.f32.mrf.mxu1 }
 0x81f   :  { %7068 = vst [vmem:[#allocation32_spill] sm:$0xff] %v6279_v35  ;;  %7070 = vst [vmem:[#allocation34_spill] sm:$0xff] %v6283_v38  ;;  %v1892_v35 = vld [vmem:[%s6994_s5] sm:$0x7] }
 0x820   :  { %2016 = vmatmul.mubr.f32.gmra.mxu0 %v1832_v39  ;;  %1835 = vst [vmem:[#allocation11] sm:$0xff] %v1832_v39  ;;  %4387 = vmatmul.mubr.f32.gmra.mxu1 %v1832_v39  ;;  %v6281_v37 = vpop.f32.mrf.mxu0  ;;  %v6287_v40 = vpop.f32.mrf.mxu1 }
 0x821   :  { %2276 = vmatprep.mubr.f32.mxu0 %v7043_v0  ;;  %4421 = vmatprep.mubr.msk.f32.mxu1 %vm5060_vm0, %v7043_v0  ;;  %7069 = vst [vmem:[#allocation33_spill] sm:$0xff] %v6281_v37  ;;  %7072 = vst [vmem:[#allocation36_spill] sm:$0xff] %v6287_v40 }
 0x822   :  { %v6285_v39 = vpop.f32.mrf.mxu0  ;;  %v6291_v21 = vpop.f32.mrf.mxu1 }
 0x823   :  { %7071 = vst [vmem:[#allocation35_spill] sm:$0xff] %v6285_v39  ;;  %7074 = vst [vmem:[#allocation38_spill] sm:$0xff] %v6291_v21  ;;  %v6302_v39 = vrot.slane %v1892_v35, %v1896_v34 }
 0x824   :  { %2277 = vmatmul.mubr.f32.vlgmr.msra.gmra.mxu0 %v6192_v61  ;;  %4422 = vmatmul.mubr.f32.vlgmr.msra.gmra.mxu1 %v6192_v61  ;;  %v6289_v42 = vpop.f32.mrf.mxu0  ;;  %v6298_v37 = vpop.f32.mrf.mxu1 }
 0x825   :  { %2380 = vmatpush1.msra.mxu0 %v6019_v45  ;;  %4425 = vmatpush3.msra.mxu1 %v6109_v62  ;;  %7073 = vst [vmem:[#allocation37_spill] sm:$0xff] %v6289_v42  ;;  %7076 = vst [vmem:[#allocation40_spill] sm:$0xff] %v6298_v37 }
 0x826   :  { %2381 = vmatprep.subr.mxu0 %v6022_v23  ;;  %4426 = vmatprep.subr.mxu1 %v7043_v0  ;;  %v6293_v33 = vpop.f32.mrf.mxu0  ;;  %7078 = vst [vmem:[#allocation42_spill] sm:$0xff] %v6302_v39 }
 0x827   :  { %2382 = vmatpush1.msra.mxu0 %v6025_v20  ;;  %4427 = vmatpush3.msra.mxu1 %v6115_v9  ;;  %7075 = vst [vmem:[#allocation39_spill] sm:$0xff] %v6293_v33  ;;  %v1976_v33 = vadd.f32 %v1975_v16, %v6302_v39  ;;  %v6319_v16 = vld [vmem:[%s6996_s7] ss:$0 sm:$0xff] }
 0x828   :  { %2383 = vmatprep.subr.mxu0 %v6028_v19  ;;  %4428 = vmatprep.subr.mxu1 %v7043_v0  ;;  %v6300_v38 = vpop.f32.mrf.mxu0 }
 0x829   :  { %2384 = vmatpush1.msra.mxu0 %v6031_v46  ;;  %4429 = vmatpush3.msra.mxu1 %v6117_v29  ;;  %7077 = vst [vmem:[#allocation41_spill] sm:$0xff] %v6300_v38 }
 0x82a   :  { %2385 = vmatprep.subr.mxu0 %v6034_v47  ;;  %4430 = vmatprep.subr.mxu1 %v7043_v0 }
 0x82b   :  { %2386 = vmatpush1.msra.mxu0 %v6037_v48  ;;  %4431 = vmatpush3.msra.mxu1 %v6122_v57 }
 0x82c   :  { %2387 = vmatprep.subr.mxu0 %v6040_v49  ;;  %4432 = vmatprep.subr.mxu1 %v7043_v0 }
 0x82d   :  { %2388 = vmatpush1.msra.mxu0 %v6043_v63  ;;  %4433 = vmatpush3.msra.mxu1 %v6127_v14 }
 0x82e   :  { %2389 = vmatprep.subr.mxu0 %v6046_v1  ;;  %4434 = vmatprep.subr.mxu1 %v7043_v0 }
 0x82f   :  { %2390 = vmatpush1.msra.mxu0 %v6049_v58  ;;  %4435 = vmatpush3.msra.mxu1 %v6131_v10 }
 0x830   :  { %2391 = vmatprep.subr.mxu0 %v6052_v60  ;;  %4436 = vmatprep.subr.mxu1 %v7043_v0 }
 0x831   :  { %2392 = vmatpush1.msra.mxu0 %v6055_v44  ;;  %4437 = vmatpush3.msra.mxu1 %v6135_v22 }
 0x832   :  { %2393 = vmatprep.subr.mxu0 %v6058_v56  ;;  %4438 = vmatprep.subr.mxu1 %v7043_v0 }
 0x833   :  { %2394 = vmatpush1.msra.mxu0 %v6061_v50  ;;  %4439 = vmatpush3.msra.mxu1 %v6139_v27 }
 0x834   :  { %2395 = vmatprep.subr.mxu0 %v6064_v51  ;;  %4440 = vmatprep.subr.mxu1 %v7043_v0 }
 0x835   :  { %2396 = vmatpush1.msra.mxu0 %v6067_v52  ;;  %4441 = vmatpush3.msra.mxu1 %v6143_v28 }
 0x836   :  { %2397 = vmatprep.subr.mxu0 %v6070_v53  ;;  %4442 = vmatprep.subr.mxu1 %v7043_v0 }
 0x837   :  { %2398 = vmatpush1.msra.mxu0 %v6073_v54  ;;  %4443 = vmatpush3.msra.mxu1 %v6147_v11 }
 0x838   :  { %2399 = vmatprep.subr.mxu0 %v6076_v55  ;;  %4444 = vmatprep.subr.mxu1 %v7043_v0 }
 0x839   :  { %2400 = vmatpush1.msra.mxu0 %v6079_v2  ;;  %4445 = vmatpush3.msra.mxu1 %v6151_v13 }
 0x83a   :  { %2401 = vmatprep.subr.mxu0 %v6082_v3  ;;  %4446 = vmatprep.subr.mxu1 %v7043_v0 }
 0x83b   :  { %2402 = vmatpush1.msra.mxu0 %v6085_v4  ;;  %4447 = vmatpush3.msra.mxu1 %v6155_v15 }
 0x83c   :  { %2403 = vmatprep.subr.mxu0 %v6088_v5  ;;  %4448 = vmatprep.subr.mxu1 %v7043_v0 }
 0x83d   :  { %2404 = vmatpush1.msra.mxu0 %v6091_v6  ;;  %4449 = vmatpush3.msra.mxu1 %v6159_v17 }
 0x83e   :  { %2405 = vmatprep.subr.mxu0 %v6094_v7  ;;  %4450 = vmatprep.subr.mxu1 %v7043_v0 }
 0x83f   :  { %2406 = vmatpush1.msra.mxu0 %v6097_v8  ;;  %4451 = vmatpush3.msra.mxu1 %v6163_v30 }
 0x840   :  { %2407 = vmatprep.subr.mxu0 %v6100_v12  ;;  %4452 = vmatprep.subr.mxu1 %v7043_v0 }
 0x841   :  { %2408 = vmatpush1.msra.mxu0 %v6102_v24  ;;  %4453 = vmatpush3.msra.mxu1 %v6167_v31 }
 0x842   :  { %2409 = vmatprep.subr.mxu0 %v6104_v25  ;;  %4454 = vmatprep.subr.mxu1 %v7043_v0  ;;  %v1900_v25 = vsub.s32 1, %v1895_v18 }
 0x843   :  { %2410 = vmatpush1.msra.mxu0 %v6107_v26  ;;  %2443 = vmatprep.mubr.f32.mxu0 %v7043_v0 }
 0x844   :  { %4455 = vmatpush3.msra.mxu1 %v7059_v59  ;;  %4456 = vmatprep.mubr.msk.f32.mxu1 %vm5060_vm0, %v7043_v0  ;;  %v6313_v38 = vrot.slane %v1892_v35, %v1900_v25 }
 0x845   :  { %2546 = vmatprep.subr.mxu0 %v7060_v43  ;;  %4459 = vmatprep.subr.mxu1 %v7043_v0 }
 0x8e0   :  { %v6304_v43 = vpop.f32.mrf.mxu0  ;;  %v6306_v40 = vpop.f32.mrf.mxu1 }
 0x8e1   :  { %7079 = vst [vmem:[#allocation43_spill] sm:$0xff] %v6304_v43  ;;  %7080 = vst [vmem:[#allocation44_spill] sm:$0xff] %v6306_v40  ;;  %v1978_v43 = vadd.f32 %v1977_v32, %v6313_v38 }
 0x8e2   :  { %v6308_v41 = vpop.f32.mrf.mxu0  ;;  %v6310_v21 = vpop.f32.mrf.mxu1 }
 0x8e3   :  { %7081 = vst [vmem:[#allocation45_spill] sm:$0xff] %v6308_v41  ;;  %7082 = vst [vmem:[#allocation46_spill] sm:$0xff] %v6310_v21 }
 0x8e4   :  { %v2278_v42 = vpop.f32.mrf.mxu0  ;;  %v2349_v59 = vpop.f32.mrf.mxu1 }
 0x8e5   :  { %v2353_v26 = vadd.f32 %v2278_v42, %v1976_v33  ;;  %v1904_v42 = vsub.s32 2, %v1895_v18  ;;  %v7085_v18 = vld [vmem:[#allocation23_spill] sm:$0xff] }
 0x8e6   :  { %v4423_v31 = vpop.f32.mrf.mxu1  ;;  %v2280_v34 = vpop.f32.mrf.mxu0 }
 0x8e7   :  { %v3735_v37 = vmul.f32 -1.442695, %v2353_v26  ;;  %v2360_v24 = vadd.f32 %v2280_v34, %v1978_v43  ;;  %v2367_v26 = vadd.f32 %v6319_v16, %v2349_v59  ;;  %v6322_v25 = vrot.slane %v1892_v35, %v1904_v42  ;;  %v7084_v59 = vld [vmem:[#allocation18_spill] sm:$0xff]  ;;  %v7086_v35 = vld [vmem:[#allocation19_spill] sm:$0xff]  ;;  %v7088_v42 = vld [vmem:[#allocation24_spill] sm:$0xff] }
 0x8e9   :  { %4794 = vpow2.f32 %v3735_v37  ;;  %v3736_v40 = vmul.f32 -1.442695, %v2360_v24  ;;  %v2089_v32 = vadd.f32 %v2088_v36, %v6322_v25  ;;  %v7087_v36 = vld [vmem:[#allocation20_spill] sm:$0xff] }
 0x8eb   :  { %4796 = vpow2.f32 %v3736_v40 }
 0x8f6   :  { %v4795_v12 = vpop.eup %4794 }
 0x8f7   :  { %v2357_v41 = vadd.f32 1.0, %v4795_v12 }
 0x8f8   :  { %v4797_v31 = vpop.eup %4796 }
 0x8f9   :  { %4798 = vrcp.f32 %v2357_v41  ;;  %v2364_v24 = vadd.f32 1.0, %v4797_v31  ;;  %v7090_v31 = vld [vmem:[#allocation25_spill] sm:$0xff] }
 0x906   :  { %v4799_v33 = vpop.eup %4798 }
 0x907   :  { %v2368_v43 = vmul.f32 %v4799_v33, %v2367_v26  ;;  %v7089_v26 = vld [vmem:[#allocation22_spill] sm:$0xff]  ;;  %v1982_v33 = vadd.f32 %v7090_v31, %v6302_v39  ;;  %v7092_v39 = vld [vmem:[#allocation31_spill] sm:$0xff] }
 0x909   :  { %v2369_v37 = vadd.f32 %v2368_v43, %v2089_v32 }
 0x90b   :  { %4800 = vtanh.f32 %v2369_v37 }
 0x90c   :  { %4802 = vrcp.f32 %v2364_v24 }
 0x918   :  { %v4801_v12 = vpop.eup %4800 }
 0x919   :  { %v2371_v40 = vsub.f32 %v6192_v61, %v4801_v12  ;;  %v4803_v41 = vpop.eup %4802  ;;  %v7083_v61 = vld [vmem:[#allocation21_spill] sm:$0xff] }
 0x91b   :  { %v2372_v34 = vmul.f32 %v4803_v41, %v2371_v40  ;;  %v7091_v41 = vld [vmem:[#allocation26_spill] sm:$0xff] }
 0x91d   :  { %v6326_v21 = vadd.f32 %v4801_v12, %v2372_v34  ;;  %v1984_v34 = vadd.f32 %v7091_v41, %v6313_v38 }
 0x91f   :  { %2444 = vmatmul.mubr.f32.vlgmr.msra.gmra.mxu0 %v6326_v21  ;;  %4457 = vmatmul.mubr.f32.vlgmr.msra.gmra.mxu1 %v6326_v21 }
 0x920   :  { %2547 = vmatpush1.msra.mxu0 %v6019_v45  ;;  %4460 = vmatpush3.msra.mxu1 %v6109_v62 }
 0x921   :  { %2548 = vmatprep.subr.mxu0 %v6022_v23  ;;  %4461 = vmatprep.subr.mxu1 %v7043_v0 }
 0x922   :  { %2549 = vmatpush1.msra.mxu0 %v6025_v20  ;;  %4462 = vmatpush3.msra.mxu1 %v6115_v9 }
 0x923   :  { %2550 = vmatprep.subr.mxu0 %v6028_v19  ;;  %4463 = vmatprep.subr.mxu1 %v7043_v0 }
 0x924   :  { %2551 = vmatpush1.msra.mxu0 %v6031_v46  ;;  %4464 = vmatpush3.msra.mxu1 %v6117_v29 }
 0x925   :  { %2552 = vmatprep.subr.mxu0 %v6034_v47  ;;  %4465 = vmatprep.subr.mxu1 %v7043_v0 }
 0x926   :  { %2553 = vmatpush1.msra.mxu0 %v6037_v48  ;;  %4466 = vmatpush3.msra.mxu1 %v6122_v57 }
 0x927   :  { %2554 = vmatprep.subr.mxu0 %v6040_v49  ;;  %4467 = vmatprep.subr.mxu1 %v7043_v0 }
 0x928   :  { %2555 = vmatpush1.msra.mxu0 %v6043_v63  ;;  %4468 = vmatpush3.msra.mxu1 %v6127_v14 }
 0x929   :  { %2556 = vmatprep.subr.mxu0 %v6046_v1  ;;  %4469 = vmatprep.subr.mxu1 %v7043_v0 }
 0x92a   :  { %2557 = vmatpush1.msra.mxu0 %v6049_v58  ;;  %4470 = vmatpush3.msra.mxu1 %v6131_v10 }
 0x92b   :  { %2558 = vmatprep.subr.mxu0 %v6052_v60  ;;  %4471 = vmatprep.subr.mxu1 %v7043_v0 }
 0x92c   :  { %2559 = vmatpush1.msra.mxu0 %v6055_v44  ;;  %4472 = vmatpush3.msra.mxu1 %v6135_v22 }
 0x92d   :  { %2560 = vmatprep.subr.mxu0 %v6058_v56  ;;  %4473 = vmatprep.subr.mxu1 %v7043_v0 }
 0x92e   :  { %2561 = vmatpush1.msra.mxu0 %v6061_v50  ;;  %4474 = vmatpush3.msra.mxu1 %v6139_v27 }
 0x92f   :  { %2562 = vmatprep.subr.mxu0 %v6064_v51  ;;  %4475 = vmatprep.subr.mxu1 %v7043_v0 }
 0x930   :  { %2563 = vmatpush1.msra.mxu0 %v6067_v52  ;;  %4476 = vmatpush3.msra.mxu1 %v6143_v28 }
 0x931   :  { %2564 = vmatprep.subr.mxu0 %v6070_v53  ;;  %4477 = vmatprep.subr.mxu1 %v7043_v0 }
 0x932   :  { %2565 = vmatpush1.msra.mxu0 %v6073_v54  ;;  %4478 = vmatpush3.msra.mxu1 %v6147_v11 }
 0x933   :  { %2566 = vmatprep.subr.mxu0 %v6076_v55  ;;  %4479 = vmatprep.subr.mxu1 %v7043_v0 }
 0x934   :  { %2567 = vmatpush1.msra.mxu0 %v6079_v2  ;;  %4480 = vmatpush3.msra.mxu1 %v6151_v13 }
 0x935   :  { %2568 = vmatprep.subr.mxu0 %v6082_v3  ;;  %4481 = vmatprep.subr.mxu1 %v7043_v0 }
 0x936   :  { %2569 = vmatpush1.msra.mxu0 %v6085_v4  ;;  %4482 = vmatpush3.msra.mxu1 %v6155_v15 }
 0x937   :  { %2570 = vmatprep.subr.mxu0 %v6088_v5  ;;  %4483 = vmatprep.subr.mxu1 %v7043_v0 }
 0x938   :  { %2571 = vmatpush1.msra.mxu0 %v6091_v6  ;;  %4484 = vmatpush3.msra.mxu1 %v6159_v17 }
 0x939   :  { %2572 = vmatprep.subr.mxu0 %v6094_v7  ;;  %4485 = vmatprep.subr.mxu1 %v7043_v0 }
 0x93a   :  { %2573 = vmatpush1.msra.mxu0 %v6097_v8  ;;  %4486 = vmatpush3.msra.mxu1 %v6163_v30 }
 0x93b   :  { %2574 = vmatprep.subr.mxu0 %v7083_v61  ;;  %4487 = vmatprep.subr.mxu1 %v7043_v0 }
 0x93c   :  { %2575 = vmatpush1.msra.mxu0 %v7084_v59  ;;  %4488 = vmatpush3.msra.mxu1 %v7085_v18 }
 0x93d   :  { %2576 = vmatprep.subr.mxu0 %v7086_v35  ;;  %4489 = vmatprep.subr.mxu1 %v7043_v0 }
 0x93e   :  { %2577 = vmatpush1.msra.mxu0 %v7087_v36  ;;  %2610 = vmatprep.mubr.f32.mxu0 %v7043_v0 }
 0x93f   :  { %4490 = vmatpush3.msra.mxu1 %v7088_v42  ;;  %4491 = vmatprep.mubr.msk.f32.mxu1 %vm5060_vm0, %v7043_v0 }
 0x940   :  { %2713 = vmatprep.subr.mxu0 %v7089_v26  ;;  %4494 = vmatprep.subr.mxu1 %v7043_v0 }
 0x9df   :  { %v2445_v32 = vpop.f32.mrf.mxu0  ;;  %v2516_v43 = vpop.f32.mrf.mxu1 }
 0x9e0   :  { %v2520_v24 = vadd.f32 %v2445_v32, %v1982_v33  ;;  %v2534_v59 = vadd.f32 %v6319_v16, %v2516_v43  ;;  %v2094_v33 = vadd.f32 %v7092_v39, %v6322_v25  ;;  %v7094_v39 = vld [vmem:[#allocation23_spill] sm:$0xff]  ;;  %v7099_v43 = vld [vmem:[#allocation42_spill] sm:$0xff] }
 0x9e1   :  { %v4458_v37 = vpop.f32.mrf.mxu1  ;;  %v2447_v40 = vpop.f32.mrf.mxu0 }
 0x9e2   :  { %v3737_v12 = vmul.f32 -1.442695, %v2520_v24  ;;  %v2527_v42 = vadd.f32 %v2447_v40, %v1984_v34  ;;  %v7100_v34 = vld [vmem:[#allocation27_spill] sm:$0xff] }
 0x9e4   :  { %4804 = vpow2.f32 %v3737_v12  ;;  %v3738_v36 = vmul.f32 -1.442695, %v2527_v42 }
 0x9e6   :  { %4806 = vpow2.f32 %v3738_v36  ;;  %v7097_v36 = vld [vmem:[#allocation24_spill] sm:$0xff] }
 0x9f1   :  { %v4805_v35 = vpop.eup %4804 }
 0x9f2   :  { %v2524_v18 = vadd.f32 1.0, %v4805_v35 }
 0x9f3   :  { %v4807_v26 = vpop.eup %4806 }
 0x9f4   :  { %4808 = vrcp.f32 %v2524_v18  ;;  %v2531_v37 = vadd.f32 1.0, %v4807_v26  ;;  %v7096_v18 = vld [vmem:[#allocation20_spill] sm:$0xff]  ;;  %v7098_v26 = vld [vmem:[#allocation22_spill] sm:$0xff] }
 0xa01   :  { %v4809_v31 = vpop.eup %4808 }
 0xa02   :  { %v2535_v32 = vmul.f32 %v4809_v31, %v2534_v59  ;;  %v7095_v59 = vld [vmem:[#allocation19_spill] sm:$0xff]  ;;  %v1988_v31 = vadd.f32 %v7100_v34, %v7099_v43  ;;  %v7102_v43 = vld [vmem:[#allocation36_spill] sm:$0xff] }
 0xa04   :  { %v2536_v24 = vadd.f32 %v2535_v32, %v2094_v33 }
 0xa06   :  { %4810 = vtanh.f32 %v2536_v24 }
 0xa07   :  { %4812 = vrcp.f32 %v2531_v37 }
 0xa13   :  { %v4811_v12 = vpop.eup %4810 }
 0xa14   :  { %v2538_v40 = vsub.f32 %v6326_v21, %v4811_v12  ;;  %v4813_v42 = vpop.eup %4812  ;;  %v7093_v21 = vld [vmem:[#allocation18_spill] sm:$0xff] }
 0xa16   :  { %v2539_v41 = vmul.f32 %v4813_v42, %v2538_v40  ;;  %v7101_v42 = vld [vmem:[#allocation28_spill] sm:$0xff] }
 0xa18   :  { %v6405_v35 = vadd.f32 %v4811_v12, %v2539_v41  ;;  %v1990_v41 = vadd.f32 %v7101_v42, %v6313_v38 }
 0xa1a   :  { %2611 = vmatmul.mubr.f32.vlgmr.msra.gmra.mxu0 %v6405_v35  ;;  %4492 = vmatmul.mubr.f32.vlgmr.msra.gmra.mxu1 %v6405_v35 }
 0xa1b   :  { %2714 = vmatpush1.msra.mxu0 %v6019_v45  ;;  %4495 = vmatpush3.msra.mxu1 %v6109_v62 }
 0xa1c   :  { %2715 = vmatprep.subr.mxu0 %v6022_v23  ;;  %4496 = vmatprep.subr.mxu1 %v7043_v0 }
 0xa1d   :  { %2716 = vmatpush1.msra.mxu0 %v6025_v20  ;;  %4497 = vmatpush3.msra.mxu1 %v6115_v9 }
 0xa1e   :  { %2717 = vmatprep.subr.mxu0 %v6028_v19  ;;  %4498 = vmatprep.subr.mxu1 %v7043_v0 }
 0xa1f   :  { %2718 = vmatpush1.msra.mxu0 %v6031_v46  ;;  %4499 = vmatpush3.msra.mxu1 %v6117_v29 }
 0xa20   :  { %2719 = vmatprep.subr.mxu0 %v6034_v47  ;;  %4500 = vmatprep.subr.mxu1 %v7043_v0 }
 0xa21   :  { %2720 = vmatpush1.msra.mxu0 %v6037_v48  ;;  %4501 = vmatpush3.msra.mxu1 %v6122_v57 }
 0xa22   :  { %2721 = vmatprep.subr.mxu0 %v6040_v49  ;;  %4502 = vmatprep.subr.mxu1 %v7043_v0 }
 0xa23   :  { %2722 = vmatpush1.msra.mxu0 %v6043_v63  ;;  %4503 = vmatpush3.msra.mxu1 %v6127_v14 }
 0xa24   :  { %2723 = vmatprep.subr.mxu0 %v6046_v1  ;;  %4504 = vmatprep.subr.mxu1 %v7043_v0 }
 0xa25   :  { %2724 = vmatpush1.msra.mxu0 %v6049_v58  ;;  %4505 = vmatpush3.msra.mxu1 %v6131_v10 }
 0xa26   :  { %2725 = vmatprep.subr.mxu0 %v6052_v60  ;;  %4506 = vmatprep.subr.mxu1 %v7043_v0 }
 0xa27   :  { %2726 = vmatpush1.msra.mxu0 %v6055_v44  ;;  %4507 = vmatpush3.msra.mxu1 %v6135_v22 }
 0xa28   :  { %2727 = vmatprep.subr.mxu0 %v6058_v56  ;;  %4508 = vmatprep.subr.mxu1 %v7043_v0 }
 0xa29   :  { %2728 = vmatpush1.msra.mxu0 %v6061_v50  ;;  %4509 = vmatpush3.msra.mxu1 %v6139_v27 }
 0xa2a   :  { %2729 = vmatprep.subr.mxu0 %v6064_v51  ;;  %4510 = vmatprep.subr.mxu1 %v7043_v0 }
 0xa2b   :  { %2730 = vmatpush1.msra.mxu0 %v6067_v52  ;;  %4511 = vmatpush3.msra.mxu1 %v6143_v28 }
 0xa2c   :  { %2731 = vmatprep.subr.mxu0 %v6070_v53  ;;  %4512 = vmatprep.subr.mxu1 %v7043_v0 }
 0xa2d   :  { %2732 = vmatpush1.msra.mxu0 %v6073_v54  ;;  %4513 = vmatpush3.msra.mxu1 %v6147_v11 }
 0xa2e   :  { %2733 = vmatprep.subr.mxu0 %v6076_v55  ;;  %4514 = vmatprep.subr.mxu1 %v7043_v0 }
 0xa2f   :  { %2734 = vmatpush1.msra.mxu0 %v6079_v2  ;;  %4515 = vmatpush3.msra.mxu1 %v6151_v13 }
 0xa30   :  { %2735 = vmatprep.subr.mxu0 %v6082_v3  ;;  %4516 = vmatprep.subr.mxu1 %v7043_v0 }
 0xa31   :  { %2736 = vmatpush1.msra.mxu0 %v6085_v4  ;;  %4517 = vmatpush3.msra.mxu1 %v6155_v15 }
 0xa32   :  { %2737 = vmatprep.subr.mxu0 %v6088_v5  ;;  %4518 = vmatprep.subr.mxu1 %v7043_v0 }
 0xa33   :  { %2738 = vmatpush1.msra.mxu0 %v6091_v6  ;;  %4519 = vmatpush3.msra.mxu1 %v6159_v17 }
 0xa34   :  { %2739 = vmatprep.subr.mxu0 %v6094_v7  ;;  %4520 = vmatprep.subr.mxu1 %v7043_v0 }
 0xa35   :  { %2740 = vmatpush1.msra.mxu0 %v6097_v8  ;;  %4521 = vmatpush3.msra.mxu1 %v6163_v30 }
 0xa36   :  { %2741 = vmatprep.subr.mxu0 %v7083_v61  ;;  %4522 = vmatprep.subr.mxu1 %v7043_v0 }
 0xa37   :  { %2742 = vmatpush1.msra.mxu0 %v7093_v21  ;;  %4523 = vmatpush3.msra.mxu1 %v7094_v39 }
 0xa38   :  { %2743 = vmatprep.subr.mxu0 %v7095_v59  ;;  %4524 = vmatprep.subr.mxu1 %v7043_v0 }
 0xa39   :  { %2744 = vmatpush1.msra.mxu0 %v7096_v18  ;;  %2777 = vmatprep.mubr.f32.mxu0 %v7043_v0 }
 0xa3a   :  { %4525 = vmatpush3.msra.mxu1 %v7097_v36  ;;  %4526 = vmatprep.mubr.msk.f32.mxu1 %vm5060_vm0, %v7043_v0 }
 0xa3b   :  { %2880 = vmatprep.subr.mxu0 %v7098_v26  ;;  %4529 = vmatprep.subr.mxu1 %v7043_v0 }
 0xada   :  { %v2612_v33 = vpop.f32.mrf.mxu0  ;;  %v2683_v32 = vpop.f32.mrf.mxu1 }
 0xadb   :  { %v2687_v24 = vadd.f32 %v2612_v33, %v1988_v31  ;;  %v2701_v21 = vadd.f32 %v6319_v16, %v2683_v32  ;;  %v2099_v31 = vadd.f32 %v7102_v43, %v6322_v25  ;;  %v6610_v43 = vld [vmem:[#allocation9 + $0x118] sm:$0xff] }
 0xadc   :  { %v4493_v37 = vpop.f32.mrf.mxu1  ;;  %v2614_v40 = vpop.f32.mrf.mxu0  ;;  %v6613_v32 = vld [vmem:[#allocation9 + $0xf8] sm:$0xff] }
 0xadd   :  { %v3739_v12 = vmul.f32 -1.442695, %v2687_v24  ;;  %v2694_v36 = vadd.f32 %v2614_v40, %v1990_v41  ;;  %v6617_v41 = vld [vmem:[#allocation9 + $0xf0] sm:$0xff] }
 0xadf   :  { %4814 = vpow2.f32 %v3739_v12  ;;  %v3740_v18 = vmul.f32 -1.442695, %v2694_v36 }
 0xae1   :  { %4816 = vpow2.f32 %v3740_v18  ;;  %v6607_v18 = vld [vmem:[#allocation9 + $0x108] sm:$0xff] }
 0xaec   :  { %v4815_v59 = vpop.eup %4814 }
 0xaed   :  { %v2691_v39 = vadd.f32 1.0, %v4815_v59 }
 0xaee   :  { %v4817_v26 = vpop.eup %4816 }
 0xaef   :  { %4818 = vrcp.f32 %v2691_v39  ;;  %v2698_v37 = vadd.f32 1.0, %v4817_v26  ;;  %v6603_v39 = vld [vmem:[#allocation9 + $0x110] sm:$0xff]  ;;  %v6620_v26 = vld [vmem:[#allocation9 + $0x100] sm:$0xff] }
 0xafc   :  { %v4819_v34 = vpop.eup %4818 }
 0xafd   :  { %v2702_v33 = vmul.f32 %v4819_v34, %v2701_v21  ;;  %v6600_v21 = vld [vmem:[#allocation9 + $0x130] sm:$0xff]  ;;  %v6623_v34 = vld [vmem:[#allocation9 + $0xe0] sm:$0xff] }
 0xaff   :  { %v2703_v24 = vadd.f32 %v2702_v33, %v2099_v31  ;;  %v6627_v31 = vld [vmem:[#allocation9 + $0xd8] sm:$0xff]  ;;  %v6630_v33 = vld [vmem:[#allocation9 + $0xe8] sm:$0xff] }
 0xb01   :  { %4820 = vtanh.f32 %v2703_v24  ;;  %v6633_v24 = vld [vmem:[#allocation9 + $0xc8] sm:$0xff] }
 0xb02   :  { %4822 = vrcp.f32 %v2698_v37  ;;  %v6637_v37 = vld [vmem:[#allocation9 + $0xc0] sm:$0xff] }
 0xb0e   :  { %v4821_v12 = vpop.eup %4820 }
 0xb0f   :  { %v2705_v40 = vsub.f32 %v6405_v35, %v4821_v12  ;;  %v4823_v36 = vpop.eup %4822  ;;  %v6593_v35 = vld [vmem:[#allocation9 + $0x128] sm:$0xff] }
 0xb11   :  { %v2706_v42 = vmul.f32 %v4823_v36, %v2705_v40  ;;  %v6643_v40 = vld [vmem:[#allocation9 + $0xb0] sm:$0xff]  ;;  %v6647_v36 = vld [vmem:[#allocation9 + $0xa8] sm:$0xff] }
 0xb13   :  { %v6484_v59 = vadd.f32 %v4821_v12, %v2706_v42  ;;  %v6640_v12 = vld [vmem:[#allocation9 + $0xd0] sm:$0xff]  ;;  %v6650_v42 = vld [vmem:[#allocation9 + $0xb8] sm:$0xff] }
 0xb15   :  { %2778 = vmatmul.mubr.f32.vlgmr.msra.gmra.mxu0 %v6484_v59  ;;  %4527 = vmatmul.mubr.f32.vlgmr.msra.gmra.mxu1 %v6484_v59 }
 0xb16   :  { %2881 = vmatpush1.msra.mxu0 %v6019_v45  ;;  %4530 = vmatpush3.msra.mxu1 %v6109_v62  ;;  %v7103_v45 = vld [vmem:[#allocation18_spill] sm:$0xff] }
 0xb17   :  { %2882 = vmatprep.subr.mxu0 %v6022_v23  ;;  %4531 = vmatprep.subr.mxu1 %v7043_v0  ;;  %v7104_v23 = vld [vmem:[#allocation23_spill] sm:$0xff] }
 0xb18   :  { %2883 = vmatpush1.msra.mxu0 %v6025_v20  ;;  %4532 = vmatpush3.msra.mxu1 %v6115_v9  ;;  %v7105_v20 = vld [vmem:[#allocation19_spill] sm:$0xff] }
 0xb19   :  { %2884 = vmatprep.subr.mxu0 %v6028_v19  ;;  %4533 = vmatprep.subr.mxu1 %v7043_v0  ;;  %v7106_v19 = vld [vmem:[#allocation20_spill] sm:$0xff] }
 0xb1a   :  { %2885 = vmatpush1.msra.mxu0 %v6031_v46  ;;  %4534 = vmatpush3.msra.mxu1 %v6117_v29  ;;  %v7107_v46 = vld [vmem:[#allocation24_spill] sm:$0xff] }
 0xb1b   :  { %2886 = vmatprep.subr.mxu0 %v6034_v47  ;;  %4535 = vmatprep.subr.mxu1 %v7043_v0  ;;  %v6553_v47 = vld [vmem:[#allocation9 + $0x170] sm:$0xff] }
 0xb1c   :  { %2887 = vmatpush1.msra.mxu0 %v6037_v48  ;;  %4536 = vmatpush3.msra.mxu1 %v6122_v57  ;;  %7108 = vst [vmem:[#allocation21_spill] sm:$0xff] %v6553_v47  ;;  %v7109_v48 = vld [vmem:[#allocation42_spill] sm:$0xff] }
 0xb1d   :  { %2888 = vmatprep.subr.mxu0 %v6040_v49  ;;  %4537 = vmatprep.subr.mxu1 %v7043_v0  ;;  %v7110_v49 = vld [vmem:[#allocation29_spill] sm:$0xff] }
 0xb1e   :  { %2889 = vmatpush1.msra.mxu0 %v6043_v63  ;;  %4538 = vmatpush3.msra.mxu1 %v6127_v14  ;;  %v1994_v63 = vadd.f32 %v7110_v49, %v7109_v48  ;;  %v6673_v49 = vld [vmem:[#allocation9 + $0x68] sm:$0xff] }
 0xb1f   :  { %2890 = vmatprep.subr.mxu0 %v6046_v1  ;;  %4539 = vmatprep.subr.mxu1 %v7043_v0 }
 0xb20   :  { %2891 = vmatpush1.msra.mxu0 %v6049_v58  ;;  %4540 = vmatpush3.msra.mxu1 %v6131_v10 }
 0xb21   :  { %2892 = vmatprep.subr.mxu0 %v6052_v60  ;;  %4541 = vmatprep.subr.mxu1 %v7043_v0 }
 0xb22   :  { %2893 = vmatpush1.msra.mxu0 %v6055_v44  ;;  %4542 = vmatpush3.msra.mxu1 %v6135_v22 }
 0xb23   :  { %2894 = vmatprep.subr.mxu0 %v6058_v56  ;;  %4543 = vmatprep.subr.mxu1 %v7043_v0 }
 0xb24   :  { %2895 = vmatpush1.msra.mxu0 %v6061_v50  ;;  %4544 = vmatpush3.msra.mxu1 %v6139_v27 }
 0xb25   :  { %2896 = vmatprep.subr.mxu0 %v6064_v51  ;;  %4545 = vmatprep.subr.mxu1 %v7043_v0  ;;  %v7111_v51 = vld [vmem:[#allocation30_spill] sm:$0xff] }
 0xb26   :  { %2897 = vmatpush1.msra.mxu0 %v6067_v52  ;;  %4546 = vmatpush3.msra.mxu1 %v6143_v28  ;;  %v1996_v52 = vadd.f32 %v7111_v51, %v6313_v38  ;;  %v6569_v28 = vld [vmem:[#allocation9 + $0x168] sm:$0xff]  ;;  %v6700_v51 = vld [vmem:[#allocation9 + $0x40] sm:$0xff] }
 0xb27   :  { %2898 = vmatprep.subr.mxu0 %v6070_v53  ;;  %4547 = vmatprep.subr.mxu1 %v7043_v0 }
 0xb28   :  { %2899 = vmatpush1.msra.mxu0 %v6073_v54  ;;  %4548 = vmatpush3.msra.mxu1 %v6147_v11  ;;  %v6572_v11 = vld [vmem:[#allocation9 + $0x178] sm:$0xff] }
 0xb29   :  { %2900 = vmatprep.subr.mxu0 %v6076_v55  ;;  %4549 = vmatprep.subr.mxu1 %v7043_v0 }
 0xb2a   :  { %2901 = vmatpush1.msra.mxu0 %v6079_v2  ;;  %4550 = vmatpush3.msra.mxu1 %v6151_v13  ;;  %v6575_v13 = vld [vmem:[#allocation9 + $0x158] sm:$0xff] }
 0xb2b   :  { %2902 = vmatprep.subr.mxu0 %v6082_v3  ;;  %4551 = vmatprep.subr.mxu1 %v7043_v0 }
 0xb2c   :  { %2903 = vmatpush1.msra.mxu0 %v6085_v4  ;;  %4552 = vmatpush3.msra.mxu1 %v6155_v15  ;;  %v6579_v15 = vld [vmem:[#allocation9 + $0x150] sm:$0xff] }
 0xb2d   :  { %2904 = vmatprep.subr.mxu0 %v6088_v5  ;;  %4553 = vmatprep.subr.mxu1 %v7043_v0 }
 0xb2e   :  { %2905 = vmatpush1.msra.mxu0 %v6091_v6  ;;  %4554 = vmatpush3.msra.mxu1 %v6159_v17  ;;  %v7112_v6 = vld [vmem:[#allocation34_spill] sm:$0xff]  ;;  %v6583_v17 = vld [vmem:[#allocation9 + $0x140] sm:$0xff] }
 0xb2f   :  { %2906 = vmatprep.subr.mxu0 %v6094_v7  ;;  %4555 = vmatprep.subr.mxu1 %v7043_v0  ;;  %v2104_v7 = vadd.f32 %v7112_v6, %v6322_v25 }
 0xb30   :  { %2907 = vmatpush1.msra.mxu0 %v6097_v8  ;;  %4556 = vmatpush3.msra.mxu1 %v6163_v30  ;;  %v6587_v30 = vld [vmem:[#allocation9 + $0x138] sm:$0xff] }
 0xb31   :  { %2908 = vmatprep.subr.mxu0 %v7083_v61  ;;  %4557 = vmatprep.subr.mxu1 %v7043_v0  ;;  %v6590_v61 = vld [vmem:[#allocation9 + $0x148] sm:$0xff] }
 0xb32   :  { %2909 = vmatpush1.msra.mxu0 %v7103_v45  ;;  %4558 = vmatpush3.msra.mxu1 %v7104_v23  ;;  %v6657_v45 = vld [vmem:[#allocation9 + $0x90] sm:$0xff]  ;;  %v6660_v23 = vld [vmem:[#allocation9 + $0xa0] sm:$0xff] }
 0xb33   :  { %2910 = vmatprep.subr.mxu0 %v7105_v20  ;;  %4559 = vmatprep.subr.mxu1 %v7043_v0  ;;  %v6663_v20 = vld [vmem:[#allocation9 + $0x80] sm:$0xff] }
 0xb34   :  { %2911 = vmatpush1.msra.mxu0 %v7106_v19  ;;  %2944 = vmatprep.mubr.f32.mxu0 %v7043_v0  ;;  %v6667_v19 = vld [vmem:[#allocation9 + $0x78] sm:$0xff] }
 0xb35   :  { %4560 = vmatpush3.msra.mxu1 %v7107_v46  ;;  %4561 = vmatprep.mubr.msk.f32.mxu1 %vm5060_vm0, %v7043_v0  ;;  %v6670_v46 = vld [vmem:[#allocation9 + $0x88] sm:$0xff] }
 0xb36   :  { %3047 = vmatprep.subr.mxu0 %v6553_v47  ;;  %4564 = vmatprep.subr.mxu1 %v7043_v0 }
 0xbd5   :  { %v2779_v1 = vpop.f32.mrf.mxu0  ;;  %v2850_v58 = vpop.f32.mrf.mxu1 }
 0xbd6   :  { %v2854_v60 = vadd.f32 %v2779_v1, %v1994_v63  ;;  %v2868_v4 = vadd.f32 %v6319_v16, %v2850_v58  ;;  %v6677_v63 = vld [vmem:[#allocation9 + $0x60] sm:$0xff]  ;;  %v6680_v1 = vld [vmem:[#allocation9 + $0x70] sm:$0xff] }
 0xbd7   :  { %v4528_v44 = vpop.f32.mrf.mxu1  ;;  %v2781_v50 = vpop.f32.mrf.mxu0  ;;  %v6683_v58 = vld [vmem:[#allocation9 + $0x50] sm:$0xff] }
 0xbd8   :  { %v3741_v56 = vmul.f32 -1.442695, %v2854_v60  ;;  %v2861_v53 = vadd.f32 %v2781_v50, %v1996_v52  ;;  %v6687_v60 = vld [vmem:[#allocation9 + $0x48] sm:$0xff]  ;;  %v6690_v44 = vld [vmem:[#allocation9 + $0x58] sm:$0xff]  ;;  %v6697_v50 = vld [vmem:[#allocation9 + $0x30] sm:$0xff] }
 0xbd9   :  { %v6703_v52 = vld [vmem:[#allocation9 + $0x20] sm:$0xff] }
 0xbda   :  { %4824 = vpow2.f32 %v3741_v56  ;;  %v3742_v54 = vmul.f32 -1.442695, %v2861_v53  ;;  %v6693_v56 = vld [vmem:[#allocation9 + $0x38] sm:$0xff] }
 0xbdb   :  { %v6707_v53 = vld [vmem:[#allocation9 + $0x18] sm:$0xff] }
 0xbdc   :  { %4826 = vpow2.f32 %v3742_v54  ;;  %7113 = vst [vmem:[#allocation25_spill] sm:$0xff] %v6707_v53  ;;  %v6710_v54 = vld [vmem:[#allocation9 + $0x28] sm:$0xff] }
 0xbdd   :  { %7114 = vst [vmem:[#allocation26_spill] sm:$0xff] %v6710_v54 }
 0xbe7   :  { %v4825_v55 = vpop.eup %4824 }
 0xbe8   :  { %v2858_v2 = vadd.f32 1.0, %v4825_v55  ;;  %v6713_v55 = vld [vmem:[#allocation9 + $0x8] sm:$0xff] }
 0xbe9   :  { %v4827_v3 = vpop.eup %4826  ;;  %7115 = vst [vmem:[#allocation31_spill] sm:$0xff] %v6713_v55 }
 0xbea   :  { %4828 = vrcp.f32 %v2858_v2  ;;  %v2865_v29 = vadd.f32 1.0, %v4827_v3  ;;  %v6717_v2 = vld [vmem:[#allocation9] sm:$0xff]  ;;  %v6721_v3 = vld [vmem:[#allocation9 + $0x10] sm:$0xff] }
 0xbeb   :  { %7116 = vst [vmem:[#allocation22_spill] sm:$0xff] %v6717_v2  ;;  %7117 = vst [vmem:[#allocation27_spill] sm:$0xff] %v6721_v3 }
 0xbf7   :  { %v4829_v5 = vpop.eup %4828 }
 0xbf8   :  { %v2869_v8 = vmul.f32 %v4829_v5, %v2868_v4  ;;  %v7118_v4 = vld [vmem:[#allocation32_spill] sm:$0xff] }
 0xbf9   :  { %v2000_v5 = vadd.f32 %v7118_v4, %v7109_v48  ;;  %v7120_v48 = vld [vmem:[#allocation40_spill] sm:$0xff] }
 0xbfa   :  { %v2870_v62 = vadd.f32 %v2869_v8, %v2104_v7 }
 0xbfc   :  { %4830 = vtanh.f32 %v2870_v62 }
 0xbfd   :  { %4832 = vrcp.f32 %v2865_v29 }
 0xc09   :  { %v4831_v57 = vpop.eup %4830 }
 0xc0a   :  { %v2872_v14 = vsub.f32 %v6484_v59, %v4831_v57  ;;  %v4833_v10 = vpop.eup %4832  ;;  %v6653_v59 = vld [vmem:[#allocation9 + $0x98] sm:$0xff] }
 0xc0c   :  { %v2873_v22 = vmul.f32 %v4833_v10, %v2872_v14  ;;  %v7119_v14 = vld [vmem:[#allocation33_spill] sm:$0xff] }
 0xc0d   :  { %v2002_v10 = vadd.f32 %v7119_v14, %v6313_v38 }
 0xc0e   :  { %v6565_v27 = vadd.f32 %v4831_v57, %v2873_v22 }
 0xc10   :  { %2945 = vmatmul.mubr.f32.vlgmr.msra.gmra.mxu0 %v6565_v27  ;;  %4562 = vmatmul.mubr.f32.vlgmr.msra.gmra.mxu1 %v6565_v27 }
 0xc11   :  { %3048 = vmatpush1.msra.mxu0 %v6569_v28  ;;  %4565 = vmatpush3.msra.mxu1 %v6572_v11 }
 0xc12   :  { %3049 = vmatprep.subr.mxu0 %v6575_v13  ;;  %4566 = vmatprep.subr.mxu1 %v7043_v0 }
 0xc13   :  { %3050 = vmatpush1.msra.mxu0 %v6579_v15  ;;  %4567 = vmatpush3.msra.mxu1 %v6115_v9  ;;  %v6597_v9 = vld [vmem:[#allocation9 + $0x120] sm:$0xff] }
 0xc14   :  { %3051 = vmatprep.subr.mxu0 %v6583_v17  ;;  %4568 = vmatprep.subr.mxu1 %v7043_v0 }
 0xc15   :  { %3052 = vmatpush1.msra.mxu0 %v6587_v30  ;;  %4569 = vmatpush3.msra.mxu1 %v6590_v61 }
 0xc16   :  { %3053 = vmatprep.subr.mxu0 %v6593_v35  ;;  %4570 = vmatprep.subr.mxu1 %v7043_v0 }
 0xc17   :  { %3054 = vmatpush1.msra.mxu0 %v6597_v9  ;;  %4571 = vmatpush3.msra.mxu1 %v6600_v21 }
 0xc18   :  { %3055 = vmatprep.subr.mxu0 %v6603_v39  ;;  %4572 = vmatprep.subr.mxu1 %v7043_v0 }
 0xc19   :  { %3056 = vmatpush1.msra.mxu0 %v6607_v18  ;;  %4573 = vmatpush3.msra.mxu1 %v6610_v43 }
 0xc1a   :  { %3057 = vmatprep.subr.mxu0 %v6613_v32  ;;  %4574 = vmatprep.subr.mxu1 %v7043_v0 }
 0xc1b   :  { %3058 = vmatpush1.msra.mxu0 %v6617_v41  ;;  %4575 = vmatpush3.msra.mxu1 %v6620_v26 }
 0xc1c   :  { %3059 = vmatprep.subr.mxu0 %v6623_v34  ;;  %4576 = vmatprep.subr.mxu1 %v7043_v0 }
 0xc1d   :  { %3060 = vmatpush1.msra.mxu0 %v6627_v31  ;;  %4577 = vmatpush3.msra.mxu1 %v6630_v33 }
 0xc1e   :  { %3061 = vmatprep.subr.mxu0 %v6633_v24  ;;  %4578 = vmatprep.subr.mxu1 %v7043_v0 }
 0xc1f   :  { %3062 = vmatpush1.msra.mxu0 %v6637_v37  ;;  %4579 = vmatpush3.msra.mxu1 %v6640_v12 }
 0xc20   :  { %3063 = vmatprep.subr.mxu0 %v6643_v40  ;;  %4580 = vmatprep.subr.mxu1 %v7043_v0 }
 0xc21   :  { %3064 = vmatpush1.msra.mxu0 %v6647_v36  ;;  %4581 = vmatpush3.msra.mxu1 %v6650_v42 }
 0xc22   :  { %3065 = vmatprep.subr.mxu0 %v6653_v59  ;;  %4582 = vmatprep.subr.mxu1 %v7043_v0 }
 0xc23   :  { %3066 = vmatpush1.msra.mxu0 %v6657_v45  ;;  %4583 = vmatpush3.msra.mxu1 %v6660_v23 }
 0xc24   :  { %3067 = vmatprep.subr.mxu0 %v6663_v20  ;;  %4584 = vmatprep.subr.mxu1 %v7043_v0 }
 0xc25   :  { %3068 = vmatpush1.msra.mxu0 %v6667_v19  ;;  %4585 = vmatpush3.msra.mxu1 %v6670_v46 }
 0xc26   :  { %3069 = vmatprep.subr.mxu0 %v6673_v49  ;;  %4586 = vmatprep.subr.mxu1 %v7043_v0 }
 0xc27   :  { %3070 = vmatpush1.msra.mxu0 %v6677_v63  ;;  %4587 = vmatpush3.msra.mxu1 %v6680_v1 }
 0xc28   :  { %3071 = vmatprep.subr.mxu0 %v6683_v58  ;;  %4588 = vmatprep.subr.mxu1 %v7043_v0 }
 0xc29   :  { %3072 = vmatpush1.msra.mxu0 %v6687_v60  ;;  %4589 = vmatpush3.msra.mxu1 %v6690_v44 }
 0xc2a   :  { %3073 = vmatprep.subr.mxu0 %v6693_v56  ;;  %4590 = vmatprep.subr.mxu1 %v7043_v0 }
 0xc2b   :  { %3074 = vmatpush1.msra.mxu0 %v6697_v50  ;;  %4591 = vmatpush3.msra.mxu1 %v6700_v51 }
 0xc2c   :  { %3075 = vmatprep.subr.mxu0 %v6703_v52  ;;  %4592 = vmatprep.subr.mxu1 %v7043_v0 }
 0xc2d   :  { %3076 = vmatpush1.msra.mxu0 %v6707_v53  ;;  %4593 = vmatpush3.msra.mxu1 %v6710_v54 }
 0xc2e   :  { %3077 = vmatprep.subr.mxu0 %v6713_v55  ;;  %4594 = vmatprep.subr.mxu1 %v7043_v0 }
 0xc2f   :  { %3078 = vmatpush1.msra.mxu0 %v6717_v2  ;;  %3111 = vmatprep.mubr.f32.mxu0 %v7043_v0 }
 0xc30   :  { %4595 = vmatpush3.msra.mxu1 %v6721_v3  ;;  %4596 = vmatprep.mubr.msk.f32.mxu1 %vm5060_vm0, %v7043_v0 }
 0xc31   :  { %3214 = vmatprep.subr.mxu0 %v6553_v47  ;;  %4599 = vmatprep.subr.mxu1 %v7043_v0 }
 0xcd0   :  { %v2946_v6 = vpop.f32.mrf.mxu0  ;;  %v3017_v7 = vpop.f32.mrf.mxu1 }
 0xcd1   :  { %v3021_v8 = vadd.f32 %v2946_v6, %v2000_v5  ;;  %v3035_v54 = vadd.f32 %v6319_v16, %v3017_v7  ;;  %v2109_v5 = vadd.f32 %v7120_v48, %v6322_v25  ;;  %v7121_v48 = vld [vmem:[#allocation26_spill] sm:$0xff] }
 0xcd2   :  { %v4563_v62 = vpop.f32.mrf.mxu1  ;;  %v2948_v57 = vpop.f32.mrf.mxu0  ;;  %v7126_v7 = vld [vmem:[#allocation42_spill] sm:$0xff] }
 0xcd3   :  { %v3743_v29 = vmul.f32 -1.442695, %v3021_v8  ;;  %v3028_v22 = vadd.f32 %v2948_v57, %v2002_v10 }
 0xcd5   :  { %4834 = vpow2.f32 %v3743_v29  ;;  %v3744_v3 = vmul.f32 -1.442695, %v3028_v22  ;;  %v7127_v22 = vld [vmem:[#allocation35_spill] sm:$0xff] }
 0xcd7   :  { %4836 = vpow2.f32 %v3744_v3  ;;  %v7125_v3 = vld [vmem:[#allocation21_spill] sm:$0xff] }
 0xce2   :  { %v4835_v2 = vpop.eup %4834 }
 0xce3   :  { %v3025_v55 = vadd.f32 1.0, %v4835_v2 }
 0xce4   :  { %v4837_v47 = vpop.eup %4836 }
 0xce5   :  { %4838 = vrcp.f32 %v3025_v55  ;;  %v3032_v62 = vadd.f32 1.0, %v4837_v47  ;;  %v6745_v47 = vld [vmem:[#allocation9 + $0x160] sm:$0xff] }
 0xce6   :  { %v7124_v55 = vld [vmem:[#allocation27_spill] sm:$0xff] }
 0xcf2   :  { %v4839_v4 = vpop.eup %4838 }
 0xcf3   :  { %v3036_v6 = vmul.f32 %v4839_v4, %v3035_v54  ;;  %v7123_v54 = vld [vmem:[#allocation22_spill] sm:$0xff]  ;;  %v2006_v4 = vadd.f32 %v7127_v22, %v7126_v7 }
 0xcf4   :  { %v7129_v7 = vld [vmem:[#allocation38_spill] sm:$0xff] }
 0xcf5   :  { %v3037_v8 = vadd.f32 %v3036_v6, %v2109_v5 }
 0xcf7   :  { %4840 = vtanh.f32 %v3037_v8 }
 0xcf8   :  { %4842 = vrcp.f32 %v3032_v62 }
 0xd04   :  { %v4841_v29 = vpop.eup %4840 }
 0xd05   :  { %v3039_v57 = vsub.f32 %v6565_v27, %v4841_v29  ;;  %v4843_v14 = vpop.eup %4842  ;;  %v7122_v27 = vld [vmem:[#allocation31_spill] sm:$0xff] }
 0xd07   :  { %v3040_v10 = vmul.f32 %v4843_v14, %v3039_v57  ;;  %v7128_v14 = vld [vmem:[#allocation37_spill] sm:$0xff] }
 0xd09   :  { %v6736_v2 = vadd.f32 %v4841_v29, %v3040_v10  ;;  %v2008_v10 = vadd.f32 %v7128_v14, %v6313_v38 }
 0xd0b   :  { %3112 = vmatmul.mubr.f32.vlgmr.msra.gmra.mxu0 %v6736_v2  ;;  %4597 = vmatmul.mubr.f32.vlgmr.msra.gmra.mxu1 %v6736_v2 }
 0xd0c   :  { %3215 = vmatpush1.msra.mxu0 %v6569_v28  ;;  %4600 = vmatpush3.msra.mxu1 %v6572_v11 }
 0xd0d   :  { %3216 = vmatprep.subr.mxu0 %v6575_v13  ;;  %4601 = vmatprep.subr.mxu1 %v7043_v0 }
 0xd0e   :  { %3217 = vmatpush1.msra.mxu0 %v6579_v15  ;;  %4602 = vmatpush3.msra.mxu1 %v6745_v47 }
 0xd0f   :  { %3218 = vmatprep.subr.mxu0 %v6583_v17  ;;  %4603 = vmatprep.subr.mxu1 %v7043_v0 }
 0xd10   :  { %3219 = vmatpush1.msra.mxu0 %v6587_v30  ;;  %4604 = vmatpush3.msra.mxu1 %v6590_v61 }
 0xd11   :  { %3220 = vmatprep.subr.mxu0 %v6593_v35  ;;  %4605 = vmatprep.subr.mxu1 %v7043_v0 }
 0xd12   :  { %3221 = vmatpush1.msra.mxu0 %v6597_v9  ;;  %4606 = vmatpush3.msra.mxu1 %v6600_v21 }
 0xd13   :  { %3222 = vmatprep.subr.mxu0 %v6603_v39  ;;  %4607 = vmatprep.subr.mxu1 %v7043_v0 }
 0xd14   :  { %3223 = vmatpush1.msra.mxu0 %v6607_v18  ;;  %4608 = vmatpush3.msra.mxu1 %v6610_v43 }
 0xd15   :  { %3224 = vmatprep.subr.mxu0 %v6613_v32  ;;  %4609 = vmatprep.subr.mxu1 %v7043_v0 }
 0xd16   :  { %3225 = vmatpush1.msra.mxu0 %v6617_v41  ;;  %4610 = vmatpush3.msra.mxu1 %v6620_v26 }
 0xd17   :  { %3226 = vmatprep.subr.mxu0 %v6623_v34  ;;  %4611 = vmatprep.subr.mxu1 %v7043_v0 }
 0xd18   :  { %3227 = vmatpush1.msra.mxu0 %v6627_v31  ;;  %4612 = vmatpush3.msra.mxu1 %v6630_v33 }
 0xd19   :  { %3228 = vmatprep.subr.mxu0 %v6633_v24  ;;  %4613 = vmatprep.subr.mxu1 %v7043_v0 }
 0xd1a   :  { %3229 = vmatpush1.msra.mxu0 %v6637_v37  ;;  %4614 = vmatpush3.msra.mxu1 %v6640_v12 }
 0xd1b   :  { %3230 = vmatprep.subr.mxu0 %v6643_v40  ;;  %4615 = vmatprep.subr.mxu1 %v7043_v0 }
 0xd1c   :  { %3231 = vmatpush1.msra.mxu0 %v6647_v36  ;;  %4616 = vmatpush3.msra.mxu1 %v6650_v42 }
 0xd1d   :  { %3232 = vmatprep.subr.mxu0 %v6653_v59  ;;  %4617 = vmatprep.subr.mxu1 %v7043_v0 }
 0xd1e   :  { %3233 = vmatpush1.msra.mxu0 %v6657_v45  ;;  %4618 = vmatpush3.msra.mxu1 %v6660_v23 }
 0xd1f   :  { %3234 = vmatprep.subr.mxu0 %v6663_v20  ;;  %4619 = vmatprep.subr.mxu1 %v7043_v0 }
 0xd20   :  { %3235 = vmatpush1.msra.mxu0 %v6667_v19  ;;  %4620 = vmatpush3.msra.mxu1 %v6670_v46 }
 0xd21   :  { %3236 = vmatprep.subr.mxu0 %v6673_v49  ;;  %4621 = vmatprep.subr.mxu1 %v7043_v0 }
 0xd22   :  { %3237 = vmatpush1.msra.mxu0 %v6677_v63  ;;  %4622 = vmatpush3.msra.mxu1 %v6680_v1 }
 0xd23   :  { %3238 = vmatprep.subr.mxu0 %v6683_v58  ;;  %4623 = vmatprep.subr.mxu1 %v7043_v0 }
 0xd24   :  { %3239 = vmatpush1.msra.mxu0 %v6687_v60  ;;  %4624 = vmatpush3.msra.mxu1 %v6690_v44 }
 0xd25   :  { %3240 = vmatprep.subr.mxu0 %v6693_v56  ;;  %4625 = vmatprep.subr.mxu1 %v7043_v0 }
 0xd26   :  { %3241 = vmatpush1.msra.mxu0 %v6697_v50  ;;  %4626 = vmatpush3.msra.mxu1 %v6700_v51 }
 0xd27   :  { %3242 = vmatprep.subr.mxu0 %v6703_v52  ;;  %4627 = vmatprep.subr.mxu1 %v7043_v0 }
 0xd28   :  { %3243 = vmatpush1.msra.mxu0 %v6707_v53  ;;  %4628 = vmatpush3.msra.mxu1 %v7121_v48 }
 0xd29   :  { %3244 = vmatprep.subr.mxu0 %v7122_v27  ;;  %4629 = vmatprep.subr.mxu1 %v7043_v0 }
 0xd2a   :  { %3245 = vmatpush1.msra.mxu0 %v7123_v54  ;;  %3278 = vmatprep.mubr.f32.mxu0 %v7043_v0 }
 0xd2b   :  { %4630 = vmatpush3.msra.mxu1 %v7124_v55  ;;  %4631 = vmatprep.mubr.msk.f32.mxu1 %vm5060_vm0, %v7043_v0 }
 0xd2c   :  { %3381 = vmatprep.subr.mxu0 %v7125_v3  ;;  %4634 = vmatprep.subr.mxu1 %v7043_v0 }
 0xdcb   :  { %v3113_v5 = vpop.f32.mrf.mxu0  ;;  %v3184_v6 = vpop.f32.mrf.mxu1 }
 0xdcc   :  { %v3188_v8 = vadd.f32 %v3113_v5, %v2006_v4  ;;  %v3202_v53 = vadd.f32 %v6319_v16, %v3184_v6  ;;  %v2114_v4 = vadd.f32 %v7129_v7, %v6322_v25  ;;  %v7130_v16 = vld [vmem:[#allocation25_spill] sm:$0xff]  ;;  %v3545_v6 = vld [vmem:[%s6998_s9 + $0x8] sm:$0xff] }
 0xdcd   :  { %v4598_v62 = vpop.f32.mrf.mxu1  ;;  %v3115_v57 = vpop.f32.mrf.mxu0  ;;  %v3546_v7 = vld [vmem:[%s6998_s9 + $0x10] sm:$0xff] }
 0xdce   :  { %v3745_v29 = vmul.f32 -1.442695, %v3188_v8  ;;  %v3195_v55 = vadd.f32 %v3115_v57, %v2008_v10  ;;  %v3544_v10 = vld [vmem:[%s6998_s9] sm:$0xff] }
 0xdd0   :  { %4844 = vpow2.f32 %v3745_v29  ;;  %v3746_v54 = vmul.f32 -1.442695, %v3195_v55 }
 0xdd2   :  { %4846 = vpow2.f32 %v3746_v54  ;;  %v3547_v54 = vld [vmem:[%s6998_s9 + $0x18] sm:$0xff] }
 0xddd   :  { %v4845_v27 = vpop.eup %4844 }
 0xdde   :  { %v3192_v48 = vadd.f32 1.0, %v4845_v27 }
 0xddf   :  { %v4847_v3 = vpop.eup %4846 }
 0xde0   :  { %4848 = vrcp.f32 %v3192_v48  ;;  %v3199_v62 = vadd.f32 1.0, %v4847_v3  ;;  %v3548_v48 = vld [vmem:[%s6998_s9 + $0x20] sm:$0xff] }
 0xde1   :  { %v7139_v3 = vld [vmem:[#allocation43_spill] sm:$0xff] }
 0xded   :  { %v4849_v22 = vpop.eup %4848 }
 0xdee   :  { %v3203_v5 = vmul.f32 %v4849_v22, %v3202_v53  ;;  %v3551_v53 = vld [vmem:[%s6998_s9 + $0x38] sm:$0xff] }
 0xdf0   :  { %v3204_v8 = vadd.f32 %v3203_v5, %v2114_v4 }
 0xdf2   :  { %4850 = vtanh.f32 %v3204_v8 }
 0xdf3   :  { %4852 = vrcp.f32 %v3199_v62 }
 0xdff   :  { %v4851_v29 = vpop.eup %4850 }
 0xe00   :  { %v3206_v57 = vsub.f32 %v6736_v2, %v4851_v29  ;;  %v4853_v55 = vpop.eup %4852  ;;  %v3550_v2 = vld [vmem:[%s6998_s9 + $0x30] sm:$0xff] }
 0xe02   :  { %v3207_v14 = vmul.f32 %v4853_v55, %v3206_v57  ;;  %v7140_v55 = vld [vmem:[#allocation45_spill] sm:$0xff] }
 0xe04   :  { %v6817_v27 = vadd.f32 %v4851_v29, %v3207_v14  ;;  %v2020_v14 = vadd.f32 %v7140_v55, %v6313_v38 }
 0xe06   :  { %3279 = vmatmul.mubr.f32.vlgmr.msra.gmra.mxu0 %v6817_v27  ;;  %4632 = vmatmul.mubr.f32.vlgmr.msra.gmra.mxu1 %v6817_v27 }
 0xe07   :  { %3382 = vmatpush1.msra.mxu0 %v6569_v28  ;;  %4635 = vmatpush3.msra.mxu1 %v6572_v11  ;;  %v7131_v28 = vld [vmem:[#allocation26_spill] sm:$0xff]  ;;  %v7132_v11 = vld [vmem:[#allocation31_spill] sm:$0xff] }
 0xe08   :  { %3383 = vmatprep.subr.mxu0 %v6575_v13  ;;  %4636 = vmatprep.subr.mxu1 %v7043_v0  ;;  %v7133_v13 = vld [vmem:[#allocation22_spill] sm:$0xff] }
 0xe09   :  { %3384 = vmatpush1.msra.mxu0 %v6579_v15  ;;  %4637 = vmatpush3.msra.mxu1 %v6745_v47  ;;  %v7134_v15 = vld [vmem:[#allocation27_spill] sm:$0xff]  ;;  %v3549_v47 = vld [vmem:[%s6998_s9 + $0x28] sm:$0xff] }
 0xe0a   :  { %3385 = vmatprep.subr.mxu0 %v6583_v17  ;;  %4638 = vmatprep.subr.mxu1 %v7043_v0  ;;  %v7135_v17 = vld [vmem:[#allocation42_spill] sm:$0xff] }
 0xe0b   :  { %3386 = vmatpush1.msra.mxu0 %v6587_v30  ;;  %4639 = vmatpush3.msra.mxu1 %v6590_v61  ;;  %v7136_v30 = vld [vmem:[#allocation39_spill] sm:$0xff]  ;;  %v2018_v22 = vadd.f32 %v7139_v3, %v7135_v17 }
 0xe0c   :  { %3387 = vmatprep.subr.mxu0 %v6593_v35  ;;  %4640 = vmatprep.subr.mxu1 %v7043_v0  ;;  %v2012_v61 = vadd.f32 %v7136_v30, %v7135_v17  ;;  %v7141_v17 = vld [vmem:[#allocation44_spill] sm:$0xff] }
 0xe0d   :  { %3388 = vmatpush1.msra.mxu0 %v6597_v9  ;;  %4641 = vmatpush3.msra.mxu1 %v6600_v21  ;;  %v2124_v30 = vadd.f32 %v7141_v17, %v6322_v25 }
 0xe0e   :  { %3389 = vmatprep.subr.mxu0 %v6603_v39  ;;  %4642 = vmatprep.subr.mxu1 %v7043_v0 }
 0xe0f   :  { %3390 = vmatpush1.msra.mxu0 %v6607_v18  ;;  %4643 = vmatpush3.msra.mxu1 %v6610_v43 }
 0xe10   :  { %3391 = vmatprep.subr.mxu0 %v6613_v32  ;;  %4644 = vmatprep.subr.mxu1 %v7043_v0  ;;  %v7137_v32 = vld [vmem:[#allocation41_spill] sm:$0xff] }
 0xe11   :  { %3392 = vmatpush1.msra.mxu0 %v6617_v41  ;;  %4645 = vmatpush3.msra.mxu1 %v6620_v26  ;;  %v2014_v41 = vadd.f32 %v7137_v32, %v6313_v38 }
 0xe12   :  { %3393 = vmatprep.subr.mxu0 %v6623_v34  ;;  %4646 = vmatprep.subr.mxu1 %v7043_v0 }
 0xe13   :  { %3394 = vmatpush1.msra.mxu0 %v6627_v31  ;;  %4647 = vmatpush3.msra.mxu1 %v6630_v33 }
 0xe14   :  { %3395 = vmatprep.subr.mxu0 %v6633_v24  ;;  %4648 = vmatprep.subr.mxu1 %v7043_v0 }
 0xe15   :  { %3396 = vmatpush1.msra.mxu0 %v6637_v37  ;;  %4649 = vmatpush3.msra.mxu1 %v6640_v12  ;;  %v6894_v37 = vld [vmem:[%s6996_s7] ss:$0 sm:$0xff] }
 0xe16   :  { %3397 = vmatprep.subr.mxu0 %v6643_v40  ;;  %4650 = vmatprep.subr.mxu1 %v7043_v0 }
 0xe17   :  { %3398 = vmatpush1.msra.mxu0 %v6647_v36  ;;  %4651 = vmatpush3.msra.mxu1 %v6650_v42  ;;  %v7138_v36 = vld [vmem:[#allocation46_spill] sm:$0xff] }
 0xe18   :  { %3399 = vmatprep.subr.mxu0 %v6653_v59  ;;  %4652 = vmatprep.subr.mxu1 %v7043_v0  ;;  %v2119_v42 = vadd.f32 %v7138_v36, %v6322_v25 }
 0xe19   :  { %3400 = vmatpush1.msra.mxu0 %v6657_v45  ;;  %4653 = vmatpush3.msra.mxu1 %v6660_v23 }
 0xe1a   :  { %3401 = vmatprep.subr.mxu0 %v6663_v20  ;;  %4654 = vmatprep.subr.mxu1 %v7043_v0 }
 0xe1b   :  { %3402 = vmatpush1.msra.mxu0 %v6667_v19  ;;  %4655 = vmatpush3.msra.mxu1 %v6670_v46 }
 0xe1c   :  { %3403 = vmatprep.subr.mxu0 %v6673_v49  ;;  %4656 = vmatprep.subr.mxu1 %v7043_v0 }
 0xe1d   :  { %3404 = vmatpush1.msra.mxu0 %v6677_v63  ;;  %4657 = vmatpush3.msra.mxu1 %v6680_v1  ;;  %v3559_v1 = vld [vmem:[%s6998_s9 + $0x78] sm:$0xff] }
 0xe1e   :  { %3405 = vmatprep.subr.mxu0 %v6683_v58  ;;  %4658 = vmatprep.subr.mxu1 %v7043_v0  ;;  %v3558_v58 = vld [vmem:[%s6998_s9 + $0x70] sm:$0xff] }
 0xe1f   :  { %3406 = vmatpush1.msra.mxu0 %v6687_v60  ;;  %4659 = vmatpush3.msra.mxu1 %v6690_v44  ;;  %v3557_v60 = vld [vmem:[%s6998_s9 + $0x68] sm:$0xff]  ;;  %v3556_v44 = vld [vmem:[%s6998_s9 + $0x60] sm:$0xff] }
 0xe20   :  { %3407 = vmatprep.subr.mxu0 %v6693_v56  ;;  %4660 = vmatprep.subr.mxu1 %v7043_v0  ;;  %v3555_v56 = vld [vmem:[%s6998_s9 + $0x58] sm:$0xff] }
 0xe21   :  { %3408 = vmatpush1.msra.mxu0 %v6697_v50  ;;  %4661 = vmatpush3.msra.mxu1 %v6700_v51  ;;  %v3554_v50 = vld [vmem:[%s6998_s9 + $0x50] sm:$0xff]  ;;  %v3553_v51 = vld [vmem:[%s6998_s9 + $0x48] sm:$0xff] }
 0xe22   :  { %3409 = vmatprep.subr.mxu0 %v6703_v52  ;;  %4662 = vmatprep.subr.mxu1 %v7043_v0  ;;  %v3552_v52 = vld [vmem:[%s6998_s9 + $0x40] sm:$0xff]  ;;  %s5061_s9 = smov [#allocation11]  }
 0xe23   :  { %3410 = vmatpush1.msra.mxu0 %v7130_v16  ;;  %4663 = vmatpush3.msra.mxu1 %v7131_v28  ;;  %s3655_s2 = sshll.u32 %s5061_s9, 4  ;;  %s3656_s2 = int_to_ptr.vmem [resolvable:$true] %s3655_s2 }
 0xe24   :  { %3411 = vmatprep.subr.mxu0 %v7132_v11  ;;  %4664 = vmatprep.subr.mxu1 %v7043_v0  ;;  %s4986_s1 = scalar_lea.vmem %s3656_s2, 128  ;;  %p4991_p2 = scmp.lt.s32.totalorder %s3656_s2, %s3656_s2 }
 0xe25   :  { %3412 = vmatpush1.msra.mxu0 %v7133_v13  ;;  %3445 = vmatprep.mubr.f32.mxu0 %v7043_v0  ;;  %p4987_p1 = scmp.ne.s32.totalorder %s3656_s2, %s4986_s1  ;;  %p4992_p3 = scmp.lt.s32.totalorder %s4986_s1, %s4986_s1 }
 0xe26   :  { %4665 = vmatpush3.msra.mxu1 %v7134_v15  ;;  %4666 = vmatprep.mubr.msk.f32.mxu1 %vm5060_vm0, %v7043_v0 }
 0xe27   :  { %4669 = vmatprep.subr.mxu0 %v7043_v0  ;;  %p4993_p4 = por %p4992_p3, %p4991_p2 }
 0xe29   :  { %p4994_p5 = pnand %p4993_p4, %p4987_p1 }
 0xec6   :  { %v3280_v35 = vpop.f32.mrf.mxu0  ;;  %v3351_v9 = vpop.f32.mrf.mxu1 }
 0xec7   :  { %v3355_v21 = vadd.f32 %v3280_v35, %v2012_v61  ;;  %v3369_v12 = vadd.f32 %v6894_v37, %v3351_v9 }
 0xec8   :  { %v4633_v39 = vpop.f32.mrf.mxu1  ;;  %v3282_v43 = vpop.f32.mrf.mxu0 }
 0xec9   :  { %v3747_v18 = vmul.f32 -1.442695, %v3355_v21  ;;  %v3362_v26 = vadd.f32 %v3282_v43, %v2014_v41 }
 0xecb   :  { %4854 = vpow2.f32 %v3747_v18  ;;  %v3748_v34 = vmul.f32 -1.442695, %v3362_v26 }
 0xecd   :  { %4856 = vpow2.f32 %v3748_v34 }
 0xed8   :  { %v4855_v31 = vpop.eup %4854 }
 0xed9   :  { %v3359_v33 = vadd.f32 1.0, %v4855_v31 }
 0xeda   :  { %v4857_v24 = vpop.eup %4856 }
 0xedb   :  { %4858 = vrcp.f32 %v3359_v33  ;;  %v3366_v23 = vadd.f32 1.0, %v4857_v24 }
 0xee8   :  { %v4859_v40 = vpop.eup %4858 }
 0xee9   :  { %v3370_v59 = vmul.f32 %v4859_v40, %v3369_v12 }
 0xeeb   :  { %v3371_v45 = vadd.f32 %v3370_v59, %v2119_v42 }
 0xeed   :  { %4860 = vtanh.f32 %v3371_v45 }
 0xeee   :  { %4862 = vrcp.f32 %v3366_v23 }
 0xefa   :  { %v4861_v20 = vpop.eup %4860 }
 0xefb   :  { %v3373_v19 = vsub.f32 %v6817_v27, %v4861_v20  ;;  %v4863_v46 = vpop.eup %4862 }
 0xefd   :  { %v3374_v49 = vmul.f32 %v4863_v46, %v3373_v19 }
 0xeff   :  { %v6900_v63 = vadd.f32 %v4861_v20, %v3374_v49 }
 0xf01   :  { %3446 = vmatmul.mubr.f32.vlgmr.msra.gmra.mxu0 %v6900_v63  ;;  %4667 = vmatmul.mubr.f32.vlgmr.msra.gmra.mxu1 %v6900_v63 }
 0xf02   :  { %4701 = vmatprep.mubr.msk.f32.mxu0 %vm5060_vm0, %v7043_v0  ;;  %4670 = vmatpush3.msra.mxu0 %v3559_v1 }
 0xf03   :  { %4671 = vmatprep.subr.mxu0 %v7043_v0 }
 0xf04   :  { %4672 = vmatpush3.msra.mxu0 %v3558_v58 }
 0xf05   :  { %4673 = vmatprep.subr.mxu0 %v7043_v0 }
 0xf06   :  { %4674 = vmatpush3.msra.mxu0 %v3557_v60 }
 0xf07   :  { %4675 = vmatprep.subr.mxu0 %v7043_v0 }
 0xf08   :  { %4676 = vmatpush3.msra.mxu0 %v3556_v44 }
 0xf09   :  { %4677 = vmatprep.subr.mxu0 %v7043_v0 }
 0xf0a   :  { %4678 = vmatpush3.msra.mxu0 %v3555_v56 }
 0xf0b   :  { %4679 = vmatprep.subr.mxu0 %v7043_v0 }
 0xf0c   :  { %4680 = vmatpush3.msra.mxu0 %v3554_v50 }
 0xf0d   :  { %4681 = vmatprep.subr.mxu0 %v7043_v0 }
 0xf0e   :  { %4682 = vmatpush3.msra.mxu0 %v3553_v51 }
 0xf0f   :  { %4683 = vmatprep.subr.mxu0 %v7043_v0 }
 0xf10   :  { %4684 = vmatpush3.msra.mxu0 %v3552_v52 }
 0xf11   :  { %4685 = vmatprep.subr.mxu0 %v7043_v0 }
 0xf12   :  { %4686 = vmatpush3.msra.mxu0 %v3551_v53 }
 0xf13   :  { %4687 = vmatprep.subr.mxu0 %v7043_v0 }
 0xf14   :  { %4688 = vmatpush3.msra.mxu0 %v3550_v2 }
 0xf15   :  { %4689 = vmatprep.subr.mxu0 %v7043_v0 }
 0xf16   :  { %4690 = vmatpush3.msra.mxu0 %v3549_v47 }
 0xf17   :  { %4691 = vmatprep.subr.mxu0 %v7043_v0 }
 0xf18   :  { %4692 = vmatpush3.msra.mxu0 %v3548_v48 }
 0xf19   :  { %4693 = vmatprep.subr.mxu0 %v7043_v0 }
 0xf1a   :  { %4694 = vmatpush3.msra.mxu0 %v3547_v54 }
 0xf1b   :  { %4695 = vmatprep.subr.mxu0 %v7043_v0 }
 0xf1c   :  { %4696 = vmatpush3.msra.mxu0 %v3546_v7 }
 0xf1d   :  { %4697 = vmatprep.subr.mxu0 %v7043_v0 }
 0xf1e   :  { %4698 = vmatpush3.msra.mxu0 %v3545_v6 }
 0xf1f   :  { %4699 = vmatprep.subr.mxu0 %v7043_v0 }
 0xf20   :  { %4700 = vmatpush3.msra.mxu0 %v3544_v10 }
 0xfc1   :  { %v3447_v4 = vpop.f32.mrf.mxu0  ;;  %v3518_v5 = vpop.f32.mrf.mxu1 }
 0xfc2   :  { %v3522_v8 = vadd.f32 %v3447_v4, %v2018_v22  ;;  %v3536_v13 = vadd.f32 %v6894_v37, %v3518_v5 }
 0xfc3   :  { %v4668_v62 = vpop.f32.mrf.mxu1  ;;  %v3449_v57 = vpop.f32.mrf.mxu0 }
 0xfc4   :  { %v3749_v29 = vmul.f32 -1.442695, %v3522_v8  ;;  %v3529_v27 = vadd.f32 %v3449_v57, %v2020_v14 }
 0xfc6   :  { %4864 = vpow2.f32 %v3749_v29  ;;  %v3750_v16 = vmul.f32 -1.442695, %v3529_v27 }
 0xfc8   :  { %4866 = vpow2.f32 %v3750_v16 }
 0xfd3   :  { %v4865_v28 = vpop.eup %4864 }
 0xfd4   :  { %v3526_v11 = vadd.f32 1.0, %v4865_v28 }
 0xfd5   :  { %v4867_v0 = vpop.eup %4866 }
 0xfd6   :  { %4868 = vrcp.f32 %v3526_v11  ;;  %v3533_v9 = vadd.f32 1.0, %v4867_v0 }
 0xfe3   :  { %v4869_v15 = vpop.eup %4868 }
 0xfe4   :  { %v3537_v61 = vmul.f32 %v4869_v15, %v3536_v13 }
 0xfe6   :  { %v3538_v35 = vadd.f32 %v3537_v61, %v2124_v30 }
 0xfe8   :  { %4870 = vtanh.f32 %v3538_v35 }
 0xfe9   :  { %4872 = vrcp.f32 %v3533_v9 }
 0xff5   :  { %v4871_v21 = vpop.eup %4870 }
 0xff6   :  { %v3540_v38 = vsub.f32 %v6900_v63, %v4871_v21  ;;  %v4873_v39 = vpop.eup %4872 }
 0xff8   :  { %v3541_v18 = vmul.f32 %v4873_v39, %v3540_v38 }
 0xffa   :  { %v3542_v43 = vadd.f32 %v4871_v21, %v3541_v18 }
 0xffc   :  { %4702 = vmatmul.mubr.f32.vlgmr.msra.gmra.mxu0 %v3542_v43  ;;  %3543 = vst [vmem:[#allocation13] sm:$0xff] %v3542_v43 }
 0xffd   :  { %4997 = shalt.err (!%p4994_p5)
}
 0xffe   :  { %3658 = dma.vmem_to_hbm [thread:$0]  %s3656_s2, 128, %s7001_s12, [#allocation12]  }
 0xfff   :  { %s5062_s24 = smov [#allocation13]  }
0x1000   :  { %s3665_s25 = sshll.u32 %s5062_s24, 4  ;;  %s3666_s25 = int_to_ptr.vmem [resolvable:$true] %s3665_s25 }
0x1001   :  { %s5006_s26 = scalar_lea.vmem %s3666_s25, 128  ;;  %p5011_p7 = scmp.lt.s32.totalorder %s3666_s25, %s3666_s25 }
0x1002   :  { %p5007_p6 = scmp.ne.s32.totalorder %s3666_s25, %s5006_s26  ;;  %p5012_p8 = scmp.lt.s32.totalorder %s5006_s26, %s5006_s26 }
0x1004   :  { %p5013_p9 = por %p5012_p8, %p5011_p7 }
0x1006   :  { %p5014_p10 = pnand %p5013_p9, %p5007_p6 }
0x1008   :  { %5017 = shalt.err (!%p5014_p10)
}
0x1009   :  { %3668 = dma.vmem_to_hbm [thread:$0]  %s3666_s25, 128, %s7002_s13, [#allocation12]   ;;  %v3751_v25 = vld [vmem:[%s6999_s10] ss:$0 sm:$0xff] }
0x100a   :  { %s5063_s12 = smov [#allocation10]  }
0x100b   :  { %s3645_s14 = sshll.u32 %s5063_s12, 4  ;;  %s3646_s14 = int_to_ptr.vmem [resolvable:$true] %s3645_s14 }
0x100c   :  { %s5026_s15 = scalar_lea.vmem %s3646_s14, 128  ;;  %p5031_p12 = scmp.lt.s32.totalorder %s3646_s14, %s3646_s14 }
0x100d   :  { %p5027_p11 = scmp.ne.s32.totalorder %s3646_s14, %s5026_s15  ;;  %p5032_p13 = scmp.lt.s32.totalorder %s5026_s15, %s5026_s15 }
0x100f   :  { %p5033_p0 = por %p5032_p13, %p5031_p12 }
0x1011   :  { %p5034_p1 = pnand %p5033_p0, %p5027_p11 }
0x10bc   :  { %v3633_v32 = vpop.f32.mrf.mxu0 }
0x10bd   :  { %v3634_v41 = vadd.f32 %v3751_v25, %v3633_v32 }
0x10be   :  { %v4703_v26 = vpop.f32.mrf.mxu0 }
0x10bf   :  { %4874 = vtanh.f32 %v3634_v41 }
0x10cc   :  { %v4875_v34 = vpop.eup %4874 }
0x10cd   :  { %3638 = vst [vmem:[#allocation10] sm:$0xff] %v4875_v34 }
0x10ce   :  { %5037 = shalt.err (!%p5034_p1)
}
0x10cf   :  { %3648 = dma.vmem_to_hbm [thread:$0]  %s3646_s14, 128, %s7000_s11, [#allocation6]  }
0x10d0   :  { %5050 = dma.done.wait [#allocation6], 128  }
0x10d1   :  { %5051 = vsyncadd [#allocation6], 4294967168 }
0x10d2   :  { %5052 = dma.done.wait [#allocation12], 256  }
0x10d3   :  { %5053 = vsyncadd [#allocation12], 4294967040 }
0x10d4   :  { %3678 = vsyncpa [#allocation5], 1 }
0x10d5   :  { %3679 = vsyncpa [#allocation8], 1 }
0x10d6   :  { %3680 = vsyncpa [#allocation6], 1 }
0x10d7   :  { %3681 = vsyncpa [#allocation12], 1 }

</bundles_post_ra>
